<compile_context>
chip_gen: v5e
topology: v5e:2x2
jax: 0.10.0
libtpu: 0.0.40
codegen_flags: <defaults>
</compile_context>

<pallas_src>
import functools

import jax
import jax.numpy as jnp
import numpy as np
from jax.experimental import pallas as pl
from jax.experimental.pallas import tpu as pltpu

_HIGHEST = jax.lax.Precision.HIGHEST


# ---------------------------------------------------------------------------
# Pallas kernel: one block of B_blk batch elements per grid step.
# ---------------------------------------------------------------------------
def _crb_kernel(x_ref, film_ref, w1_ref, w2_ref, wr_ref, vecs_ref,
                g_ref, gt_ref, out_ref, *, kernel_size, mm_dtype, per_tap_min_c):
    f32 = jnp.float32
    B_blk, T, C_in = x_ref.shape
    C_out = out_ref.shape[-1]              # lane-padded channel count
    K = kernel_size
    pad = K // 2
    R = B_blk * T

    # f32-operand matmuls must not fall back to single-pass bf16 on the MXU.
    conv_prec = _HIGHEST if jnp.dtype(mm_dtype) == jnp.dtype(jnp.float32) else None

    x3 = x_ref[...]                         # (B_blk, T, C_in), already mm_dtype

    # ---- conv edge masks: one 0/1 float per non-center tap, shared by both convs
    tpos = jax.lax.broadcasted_iota(jnp.int32, (B_blk, T, 1), 1)
    fmask = {}
    for dk in range(K):
        off = dk - pad
        if off == 0:
            continue
        fmask[dk] = ((tpos + off >= 0) & (tpos + off < T)).astype(mm_dtype)

    # ---- cheap mish: 1 EUP exp + 1 EUP approx reciprocal + 1 NR step (VPU).
    #      tanh(softplus(v)) == w/(w+2) with w = e^v (e^v + 2).
    def mish(v):
        u = jnp.exp(jnp.minimum(v, 20.0))
        w = u * (u + 2.0)
        d = w + 2.0
        r = pl.reciprocal(d, approx=True)
        r = r * (2.0 - d * r)               # Newton-Raphson -> ~f32 accuracy
        return jnp.where(v > 20.0, v, v * (w * r))

    # ---- per-tap operands: roll the (R, C) flattened view; rows that would wrap
    #      across a batch boundary are exactly the out-of-range taps -> masked 0.
    def taps(v3):
        C = v3.shape[-1]
        vf = v3.reshape(R, C)
        out = []
        for dk in range(K):
            off = dk - pad
            if off == 0:
                out.append((dk, vf))
            else:
                r = pltpu.roll(vf, shift=(-off) % R, axis=0)
                r = (r.reshape(B_blk, T, C) * fmask[dk]).reshape(R, C)
                out.append((dk, r))
        return out

    # ---- Conv1d, two strategies:
    #      * C >= per_tap_min_c: K accumulating matmuls against per-tap weight
    #        slices (no (R, K*C) im2col buffer; MXU depth already full).
    #      * small C: fold taps into one (R, K*C) @ (K*C, C_out) contraction.
    def conv1d(v3, w_ref, bias_row):
        C = v3.shape[-1]
        ops = taps(v3)
        if C >= per_tap_min_c:
            y = None
            for dk, op in ops:
                part = jnp.dot(op, w_ref[dk * C:(dk + 1) * C, :],
                               preferred_element_type=f32, precision=conv_prec)
                y = part if y is None else y + part
        else:
            cols = jnp.concatenate([op for _, op in ops], axis=-1)
            y = jnp.dot(cols, w_ref[...],
                        preferred_element_type=f32, precision=conv_prec)
        y = y + vecs_ref[bias_row:bias_row + 1, :]
        return y.reshape(B_blk, T, C_out)

    # ---- GroupNorm (PyTorch semantics): per-(batch, group) stats over (T, gsz).
    #      Group reduce/broadcast via tiny one-hot matmuls (no lane reshapes);
    #      gt_ref is pre-scaled by 1/(gsz*T) in the wrapper; two-pass variance.
    def group_norm(v3, gamma_row, beta_row, eps=1e-5):
        G = g_ref[...]                      # (n_groups, C_out) one-hot
        GTs = gt_ref[...]                   # (C_out, n_groups), pre-scaled by 1/n
        s = jnp.sum(v3, axis=1)             # (B_blk, C_out)
        gmean = jnp.dot(s, GTs, preferred_element_type=f32, precision=_HIGHEST)
        mean_c = jnp.dot(gmean, G, preferred_element_type=f32, precision=_HIGHEST)
        d = v3 - mean_c[:, None, :]
        ss = jnp.sum(d * d, axis=1)
        gvar = jnp.dot(ss, GTs, preferred_element_type=f32, precision=_HIGHEST)
        var_c = jnp.dot(gvar, G, preferred_element_type=f32, precision=_HIGHEST)
        a = var_c + eps
        r = jax.lax.rsqrt(a)
        r = r * (1.5 - 0.5 * a * r * r)     # NR step: HW rsqrt may be approximate
        gamma = vecs_ref[gamma_row:gamma_row + 1, :]
        beta = vecs_ref[beta_row:beta_row + 1, :]
        return d * r[:, None, :] * gamma + beta

    # ---- block 0 conv, then the residual 1x1 right away (ends x3's live range;
    #      result stashed in out_ref instead of a separate VMEM buffer).
    y1 = conv1d(x3, w1_ref, 0)
    res = jnp.dot(x3.reshape(R, C_in), wr_ref[...],
                  preferred_element_type=f32, precision=conv_prec)
    res = res + vecs_ref[6:7, :]
    out_ref[...] = res.reshape(B_blk, T, C_out).astype(out_ref.dtype)

    h = mish(group_norm(y1, 1, 2))

    # ---- FiLM conditioning (mish(cond) -> Linear hoisted to the wrapper; f32)
    h = film_ref[:, 0:1, :] * h + film_ref[:, 1:2, :]

    # ---- block 1: Conv1d -> GroupNorm -> Mish
    h = mish(group_norm(conv1d(h.astype(mm_dtype), w2_ref, 3), 4, 5))

    # ---- add residual
    out_ref[...] = (h + out_ref[...].astype(f32)).astype(out_ref.dtype)


# ---------------------------------------------------------------------------
# VMEM-budget-aware batch-block selection.
# ---------------------------------------------------------------------------
def _auto_bblk(B, T, C_in, C_pad, K, mm_bytes, out_bytes, per_tap_min_c,
               vmem_budget_bytes, fixed_bytes, target_grid):
    """Largest divisor of B whose working set fits the VMEM budget, preferring
    >= target_grid grid steps (>=2 steps per TensorCore on v7x megacore; enough
    steps to keep the block DMA pipelined on single-TC v5e/v6e)."""
    avail = max(vmem_budget_bytes - fixed_bytes, 1 << 20)

    def need(b):
        R = b * T
        # double-buffered pipelined blocks (x, film, out)
        blk = 2 * b * (T * C_in * mm_bytes + 2 * C_pad * 4 + T * C_pad * out_bytes)
        # live in-kernel intermediates: conv out / GN diff / h / res / mm cast
        live = R * C_pad * (4 * 4 + mm_bytes)
        if C_in < per_tap_min_c:
            live += R * K * C_in * mm_bytes        # conv1 im2col concat
        if C_pad < per_tap_min_c:
            live += R * K * C_pad * mm_bytes       # conv2 im2col concat
        return blk + live

    divs = [d for d in range(1, B + 1) if B % d == 0]
    fits = [d for d in divs if need(d) <= avail] or [1]
    pref = [d for d in fits if B // d >= min(target_grid, B)]
    return max(pref or fits)


# ---------------------------------------------------------------------------
# Wrapper: PyTorch-style interface (x: NCL, cond: [B, cond_dim]) -> NCL output.
# ---------------------------------------------------------------------------
def conditional_residual_block_1d(
        x_ncl, cond, params, *, n_groups,
        b_blk=None,
        matmul_dtype=jnp.bfloat16,           # bf16 MXU operands on all gens (f32 accum)
        out_dtype=jnp.float32,               # set bf16 if the consumer tolerates it
        per_tap_min_c=128,                   # per-tap matmuls once contraction fills MXU
        vmem_budget_bytes=48 * 1024 * 1024,  # fits v7x (64 MiB phys); raise ~100 MiB on v5e/v6e
        target_grid=4):
    B, C_in, T = x_ncl.shape
    C_out, _, K = params["w1"].shape
    assert K % 2 == 1, "roll+mask im2col assumes odd kernel_size ('same' padding)"

    LANE = 128
    C_pad = ((C_out + LANE - 1) // LANE) * LANE   # lane-dense output stores

    def padc(a, axis):
        if a.shape[axis] == C_pad:
            return a
        widths = [(0, 0)] * a.ndim
        widths[axis] = (0, C_pad - a.shape[axis])
        return jnp.pad(a, widths)

    f32 = jnp.float32
    # channels-last activations, already in the MXU operand dtype (halves the x
    # HBM DMA and the in-kernel roll/select volume when bf16).
    x = jnp.transpose(x_ncl, (0, 2, 1)).astype(matmul_dtype)            # (B, T, C_in)

    # --- FiLM hoisted out of the kernel: one small high-precision XLA matmul ---
    c = cond.astype(f32)
    mc = c * jnp.tanh(jax.nn.softplus(c))                               # mish(cond)
    e = jnp.dot(mc, params["lin_w"].astype(f32).T, precision=_HIGHEST)
    e = e + params["lin_b"].astype(f32)
    film = padc(e.reshape(B, 2, C_out), 2)                              # (B, 2, C_pad)

    # --- conv weights folded tap-major: rows [dk*C:(dk+1)*C] = tap dk ---
    w1 = padc(params["w1"].astype(f32), 0)                              # (C_pad, C_in, K)
    w1f = jnp.transpose(w1, (2, 1, 0)).reshape(K * C_in, C_pad).astype(matmul_dtype)
    w2 = padc(padc(params["w2"].astype(f32), 0), 1)                     # (C_pad, C_pad, K)
    w2f = jnp.transpose(w2, (2, 1, 0)).reshape(K * C_pad, C_pad).astype(matmul_dtype)

    # --- residual path: Conv1d(1x1) when in != out channels, else nn.Identity ---
    if "wres" in params:
        wr = params["wres"][:, :, 0].astype(f32).T                      # (C_in, C_out)
        bres = params["bres"].astype(f32)
    else:
        assert C_in == C_out
        wr = jnp.eye(C_in, dtype=f32)
        bres = jnp.zeros((C_out,), f32)
    wr = padc(wr, 1).astype(matmul_dtype)                               # (C_in, C_pad)

    # --- per-channel vectors packed into one (7, C_pad) f32 input ---
    vecs = jnp.stack(
        [padc(params["b1"].astype(f32), 0), padc(params["gn1_w"].astype(f32), 0),
         padc(params["gn1_b"].astype(f32), 0), padc(params["b2"].astype(f32), 0),
         padc(params["gn2_w"].astype(f32), 0), padc(params["gn2_b"].astype(f32), 0),
         padc(bres, 0)], axis=0)

    # --- one-hot group matrices; pad channels belong to no group; GT carries 1/n ---
    gsz = C_out // n_groups
    ch = np.arange(C_pad)
    gid = np.where(ch < C_out, ch // gsz, -1)
    G_np = (gid[None, :] == np.arange(n_groups)[:, None]).astype(np.float32)
    G = jnp.asarray(G_np)                                               # (n_groups, C_pad)
    GTs = jnp.asarray(G_np.T / float(gsz * T))                          # (C_pad, n_groups)

    mm_bytes = jnp.dtype(matmul_dtype).itemsize
    out_bytes = jnp.dtype(out_dtype).itemsize
    nbytes = lambda a: a.size * jnp.dtype(a.dtype).itemsize
    # grid-invariant operands (never re-DMA'd, but double-buffered by default).
    # TODO(synk): single-buffer these (pipeline_mode=pl.Buffered(1)) to reclaim
    # VMEM on v7x once that lowering is universally available.
    fixed = 2 * sum(nbytes(a) for a in (w1f, w2f, wr, vecs, G, GTs))

    if b_blk is None:
        b_blk = _auto_bblk(B, T, C_in, C_pad, K, mm_bytes, out_bytes,
                           per_tap_min_c, vmem_budget_bytes, fixed, target_grid)
    assert B % b_blk == 0
    grid = B // b_blk

    full = lambda a: pl.BlockSpec(a.shape, lambda b: (0,) * a.ndim)
    kern = functools.partial(_crb_kernel, kernel_size=K, mm_dtype=matmul_dtype,
                             per_tap_min_c=per_tap_min_c)

    # TODO(synk): for very long horizons tile T as well (needs GroupNorm partial-sum
    # accumulators across T tiles); here T is kept whole per block.
    out = pl.pallas_call(
        kern,
        grid=(grid,),
        in_specs=[
            pl.BlockSpec((b_blk, T, C_in), lambda b: (b, 0, 0)),        # x
            pl.BlockSpec((b_blk, 2, C_pad), lambda b: (b, 0, 0)),       # FiLM scale/bias
            full(w1f), full(w2f), full(wr), full(vecs), full(G), full(GTs),
        ],
        out_specs=pl.BlockSpec((b_blk, T, C_pad), lambda b: (b, 0, 0)),
        out_shape=jax.ShapeDtypeStruct((B, T, C_pad), out_dtype),
        compiler_params=pltpu.CompilerParams(
            dimension_semantics=("parallel",),
            vmem_limit_bytes=int(max(vmem_budget_bytes, 32 * 1024 * 1024))),
    )(x, film, w1f, w2f, wr, vecs, G, GTs)

    if C_pad != C_out:
        out = out[:, :, :C_out]
    return jnp.transpose(out, (0, 2, 1))                                # (B, C_out, T)


# ---------------------------------------------------------------------------
# Pure-JAX reference (independent formulation, high-precision matmuls).
# ---------------------------------------------------------------------------
def _softplus(v):
    return jnp.maximum(v, 0.0) + jnp.log1p(jnp.exp(-jnp.abs(v)))


def _mish(v):
    return v * jnp.tanh(_softplus(v))


def _conv1d_ref(v, w_pt, b):          # v: (B,T,Cin), w_pt: (Cout,Cin,K)
    K = w_pt.shape[-1]
    pad = K // 2
    T = v.shape[1]
    vp = jnp.pad(v, ((0, 0), (pad, pad), (0, 0)))
    out = sum(jnp.einsum("btc,oc->bto", vp[:, dk:dk + T, :], w_pt[:, :, dk],
                         precision=_HIGHEST)
              for dk in range(K))
    return out + b


def _group_norm_ref(v, gamma, beta, n_groups, eps=1e-5):   # v: (B,T,C)
    B, T, C = v.shape
    gsz = C // n_groups
    vg = v.reshape(B, T, n_groups, gsz)
    mean = vg.mean(axis=(1, 3), keepdims=True)
    var = ((vg - mean) ** 2).mean(axis=(1, 3), keepdims=True)
    vn = ((vg - mean) / jnp.sqrt(var + eps)).reshape(B, T, C)
    return vn * gamma + beta


def reference(x_ncl, cond, params, *, n_groups):
    x = jnp.transpose(x_ncl, (0, 2, 1))                    # (B, T, Cin)
    C_out = params["w1"].shape[0]
    h = _mish(_group_norm_ref(_conv1d_ref(x, params["w1"], params["b1"]),
                              params["gn1_w"], params["gn1_b"], n_groups))
    e = jnp.dot(_mish(cond), params["lin_w"].T, precision=_HIGHEST) + params["lin_b"]
    scale, fbias = e[:, :C_out], e[:, C_out:]
    h = scale[:, None, :] * h + fbias[:, None, :]
    h = _mish(_group_norm_ref(_conv1d_ref(h, params["w2"], params["b2"]),
                              params["gn2_w"], params["gn2_b"], n_groups))
    if "wres" in params:
        res = jnp.einsum("btc,oc->bto", x, params["wres"][:, :, 0],
                         precision=_HIGHEST) + params["bres"]
    else:
        res = x
    out = h + res
    return jnp.transpose(out, (0, 2, 1))                    # (B, C_out, T)


# ---------------------------------------------------------------------------
if __name__ == "__main__":
    B, C_in, C_out, T = 4, 8, 16, 64
    cond_dim, K, n_groups = 32, 3, 8

    key = jax.random.PRNGKey(0)
    ks = jax.random.split(key, 14)
    normal = lambda k, s, sc=0.1: sc * jax.random.normal(k, s, dtype=jnp.float32)

    params = {
        "w1": normal(ks[0], (C_out, C_in, K)),
        "b1": normal(ks[1], (C_out,)),
        "gn1_w": 1.0 + normal(ks[2], (C_out,)),
        "gn1_b": normal(ks[3], (C_out,)),
        "lin_w": normal(ks[4], (2 * C_out, cond_dim)),
        "lin_b": normal(ks[5], (2 * C_out,)),
        "w2": normal(ks[6], (C_out, C_out, K)),
        "b2": normal(ks[7], (C_out,)),
        "gn2_w": 1.0 + normal(ks[8], (C_out,)),
        "gn2_b": normal(ks[9], (C_out,)),
        "wres": normal(ks[10], (C_out, C_in, 1)),
        "bres": normal(ks[11], (C_out,)),
    }

    x = jax.random.normal(ks[12], (B, C_in, T), dtype=jnp.float32)
    cond = jax.random.normal(ks[13], (B, cond_dim), dtype=jnp.float32)

    ref = reference(x, cond, params, n_groups=n_groups)

    # f32 MXU-operand path: HIGHEST-precision dots + NR-refined mish/rsqrt.
    out = conditional_residual_block_1d(x, cond, params, n_groups=n_groups,
                                        matmul_dtype=jnp.float32)
    out = jax.block_until_ready(out)
    assert out.shape == (B, C_out, T), out.shape
    np.testing.assert_allclose(np.asarray(out), np.asarray(ref), atol=2e-3, rtol=2e-3)

    # default bf16 MXU-operand path (recommended on v5e/v6e/v7x); f32 accumulation,
    # GroupNorm stats, mish and FiLM -> tolerance covers bf16 operand rounding only.
    out_bf = conditional_residual_block_1d(x, cond, params, n_groups=n_groups)
    out_bf = jax.block_until_ready(out_bf)
    np.testing.assert_allclose(np.asarray(out_bf), np.asarray(ref), atol=5e-2, rtol=5e-2)

    print("KERNEL_OK")
</pallas_src>

<mosaic_0001>
module attributes {stable_mosaic.version = 11 : i64} {
  func.func @_crb_kernel(%arg0: i32, %arg1: memref<1x64x8xf32, #tpu.memory_space<vmem>>, %arg2: memref<1x2x128xf32, #tpu.memory_space<vmem>>, %arg3: memref<24x128xf32, #tpu.memory_space<vmem>>, %arg4: memref<384x128xf32, #tpu.memory_space<vmem>>, %arg5: memref<8x128xf32, #tpu.memory_space<vmem>>, %arg6: memref<7x128xf32, #tpu.memory_space<vmem>>, %arg7: memref<8x128xf32, #tpu.memory_space<vmem>>, %arg8: memref<128x8xf32, #tpu.memory_space<vmem>>, %arg9: memref<1x64x128xf32, #tpu.memory_space<vmem>>) attributes {dimension_semantics = [#tpu.dimension_semantics<parallel>], iteration_bounds = array<i64: 4>, scalar_prefetch = 0 : i64, scratch_operands = 0 : i64, tpu.core_type = #tpu.core_type<tc>, window_params = [{transform_indices = @transform_0, window_bounds = array<i64: 1, 64, 8>}, {transform_indices = @transform_1, window_bounds = array<i64: 1, 2, 128>}, {pipeline_mode = #tpu.pipeline_mode<synchronous>, transform_indices = @transform_2, window_bounds = array<i64: 24, 128>}, {pipeline_mode = #tpu.pipeline_mode<synchronous>, transform_indices = @transform_3, window_bounds = array<i64: 384, 128>}, {pipeline_mode = #tpu.pipeline_mode<synchronous>, transform_indices = @transform_4, window_bounds = array<i64: 8, 128>}, {pipeline_mode = #tpu.pipeline_mode<synchronous>, transform_indices = @transform_5, window_bounds = array<i64: 7, 128>}, {pipeline_mode = #tpu.pipeline_mode<synchronous>, transform_indices = @transform_6, window_bounds = array<i64: 8, 128>}, {pipeline_mode = #tpu.pipeline_mode<synchronous>, transform_indices = @transform_7, window_bounds = array<i64: 128, 8>}, {transform_indices = @transform_8, window_bounds = array<i64: 1, 64, 128>}]} {
    %c0 = arith.constant 0 : index
    %c0_0 = arith.constant 0 : index
    %c0_1 = arith.constant 0 : index
    %0 = vector.load %arg1[%c0, %c0_0, %c0_1] : memref<1x64x8xf32, #tpu.memory_space<vmem>>, vector<1x64x8xf32>
    %1 = tpu.iota {dimensions = array<i32: 1>} : vector<1x64x1xi32>
    %c-1_i32 = arith.constant -1 : i32
    %2 = vector.broadcast %c-1_i32 : i32 to vector<1x64x1xi32>
    %3 = arith.addi %1, %2 : vector<1x64x1xi32>
    %c0_i32 = arith.constant 0 : i32
    %4 = vector.broadcast %c0_i32 : i32 to vector<1x64x1xi32>
    %5 = arith.cmpi sge, %3, %4 : vector<1x64x1xi32>
    %c-1_i32_2 = arith.constant -1 : i32
    %6 = vector.broadcast %c-1_i32_2 : i32 to vector<1x64x1xi32>
    %7 = arith.addi %1, %6 : vector<1x64x1xi32>
    %c64_i32 = arith.constant 64 : i32
    %8 = vector.broadcast %c64_i32 : i32 to vector<1x64x1xi32>
    %9 = arith.cmpi slt, %7, %8 : vector<1x64x1xi32>
    %10 = arith.andi %5, %9 : vector<1x64x1xi1>
    %11 = arith.extui %10 : vector<1x64x1xi1> to vector<1x64x1xi32>
    %12 = arith.sitofp %11 : vector<1x64x1xi32> to vector<1x64x1xf32>
    %c1_i32 = arith.constant 1 : i32
    %13 = vector.broadcast %c1_i32 : i32 to vector<1x64x1xi32>
    %14 = arith.addi %1, %13 : vector<1x64x1xi32>
    %c0_i32_3 = arith.constant 0 : i32
    %15 = vector.broadcast %c0_i32_3 : i32 to vector<1x64x1xi32>
    %16 = arith.cmpi sge, %14, %15 : vector<1x64x1xi32>
    %c1_i32_4 = arith.constant 1 : i32
    %17 = vector.broadcast %c1_i32_4 : i32 to vector<1x64x1xi32>
    %18 = arith.addi %1, %17 : vector<1x64x1xi32>
    %c64_i32_5 = arith.constant 64 : i32
    %19 = vector.broadcast %c64_i32_5 : i32 to vector<1x64x1xi32>
    %20 = arith.cmpi slt, %18, %19 : vector<1x64x1xi32>
    %21 = arith.andi %16, %20 : vector<1x64x1xi1>
    %22 = arith.extui %21 : vector<1x64x1xi1> to vector<1x64x1xi32>
    %23 = arith.sitofp %22 : vector<1x64x1xi32> to vector<1x64x1xf32>
    %24 = vector.shape_cast %0 : vector<1x64x8xf32> to vector<64x8xf32>
    %c1_i32_6 = arith.constant 1 : i32
    %25 = tpu.dynamic_rotate %24 by %c1_i32_6 dim 0 : vector<64x8xf32>, i32 -> vector<64x8xf32>
    %26 = vector.shape_cast %25 : vector<64x8xf32> to vector<1x64x8xf32>
    %27 = vector.broadcast %12 : vector<1x64x1xf32> to vector<1x64x8xf32>
    %28 = arith.mulf %26, %27 : vector<1x64x8xf32>
    %29 = vector.shape_cast %28 : vector<1x64x8xf32> to vector<64x8xf32>
    %c63_i32 = arith.constant 63 : i32
    %30 = tpu.dynamic_rotate %24 by %c63_i32 dim 0 : vector<64x8xf32>, i32 -> vector<64x8xf32>
    %31 = vector.shape_cast %30 : vector<64x8xf32> to vector<1x64x8xf32>
    %32 = vector.broadcast %23 : vector<1x64x1xf32> to vector<1x64x8xf32>
    %33 = arith.mulf %31, %32 : vector<1x64x8xf32>
    %34 = vector.shape_cast %33 : vector<1x64x8xf32> to vector<64x8xf32>
    %35 = tpu.concatenate %29, %24, %34 in 1 : vector<64x8xf32>, vector<64x8xf32>, vector<64x8xf32> -> vector<64x24xf32>
    %c0_7 = arith.constant 0 : index
    %c0_8 = arith.constant 0 : index
    %36 = vector.load %arg3[%c0_7, %c0_8] : memref<24x128xf32, #tpu.memory_space<vmem>>, vector<24x128xf32>
    %cst = arith.constant dense<0.000000e+00> : vector<64x128xf32>
    %37 = tpu.matmul %35, %36, %cst {dimension_numbers = #tpu.dot_dimension_numbers<[1], [0], [0], [1], [0, 0, 1, 1], [], []>, precision = #tpu.contract_precision<fp32>} : vector<64x24xf32>, vector<24x128xf32>, vector<64x128xf32> -> vector<64x128xf32>
    %c0_9 = arith.constant 0 : index
    %c0_10 = arith.constant 0 : index
    %38 = vector.load %arg6[%c0_9, %c0_10] : memref<7x128xf32, #tpu.memory_space<vmem>>, vector<1x128xf32>
    %39 = vector.broadcast %38 : vector<1x128xf32> to vector<64x128xf32>
    %40 = arith.addf %37, %39 : vector<64x128xf32>
    %41 = vector.shape_cast %40 : vector<64x128xf32> to vector<1x64x128xf32>
    %42 = vector.shape_cast %0 : vector<1x64x8xf32> to vector<64x8xf32>
    %c0_11 = arith.constant 0 : index
    %c0_12 = arith.constant 0 : index
    %43 = vector.load %arg5[%c0_11, %c0_12] : memref<8x128xf32, #tpu.memory_space<vmem>>, vector<8x128xf32>
    %cst_13 = arith.constant dense<0.000000e+00> : vector<64x128xf32>
    %44 = tpu.matmul %42, %43, %cst_13 {dimension_numbers = #tpu.dot_dimension_numbers<[1], [0], [0], [1], [0, 0, 1, 1], [], []>, precision = #tpu.contract_precision<fp32>} : vector<64x8xf32>, vector<8x128xf32>, vector<64x128xf32> -> vector<64x128xf32>
    %c6 = arith.constant 6 : index
    %c0_14 = arith.constant 0 : index
    %45 = vector.load %arg6[%c6, %c0_14] : memref<7x128xf32, #tpu.memory_space<vmem>>, vector<1x128xf32>
    %46 = vector.broadcast %45 : vector<1x128xf32> to vector<64x128xf32>
    %47 = arith.addf %44, %46 : vector<64x128xf32>
    %48 = vector.shape_cast %47 : vector<64x128xf32> to vector<1x64x128xf32>
    %c0_15 = arith.constant 0 : index
    %c0_16 = arith.constant 0 : index
    %c0_17 = arith.constant 0 : index
    %49 = vector.load %arg9[%c0_15, %c0_16, %c0_17] : memref<1x64x128xf32, #tpu.memory_space<vmem>>, vector<1x64x128xf32>
    tpu.vector_store %arg9[%c0_15, %c0_16, %c0_17], %48 {strides = array<i32>} : memref<1x64x128xf32, #tpu.memory_space<vmem>>, vector<1x64x128xf32>,
    %c0_18 = arith.constant 0 : index
    %c0_19 = arith.constant 0 : index
    %50 = vector.load %arg7[%c0_18, %c0_19] : memref<8x128xf32, #tpu.memory_space<vmem>>, vector<8x128xf32>
    %c0_20 = arith.constant 0 : index
    %c0_21 = arith.constant 0 : index
    %51 = vector.load %arg8[%c0_20, %c0_21] : memref<128x8xf32, #tpu.memory_space<vmem>>, vector<128x8xf32>
    %cst_22 = arith.constant dense<0.000000e+00> : vector<1x128xf32>
    %52 = vector.multi_reduction <add>, %41, %cst_22 [1] : vector<1x64x128xf32> to vector<1x128xf32>
    %cst_23 = arith.constant dense<0.000000e+00> : vector<1x8xf32>
    %53 = tpu.matmul %52, %51, %cst_23 {dimension_numbers = #tpu.dot_dimension_numbers<[1], [0], [0], [1], [0, 0, 1, 1], [], []>, precision = #tpu.contract_precision<fp32>} : vector<1x128xf32>, vector<128x8xf32>, vector<1x8xf32> -> vector<1x8xf32>
    %cst_24 = arith.constant dense<0.000000e+00> : vector<1x128xf32>
    %54 = tpu.matmul %53, %50, %cst_24 {dimension_numbers = #tpu.dot_dimension_numbers<[1], [0], [0], [1], [0, 0, 1, 1], [], []>, precision = #tpu.contract_precision<fp32>} : vector<1x8xf32>, vector<8x128xf32>, vector<1x128xf32> -> vector<1x128xf32>
    %55 = vector.shape_cast %54 : vector<1x128xf32> to vector<1x1x128xf32>
    %56 = vector.broadcast %55 : vector<1x1x128xf32> to vector<1x64x128xf32>
    %57 = arith.subf %41, %56 : vector<1x64x128xf32>
    %58 = arith.mulf %57, %57 : vector<1x64x128xf32>
    %cst_25 = arith.constant dense<0.000000e+00> : vector<1x128xf32>
    %59 = vector.multi_reduction <add>, %58, %cst_25 [1] : vector<1x64x128xf32> to vector<1x128xf32>
    %cst_26 = arith.constant dense<0.000000e+00> : vector<1x8xf32>
    %60 = tpu.matmul %59, %51, %cst_26 {dimension_numbers = #tpu.dot_dimension_numbers<[1], [0], [0], [1], [0, 0, 1, 1], [], []>, precision = #tpu.contract_precision<fp32>} : vector<1x128xf32>, vector<128x8xf32>, vector<1x8xf32> -> vector<1x8xf32>
    %cst_27 = arith.constant dense<0.000000e+00> : vector<1x128xf32>
    %61 = tpu.matmul %60, %50, %cst_27 {dimension_numbers = #tpu.dot_dimension_numbers<[1], [0], [0], [1], [0, 0, 1, 1], [], []>, precision = #tpu.contract_precision<fp32>} : vector<1x8xf32>, vector<8x128xf32>, vector<1x128xf32> -> vector<1x128xf32>
    %cst_28 = arith.constant 9.99999974E-6 : f32
    %62 = vector.broadcast %cst_28 : f32 to vector<1x128xf32>
    %63 = arith.addf %61, %62 : vector<1x128xf32>
    %64 = math.rsqrt %63 : vector<1x128xf32>
    %cst_29 = arith.constant 5.000000e-01 : f32
    %65 = vector.broadcast %cst_29 : f32 to vector<1x128xf32>
    %66 = arith.mulf %65, %63 : vector<1x128xf32>
    %67 = arith.mulf %66, %64 : vector<1x128xf32>
    %68 = arith.mulf %67, %64 : vector<1x128xf32>
    %cst_30 = arith.constant 1.500000e+00 : f32
    %69 = vector.broadcast %cst_30 : f32 to vector<1x128xf32>
    %70 = arith.subf %69, %68 : vector<1x128xf32>
    %71 = arith.mulf %64, %70 : vector<1x128xf32>
    %c1 = arith.constant 1 : index
    %c0_31 = arith.constant 0 : index
    %72 = vector.load %arg6[%c1, %c0_31] : memref<7x128xf32, #tpu.memory_space<vmem>>, vector<1x128xf32>
    %c2 = arith.constant 2 : index
    %c0_32 = arith.constant 0 : index
    %73 = vector.load %arg6[%c2, %c0_32] : memref<7x128xf32, #tpu.memory_space<vmem>>, vector<1x128xf32>
    %74 = vector.shape_cast %71 : vector<1x128xf32> to vector<1x1x128xf32>
    %75 = vector.broadcast %74 : vector<1x1x128xf32> to vector<1x64x128xf32>
    %76 = arith.mulf %57, %75 : vector<1x64x128xf32>
    %77 = vector.shape_cast %72 : vector<1x128xf32> to vector<1x1x128xf32>
    %78 = vector.broadcast %77 : vector<1x1x128xf32> to vector<1x64x128xf32>
    %79 = arith.mulf %76, %78 : vector<1x64x128xf32>
    %80 = vector.shape_cast %73 : vector<1x128xf32> to vector<1x1x128xf32>
    %81 = vector.broadcast %80 : vector<1x1x128xf32> to vector<1x64x128xf32>
    %82 = arith.addf %79, %81 : vector<1x64x128xf32>
    %cst_33 = arith.constant 2.000000e+01 : f32
    %83 = vector.broadcast %cst_33 : f32 to vector<1x64x128xf32>
    %84 = arith.minimumf %82, %83 : vector<1x64x128xf32>
    %85 = math.exp %84 : vector<1x64x128xf32>
    %cst_34 = arith.constant 2.000000e+00 : f32
    %86 = vector.broadcast %cst_34 : f32 to vector<1x64x128xf32>
    %87 = arith.addf %85, %86 : vector<1x64x128xf32>
    %88 = arith.mulf %85, %87 : vector<1x64x128xf32>
    %cst_35 = arith.constant 2.000000e+00 : f32
    %89 = vector.broadcast %cst_35 : f32 to vector<1x64x128xf32>
    %90 = arith.addf %88, %89 : vector<1x64x128xf32>
    %91 = tpu.reciprocal %90 {approx = true} : vector<1x64x128xf32> -> vector<1x64x128xf32>
    %92 = arith.mulf %90, %91 : vector<1x64x128xf32>
    %cst_36 = arith.constant 2.000000e+00 : f32
    %93 = vector.broadcast %cst_36 : f32 to vector<1x64x128xf32>
    %94 = arith.subf %93, %92 : vector<1x64x128xf32>
    %95 = arith.mulf %91, %94 : vector<1x64x128xf32>
    %cst_37 = arith.constant 2.000000e+01 : f32
    %96 = vector.broadcast %cst_37 : f32 to vector<1x64x128xf32>
    %97 = arith.cmpf ogt, %82, %96 : vector<1x64x128xf32>
    %98 = arith.mulf %88, %95 : vector<1x64x128xf32>
    %99 = arith.mulf %82, %98 : vector<1x64x128xf32>
    %100 = arith.select %97, %82, %99 : vector<1x64x128xi1>, vector<1x64x128xf32>
    %c0_38 = arith.constant 0 : index
    %c0_39 = arith.constant 0 : index
    %c0_40 = arith.constant 0 : index
    %101 = vector.load %arg2[%c0_38, %c0_39, %c0_40] : memref<1x2x128xf32, #tpu.memory_space<vmem>>, vector<1x1x128xf32>
    %102 = vector.broadcast %101 : vector<1x1x128xf32> to vector<1x64x128xf32>
    %103 = arith.mulf %102, %100 : vector<1x64x128xf32>
    %c0_41 = arith.constant 0 : index
    %c1_42 = arith.constant 1 : index
    %c0_43 = arith.constant 0 : index
    %104 = vector.load %arg2[%c0_41, %c1_42, %c0_43] : memref<1x2x128xf32, #tpu.memory_space<vmem>>, vector<1x1x128xf32>
    %105 = vector.broadcast %104 : vector<1x1x128xf32> to vector<1x64x128xf32>
    %106 = arith.addf %103, %105 : vector<1x64x128xf32>
    %107 = vector.shape_cast %106 : vector<1x64x128xf32> to vector<64x128xf32>
    %c1_i32_44 = arith.constant 1 : i32
    %108 = tpu.dynamic_rotate %107 by %c1_i32_44 dim 0 : vector<64x128xf32>, i32 -> vector<64x128xf32>
    %109 = vector.shape_cast %108 : vector<64x128xf32> to vector<1x64x128xf32>
    %110 = vector.broadcast %12 : vector<1x64x1xf32> to vector<1x64x128xf32>
    %111 = arith.mulf %109, %110 : vector<1x64x128xf32>
    %112 = vector.shape_cast %111 : vector<1x64x128xf32> to vector<64x128xf32>
    %c63_i32_45 = arith.constant 63 : i32
    %113 = tpu.dynamic_rotate %107 by %c63_i32_45 dim 0 : vector<64x128xf32>, i32 -> vector<64x128xf32>
    %114 = vector.shape_cast %113 : vector<64x128xf32> to vector<1x64x128xf32>
    %115 = vector.broadcast %23 : vector<1x64x1xf32> to vector<1x64x128xf32>
    %116 = arith.mulf %114, %115 : vector<1x64x128xf32>
    %117 = vector.shape_cast %116 : vector<1x64x128xf32> to vector<64x128xf32>
    %c0_46 = arith.constant 0 : index
    %c0_47 = arith.constant 0 : index
    %118 = vector.load %arg4[%c0_46, %c0_47] : memref<384x128xf32, #tpu.memory_space<vmem>>, vector<128x128xf32>
    %cst_48 = arith.constant dense<0.000000e+00> : vector<64x128xf32>
    %119 = tpu.matmul %112, %118, %cst_48 {dimension_numbers = #tpu.dot_dimension_numbers<[1], [0], [0], [1], [0, 0, 1, 1], [], []>, precision = #tpu.contract_precision<fp32>} : vector<64x128xf32>, vector<128x128xf32>, vector<64x128xf32> -> vector<64x128xf32>
    %c128 = arith.constant 128 : index
    %c0_49 = arith.constant 0 : index
    %120 = vector.load %arg4[%c128, %c0_49] : memref<384x128xf32, #tpu.memory_space<vmem>>, vector<128x128xf32>
    %cst_50 = arith.constant dense<0.000000e+00> : vector<64x128xf32>
    %121 = tpu.matmul %107, %120, %cst_50 {dimension_numbers = #tpu.dot_dimension_numbers<[1], [0], [0], [1], [0, 0, 1, 1], [], []>, precision = #tpu.contract_precision<fp32>} : vector<64x128xf32>, vector<128x128xf32>, vector<64x128xf32> -> vector<64x128xf32>
    %122 = arith.addf %119, %121 : vector<64x128xf32>
    %c256 = arith.constant 256 : index
    %c0_51 = arith.constant 0 : index
    %123 = vector.load %arg4[%c256, %c0_51] : memref<384x128xf32, #tpu.memory_space<vmem>>, vector<128x128xf32>
    %cst_52 = arith.constant dense<0.000000e+00> : vector<64x128xf32>
    %124 = tpu.matmul %117, %123, %cst_52 {dimension_numbers = #tpu.dot_dimension_numbers<[1], [0], [0], [1], [0, 0, 1, 1], [], []>, precision = #tpu.contract_precision<fp32>} : vector<64x128xf32>, vector<128x128xf32>, vector<64x128xf32> -> vector<64x128xf32>
    %125 = arith.addf %122, %124 : vector<64x128xf32>
    %c3 = arith.constant 3 : index
    %c0_53 = arith.constant 0 : index
    %126 = vector.load %arg6[%c3, %c0_53] : memref<7x128xf32, #tpu.memory_space<vmem>>, vector<1x128xf32>
    %127 = vector.broadcast %126 : vector<1x128xf32> to vector<64x128xf32>
    %128 = arith.addf %125, %127 : vector<64x128xf32>
    %129 = vector.shape_cast %128 : vector<64x128xf32> to vector<1x64x128xf32>
    %c0_54 = arith.constant 0 : index
    %c0_55 = arith.constant 0 : index
    %130 = vector.load %arg7[%c0_54, %c0_55] : memref<8x128xf32, #tpu.memory_space<vmem>>, vector<8x128xf32>
    %c0_56 = arith.constant 0 : index
    %c0_57 = arith.constant 0 : index
    %131 = vector.load %arg8[%c0_56, %c0_57] : memref<128x8xf32, #tpu.memory_space<vmem>>, vector<128x8xf32>
    %cst_58 = arith.constant dense<0.000000e+00> : vector<1x128xf32>
    %132 = vector.multi_reduction <add>, %129, %cst_58 [1] : vector<1x64x128xf32> to vector<1x128xf32>
    %cst_59 = arith.constant dense<0.000000e+00> : vector<1x8xf32>
    %133 = tpu.matmul %132, %131, %cst_59 {dimension_numbers = #tpu.dot_dimension_numbers<[1], [0], [0], [1], [0, 0, 1, 1], [], []>, precision = #tpu.contract_precision<fp32>} : vector<1x128xf32>, vector<128x8xf32>, vector<1x8xf32> -> vector<1x8xf32>
    %cst_60 = arith.constant dense<0.000000e+00> : vector<1x128xf32>
    %134 = tpu.matmul %133, %130, %cst_60 {dimension_numbers = #tpu.dot_dimension_numbers<[1], [0], [0], [1], [0, 0, 1, 1], [], []>, precision = #tpu.contract_precision<fp32>} : vector<1x8xf32>, vector<8x128xf32>, vector<1x128xf32> -> vector<1x128xf32>
    %135 = vector.shape_cast %134 : vector<1x128xf32> to vector<1x1x128xf32>
    %136 = vector.broadcast %135 : vector<1x1x128xf32> to vector<1x64x128xf32>
    %137 = arith.subf %129, %136 : vector<1x64x128xf32>
    %138 = arith.mulf %137, %137 : vector<1x64x128xf32>
    %cst_61 = arith.constant dense<0.000000e+00> : vector<1x128xf32>
    %139 = vector.multi_reduction <add>, %138, %cst_61 [1] : vector<1x64x128xf32> to vector<1x128xf32>
    %cst_62 = arith.constant dense<0.000000e+00> : vector<1x8xf32>
    %140 = tpu.matmul %139, %131, %cst_62 {dimension_numbers = #tpu.dot_dimension_numbers<[1], [0], [0], [1], [0, 0, 1, 1], [], []>, precision = #tpu.contract_precision<fp32>} : vector<1x128xf32>, vector<128x8xf32>, vector<1x8xf32> -> vector<1x8xf32>
    %cst_63 = arith.constant dense<0.000000e+00> : vector<1x128xf32>
    %141 = tpu.matmul %140, %130, %cst_63 {dimension_numbers = #tpu.dot_dimension_numbers<[1], [0], [0], [1], [0, 0, 1, 1], [], []>, precision = #tpu.contract_precision<fp32>} : vector<1x8xf32>, vector<8x128xf32>, vector<1x128xf32> -> vector<1x128xf32>
    %cst_64 = arith.constant 9.99999974E-6 : f32
    %142 = vector.broadcast %cst_64 : f32 to vector<1x128xf32>
    %143 = arith.addf %141, %142 : vector<1x128xf32>
    %144 = math.rsqrt %143 : vector<1x128xf32>
    %cst_65 = arith.constant 5.000000e-01 : f32
    %145 = vector.broadcast %cst_65 : f32 to vector<1x128xf32>
    %146 = arith.mulf %145, %143 : vector<1x128xf32>
    %147 = arith.mulf %146, %144 : vector<1x128xf32>
    %148 = arith.mulf %147, %144 : vector<1x128xf32>
    %cst_66 = arith.constant 1.500000e+00 : f32
    %149 = vector.broadcast %cst_66 : f32 to vector<1x128xf32>
    %150 = arith.subf %149, %148 : vector<1x128xf32>
    %151 = arith.mulf %144, %150 : vector<1x128xf32>
    %c4 = arith.constant 4 : index
    %c0_67 = arith.constant 0 : index
    %152 = vector.load %arg6[%c4, %c0_67] : memref<7x128xf32, #tpu.memory_space<vmem>>, vector<1x128xf32>
    %c5 = arith.constant 5 : index
    %c0_68 = arith.constant 0 : index
    %153 = vector.load %arg6[%c5, %c0_68] : memref<7x128xf32, #tpu.memory_space<vmem>>, vector<1x128xf32>
    %154 = vector.shape_cast %151 : vector<1x128xf32> to vector<1x1x128xf32>
    %155 = vector.broadcast %154 : vector<1x1x128xf32> to vector<1x64x128xf32>
    %156 = arith.mulf %137, %155 : vector<1x64x128xf32>
    %157 = vector.shape_cast %152 : vector<1x128xf32> to vector<1x1x128xf32>
    %158 = vector.broadcast %157 : vector<1x1x128xf32> to vector<1x64x128xf32>
    %159 = arith.mulf %156, %158 : vector<1x64x128xf32>
    %160 = vector.shape_cast %153 : vector<1x128xf32> to vector<1x1x128xf32>
    %161 = vector.broadcast %160 : vector<1x1x128xf32> to vector<1x64x128xf32>
    %162 = arith.addf %159, %161 : vector<1x64x128xf32>
    %cst_69 = arith.constant 2.000000e+01 : f32
    %163 = vector.broadcast %cst_69 : f32 to vector<1x64x128xf32>
    %164 = arith.minimumf %162, %163 : vector<1x64x128xf32>
    %165 = math.exp %164 : vector<1x64x128xf32>
    %cst_70 = arith.constant 2.000000e+00 : f32
    %166 = vector.broadcast %cst_70 : f32 to vector<1x64x128xf32>
    %167 = arith.addf %165, %166 : vector<1x64x128xf32>
    %168 = arith.mulf %165, %167 : vector<1x64x128xf32>
    %cst_71 = arith.constant 2.000000e+00 : f32
    %169 = vector.broadcast %cst_71 : f32 to vector<1x64x128xf32>
    %170 = arith.addf %168, %169 : vector<1x64x128xf32>
    %171 = tpu.reciprocal %170 {approx = true} : vector<1x64x128xf32> -> vector<1x64x128xf32>
    %172 = arith.mulf %170, %171 : vector<1x64x128xf32>
    %cst_72 = arith.constant 2.000000e+00 : f32
    %173 = vector.broadcast %cst_72 : f32 to vector<1x64x128xf32>
    %174 = arith.subf %173, %172 : vector<1x64x128xf32>
    %175 = arith.mulf %171, %174 : vector<1x64x128xf32>
    %cst_73 = arith.constant 2.000000e+01 : f32
    %176 = vector.broadcast %cst_73 : f32 to vector<1x64x128xf32>
    %177 = arith.cmpf ogt, %162, %176 : vector<1x64x128xf32>
    %178 = arith.mulf %168, %175 : vector<1x64x128xf32>
    %179 = arith.mulf %162, %178 : vector<1x64x128xf32>
    %180 = arith.select %177, %162, %179 : vector<1x64x128xi1>, vector<1x64x128xf32>
    %c0_74 = arith.constant 0 : index
    %c0_75 = arith.constant 0 : index
    %c0_76 = arith.constant 0 : index
    %181 = vector.load %arg9[%c0_74, %c0_75, %c0_76] : memref<1x64x128xf32, #tpu.memory_space<vmem>>, vector<1x64x128xf32>
    %182 = arith.addf %180, %181 : vector<1x64x128xf32>
    %c0_77 = arith.constant 0 : index
    %c0_78 = arith.constant 0 : index
    %c0_79 = arith.constant 0 : index
    %183 = vector.load %arg9[%c0_77, %c0_78, %c0_79] : memref<1x64x128xf32, #tpu.memory_space<vmem>>, vector<1x64x128xf32>
    tpu.vector_store %arg9[%c0_77, %c0_78, %c0_79], %182 {strides = array<i32>} : memref<1x64x128xf32, #tpu.memory_space<vmem>>, vector<1x64x128xf32>,
    return
  }
  func.func @transform_0(%arg0: i32) -> (i32, i32, i32) {
    %c0_i32 = arith.constant 0 : i32
    %c0_i32_0 = arith.constant 0 : i32
    %c0_i32_1 = arith.constant 0 : i32
    return %arg0, %c0_i32, %c0_i32_0 : i32, i32, i32
  }
  func.func @transform_1(%arg0: i32) -> (i32, i32, i32) {
    %c0_i32 = arith.constant 0 : i32
    %c0_i32_0 = arith.constant 0 : i32
    %c0_i32_1 = arith.constant 0 : i32
    return %arg0, %c0_i32, %c0_i32_0 : i32, i32, i32
  }
  func.func @transform_2(%arg0: i32) -> (i32, i32) {
    %c0_i32 = arith.constant 0 : i32
    %c0_i32_0 = arith.constant 0 : i32
    %c0_i32_1 = arith.constant 0 : i32
    return %c0_i32, %c0_i32_0 : i32, i32
  }
  func.func @transform_3(%arg0: i32) -> (i32, i32) {
    %c0_i32 = arith.constant 0 : i32
    %c0_i32_0 = arith.constant 0 : i32
    %c0_i32_1 = arith.constant 0 : i32
    return %c0_i32, %c0_i32_0 : i32, i32
  }
  func.func @transform_4(%arg0: i32) -> (i32, i32) {
    %c0_i32 = arith.constant 0 : i32
    %c0_i32_0 = arith.constant 0 : i32
    %c0_i32_1 = arith.constant 0 : i32
    return %c0_i32, %c0_i32_0 : i32, i32
  }
  func.func @transform_5(%arg0: i32) -> (i32, i32) {
    %c0_i32 = arith.constant 0 : i32
    %c0_i32_0 = arith.constant 0 : i32
    %c0_i32_1 = arith.constant 0 : i32
    return %c0_i32, %c0_i32_0 : i32, i32
  }
  func.func @transform_6(%arg0: i32) -> (i32, i32) {
    %c0_i32 = arith.constant 0 : i32
    %c0_i32_0 = arith.constant 0 : i32
    %c0_i32_1 = arith.constant 0 : i32
    return %c0_i32, %c0_i32_0 : i32, i32
  }
  func.func @transform_7(%arg0: i32) -> (i32, i32) {
    %c0_i32 = arith.constant 0 : i32
    %c0_i32_0 = arith.constant 0 : i32
    %c0_i32_1 = arith.constant 0 : i32
    return %c0_i32, %c0_i32_0 : i32, i32
  }
  func.func @transform_8(%arg0: i32) -> (i32, i32, i32) {
    %c0_i32 = arith.constant 0 : i32
    %c0_i32_0 = arith.constant 0 : i32
    %c0_i32_1 = arith.constant 0 : i32
    return %arg0, %c0_i32, %c0_i32_0 : i32, i32, i32
  }
}

</mosaic_0001>

<bundles_post_ra>
// kernel: tpu_custom_call.1
= control target key start
LH: loop header
LB: loop body
LE: loop exit
PB: predicated region body
PF: predicated region fallthrough
CT: control target
= control target key end

     0   :  { %s9307_s0 = inlined_call_operand.vmem [shape: f32[4,64,8], index: 0, kind: input, shape index: {}]   ;;  %s9308_s1 = inlined_call_operand.vmem [shape: f32[4,2,128], index: 1, kind: input, shape index: {}]   ;;  %s9309_s2 = inlined_call_operand.hbm [shape: f32[24,128], index: 2, kind: input, shape index: {}]   ;;  %s9310_s3 = inlined_call_operand.vmem [shape: f32[384,128], index: 3, kind: input, shape index: {}]   ;;  %s9311_s4 = inlined_call_operand.hbm [shape: f32[8,128], index: 4, kind: input, shape index: {}]   ;;  %s9312_s5 = inlined_call_operand.hbm [shape: f32[7,128], index: 5, kind: input, shape index: {}]   ;;  %s9313_s6 = inlined_call_operand.hbm [shape: f32[8,128], index: 6, kind: input, shape index: {}]   ;;  %s9314_s7 = inlined_call_operand.vmem [shape: f32[128,8], index: 7, kind: input, shape index: {}]   ;;  %s9315_s8 = inlined_call_operand.hbm [shape: f32[4,64,128], index: 8, kind: output, shape index: {}]  }
   0x1   :  { %9506 = sst [smem:[#allocation133_spill]] %s9309_s2 }
   0x2   :  { %9507 = sst [smem:[#allocation134_spill]] %s9311_s4 }
   0x3   :  { %13 = vsyncpa [#allocation3], 0 }
   0x4   :  { %14 = vsyncpa [#allocation6], 0 }
   0x5   :  { %15 = vsyncpa [#allocation9], 0 }
   0x6   :  { %16 = vsyncpa [#allocation4], 0 }
   0x7   :  { %18 = vsyncpa [#allocation4 + $0x1], 0  ;;  %s6213_s27 = smov 0   ;;  %s6215_s28 = smov 0  }
   0x8   :  { %s6217_s29 = smov 0   ;;  %s6219_s30 = smov 0  }
   0x9 LB: > { %s6234_s9 = sadd.s32 4294967295, %s6156_s30   ;;  %s5774_s10 = sadd.s32 4294967294, %s6156_s30   ;;  %s6156_s30 = sphi %s6219_s30, %s9918_s30   ;;  %s6152_s29 = sphi %s6217_s29, %s9917_s29   ;;  %s6148_s28 = sphi %s6215_s28, %s9916_s28   ;;  %s6144_s27 = sphi %s6213_s27, %s9915_s27  }
   0xa   : > { %s6238_s11 = sadd.s32 1, %s6156_s30   ;;  %s209_s12 = sadd.s32 1, %s6152_s29 }
   0xb   : > { %s206_s13 = ssub.s32 %s6156_s30, %s6238_s11  ;;  %p219_p0 = scmp.ne.s32.totalorder %s6152_s29, %s6148_s28 }
   0xc   : > { %p207_p1 = scmp.eq.s32.totalorder %s206_s13, 0  ;;  %p220_p2 = scmp.eq.s32.totalorder %s6234_s9, 3 }
   0xd   : > { %p225_p3 = scmp.ne.s32.totalorder %s6148_s28, %s6144_s27  ;;  %p226_p4 = scmp.eq.s32.totalorder %s5774_s10, 3 }
   0xe   : > { %s6249_s14 = scalar_select %p207_p1, %s6152_s29, %s209_s12  }
   0xf   : > { %p6251_p5 = por %p220_p2, %p219_p0  ;;  %p6255_p6 = por %p226_p4, %p225_p3 }
  0x10   : > { %9508 = sst [smem:[#allocation15_spill]] %s6249_s14  ;;  %p5775_p7 = scmp.ge.s32.totalorder %s6156_s30, 1 }
  0x11   : > { %p233_p8 = scmp.lt.s32.totalorder %s6156_s30, 5  ;;  %p5834_p9 = scmp.eq.s32.totalorder %s6234_s9, 0 }
  0x12   : > { %s9512_s4 = sld [smem:[#allocation134_spill]]  ;;  %s6158_s21 = smov [#allocation5]  }
  0x13   : > { %p6262_p10 = pnand %p5775_p7, %p233_p8  ;;  %s264_s22 = sshll.u32 %s6158_s21, 4  ;;  %s265_s22 = int_to_ptr.vmem [resolvable:$true] %s264_s22 }
  0x14   : > { %s9513_s2 = sld [smem:[#allocation133_spill]]  ;;  %s6159_s10 = smov [#allocation2]  }
  0x15   : > { %p5817_p11 = pneg %p6262_p10  ;;  %s246_s12 = sshll.u32 %s6159_s10, 4  ;;  %s247_s12 = int_to_ptr.vmem [resolvable:$true] %s246_s12 }
  0x16   : > { %s6160_s13 = smov 128   ;;  %s6161_s18 = smov 8  }
  0x17   : > { %p6276_p12 = pnand %p5834_p9, %p5817_p11  ;;  %s274_s23 = sshll.u32 %s9312_s5, 4  ;;  %s275_s23 = int_to_ptr.hbm [resolvable:$true] %s274_s23 }
  0x18   : > { %s262_s20 = sshll.u32 %s9512_s4, 4  ;;  %s6162_s24 = smov [#allocation7]   ;;  %s263_s20 = int_to_ptr.hbm [resolvable:$true] %s262_s20 }
  0x19   : > { %5823 = dma.hbm_to_vmem [thread:$0]  (!%p6276_p12), %s263_s20, 128, %s265_s22, [#allocation6]  }
  0x1a   : > { %s244_s25 = sshll.u32 %s9513_s2, 4  ;;  %s276_s2 = sshll.u32 %s6162_s24, 4  ;;  %s245_s25 = int_to_ptr.hbm [resolvable:$true] %s244_s25  ;;  %s277_s2 = int_to_ptr.vmem [resolvable:$true] %s276_s2 }
  0x1b   : > { %5820 = dma.hbm_to_vmem [thread:$0]  (!%p6276_p12), %s245_s25, 384, %s247_s12, [#allocation3], %s6160_s13, %s6160_s13, %s6161_s18  }
  0x1c   : > { %s286_s10 = sshll.u32 %s9313_s6, 4  ;;  %s6163_s20 = smov [#allocation8]   ;;  %s287_s10 = int_to_ptr.hbm [resolvable:$true] %s286_s10 }
  0x1d   : > { %5826 = dma.hbm_to_vmem [thread:$0]  (!%p6276_p12), %s275_s23, 128, %s277_s2, [#allocation6]  }
  0x1e   : > { %s288_s22 = sshll.u32 %s6163_s20, 4  ;;  %319 = sbr.rel (%p6262_p10) target bundleno = 2391 (0x957), region = 52  ;;  %s289_s22 = int_to_ptr.vmem [resolvable:$true] %s288_s22 }
  0x1f   : > { %5829 = dma.hbm_to_vmem [thread:$0]  (!%p6276_p12), %s287_s10, 128, %s289_s22, [#allocation9]  }
  0x23   : > { %6127 = dma.done.wait (%p5834_p9), [#allocation3], 384  }
  0x24   : > { %6129 = vsyncadd (%p5834_p9), [#allocation3], 4294966912 }
  0x25   : > { %6131 = dma.done.wait (%p5834_p9), [#allocation6], 256  }
  0x26   : > { %6133 = vsyncadd (%p5834_p9), [#allocation6], 4294967040 }
  0x27   : > { %6135 = dma.done.wait (%p5834_p9), [#allocation9], 128  }
  0x28   : > { %6137 = vsyncadd (%p5834_p9), [#allocation9], 4294967168  ;;  %p373_p13 = scmp.lt.s32.totalorder %s6234_s9, 3  ;;  %v390_v0 = vlaneseq  ;;  %s6164_s19 = smov 8   ;;  %v6166_v16 = vmov 0.0   ;;  %v629_v33 = vld [vmem:[#allocation2 + $0x10] sm:$0xff] }
  0x29   : > { %s6165_s21 = smov 16   ;;  %v670_v34 = vand.u32 4294901760, %v629_v33  ;;  %v628_v35 = vld [vmem:[#allocation2 + $0x8] sm:$0xff]  ;;  %v627_v38 = vld [vmem:[#allocation2] sm:$0xff]  ;;  %vm609_vm4 = vcmask 64512   ;;  %vm618_vm5 = vcmask 130048  }
  0x2a   : > { %s374_s2 = scalar_select %p373_p13, %s6234_s9, 3  ;;  %v6320_v1 = vshrl.u32 %v390_v0, 7  ;;  %v672_v37 = vand.u32 4294901760, %v628_v35  ;;  %v674_v41 = vand.u32 4294901760, %v627_v38  ;;  %vm632_vm6 = vcmask 195584  }
  0x2b   : > { %v755_v36 = vsub.f32 %v629_v33, %v670_v34  ;;  %882 = vmatpush.msra.mxu3 %v670_v34  ;;  %671 = vmatpush.msra.mxu0 %v670_v34  ;;  %s370_s12 = sand.u32 1, %s6148_s28   ;;  %s6102_s25 = scalar_lea.hbm %s9315_s8, 256 }
  0x2c   : > { %s5797_s4 = sshll.u32 %s374_s2, 6  ;;  %s5789_s14 = sshll.u32 %s374_s2, 1  ;;  %9515 = vst [vmem:[#allocation16_spill] sm:$0xff] %v6320_v1  ;;  %vm528_vm0 = vcmp.lt.s32.totalorder %v6320_v1, 7  ;;  %v399_v13 = vadd.s32 4294967295, %v6320_v1  ;;  %v398_v25 = vadd.s32 56, %v6320_v1  ;;  %v761_v40 = vsub.f32 %v628_v35, %v672_v37 }
  0x2d   : > { %s6313_s26 = scalar_lea.vmem %s9307_s0, %s5797_s4  ;;  %s6318_s18 = scalar_lea.vmem %s9308_s1, %s5789_s14  ;;  %v756_v39 = vand.u32 4294901760, %v755_v36  ;;  %820 = vmatpush.msra.mxu2 %v755_v36  ;;  %884 = vmatpush.msra.mxu3 %v672_v37  ;;  %v767_v44 = vsub.f32 %v627_v38, %v674_v41  ;;  %vm503_vm3 = vcmp.lt.s32.totalorder %v6320_v1, 1 }
  0x2e   : > { %v6323_v2 = vld [vmem:[%s6313_s26 + $0x8] sm:$0xff]  ;;  %v6328_v3 = vld [vmem:[%s6313_s26] sm:$0xff]  ;;  %v6333_v4 = vld [vmem:[%s6313_s26 + $0x10] sm:$0xff]  ;;  %vm407_vm1 = vcmp.ge.s32.totalorder %v399_v13, 0  ;;  %v454_v28 = vadd.s32 1, %v398_v25  ;;  %673 = vmatpush.msra.mxu0 %v672_v37  ;;  %v762_v43 = vand.u32 4294901760, %v761_v40 }
  0x2f   : > { %555 = vrot.lane.b32.xlu1 %v6323_v2, %s6164_s19  ;;  %553 = vrot.lane.b32.xlu0 %v6328_v3, %s6164_s19  ;;  %v521_v5 = vrot.slane %v6323_v2, 1  ;;  %v522_v6 = vrot.slane %v6333_v4, 1  ;;  %v520_v7 = vrot.slane %v6328_v3, 1  ;;  %v6340_v8 = vld [vmem:[%s6313_s26 + $0x18] sm:$0xff]  ;;  %v6350_v12 = vld [vmem:[%s6313_s26 + $0x20] sm:$0xff]  ;;  %v6358_v17 = vsel %vm407_vm1, 1.0, %v6166_v16 }
  0x30   : > { %557 = vrot.lane.b32.xlu2 %v6333_v4, %s6164_s19  ;;  %v523_v10 = vrot.slane %v6340_v8, 1  ;;  %v524_v15 = vrot.slane %v6350_v12, 1  ;;  %9516 = vst [vmem:[#allocation17_spill] sm:$0xff] %v6358_v17  ;;  %v6364_v19 = vld [vmem:[%s6313_s26 + $0x28] sm:$0xff]  ;;  %v6371_v21 = vld [vmem:[%s6313_s26 + $0x30] sm:$0xff]  ;;  %v6379_v24 = vld [vmem:[%s6313_s26 + $0x38] sm:$0xff]  ;;  %v757_v42 = vsub.f32 %v755_v36, %v756_v39  ;;  %823 = vmatpush.msra.mxu2 %v761_v40  ;;  %v763_v46 = vsub.f32 %v761_v40, %v762_v43 }
  0x31   : > { %v534_v9 = vsel %vm528_vm0, %v521_v5, %v522_v6  ;;  %v535_v11 = vsel %vm528_vm0, %v520_v7, %v521_v5  ;;  %v525_v20 = vrot.slane %v6364_v19, 1  ;;  %v526_v22 = vrot.slane %v6371_v21, 1  ;;  %886 = vmatpush.msra.mxu3 %v674_v41  ;;  %675 = vmatpush.msra.mxu0 %v674_v41  ;;  %s9225_s13 = sshll.u32 %s370_s12, 6  ;;  %s5644_s2 = scalar_lea.sflag [#allocation4], %s370_s12 }
  0x32   : > { %v533_v14 = vsel %vm528_vm0, %v522_v6, %v523_v10  ;;  %v532_v18 = vsel %vm528_vm0, %v523_v10, %v524_v15  ;;  %v527_v27 = vrot.slane %v6379_v24, 1  ;;  %vm470_vm2 = vcmp.lt.s32.totalorder %v454_v28, 64  ;;  %826 = vmatpush.msra.mxu2 %v767_v44  ;;  %s372_s10 = scalar_lea.vmem [#allocation10], %s9225_s13 }
  0x33   : > { %v531_v23 = vsel %vm528_vm0, %v524_v15, %v525_v20  ;;  %v530_v26 = vsel %vm528_vm0, %v525_v20, %v526_v22  ;;  %v6394_v30 = vsel %vm470_vm2, 1.0, %v6166_v16  ;;  %v758_v45 = vand.u32 4294901760, %v757_v42  ;;  %952 = vmatpush.msrb.mxu0 %v756_v39  ;;  %s5656_s20 = sshll.u32 %s372_s10, 4  ;;  %s5657_s20 = int_to_ptr.vmem [resolvable:$true] %s5656_s20 }
  0x34   : > { %v529_v29 = vsel %vm528_vm0, %v526_v22, %v527_v27  ;;  %9517 = vst [vmem:[#allocation18_spill] sm:$0xff] %v6394_v30  ;;  %v536_v31 = vsel %vm528_vm0, %v527_v27, %v520_v7  ;;  %v768_v47 = vand.u32 4294901760, %v767_v44  ;;  %v764_v48 = vand.u32 4294901760, %v763_v46 }
  0x35   : > { %v544_v32 = vmul.f32 %v6394_v30, %v536_v31  ;;  %759 = vmatpush.msra.mxu1 %v758_v45  ;;  %956 = vmatpush.msrb.mxu0 %v762_v43  ;;  %v495_v51 = vrot.slane %v6328_v3, 7  ;;  %v502_v52 = vrot.slane %v6379_v24, 7  ;;  %v496_v53 = vrot.slane %v6323_v2, 7 }
  0x36   : > { %v769_v49 = vsub.f32 %v767_v44, %v768_v47  ;;  %v497_v59 = vrot.slane %v6333_v4, 7  ;;  %v499_v35 = vrot.slane %v6350_v12, 7 }
  0x37   : > { %587 = vrot.lane.b32.xlu1 %v534_v9, %s6165_s21  ;;  %585 = vrot.lane.b32.xlu0 %v535_v11, %s6165_s21  ;;  %v511_v57 = vsel %vm503_vm3, %v502_v52, %v495_v51  ;;  %v510_v58 = vsel %vm503_vm3, %v495_v51, %v496_v53 }
  0x38   : > { %589 = vrot.lane.b32.xlu2 %v533_v14, %s6165_s21  ;;  %765 = vmatpush.msra.mxu1 %v764_v48  ;;  %v770_v50 = vand.u32 4294901760, %v769_v49  ;;  %v512_v60 = vmul.f32 %v6358_v17, %v511_v57  ;;  %v509_v62 = vsel %vm503_vm3, %v496_v53, %v497_v59  ;;  %v498_v14 = vrot.slane %v6340_v8, 7 }
  0x39   : > { %960 = vmatpush.msrb.mxu0 %v768_v47  ;;  %v500_v47 = vrot.slane %v6364_v19, 7  ;;  %v501_v57 = vrot.slane %v6371_v21, 7 }
  0x3a   : > { %771 = vmatpush.msra.mxu1 %v770_v50  ;;  %v508_v25 = vsel %vm503_vm3, %v497_v59, %v498_v14  ;;  %v507_v39 = vsel %vm503_vm3, %v498_v14, %v499_v35 }
  0x3b   : > { %v506_v51 = vsel %vm503_vm3, %v499_v35, %v500_v47 }
  0x3c   : > { %1008 = vmatpush.msrb.mxu1 %v670_v34 }
  0x3e   : > { %1010 = vmatpush.msrb.mxu1 %v672_v37 }
  0x3f   : > { %591 = vrot.lane.b32.xlu1 %v532_v18, %s6165_s21  ;;  %559 = vrot.lane.b32.xlu0 %v6340_v8, %s6164_s19 }
  0x40   : > { %561 = vrot.lane.b32.xlu2 %v6350_v12, %s6164_s19  ;;  %1012 = vmatpush.msrb.mxu1 %v674_v41 }
  0x47   : > { %563 = vrot.lane.b32.xlu1 %v6364_v19, %s6164_s19  ;;  %593 = vrot.lane.b32.xlu0 %v531_v23, %s6165_s21 }
  0x48   : > { %595 = vrot.lane.b32.xlu2 %v530_v26, %s6165_s21 }
  0x4f   : > { %597 = vrot.lane.b32.xlu1 %v529_v29, %s6165_s21  ;;  %565 = vrot.lane.b32.xlu0 %v6371_v21, %s6164_s19 }
  0x50   : > { %567 = vrot.lane.b32.xlu2 %v6379_v24, %s6164_s19 }
  0x57   : > { %599 = vrot.lane.b32.xlu0 %v544_v32, %s6165_s21  ;;  %s5798_s21 = sshll.u32 %s6234_s9, 6 }
  0x58   : > { %s5655_s24 = scalar_lea.hbm %s9315_s8, %s5798_s21 }
  0x59   : > { %s5658_s22 = sshll.u32 %s5655_s24, 4  ;;  %s5659_s22 = int_to_ptr.hbm [resolvable:$true] %s5658_s22 }
  0x5a   : > { %s6096_s4 = sshra.s32 %s5659_s22, 4  ;;  %s6097_s4 = int_to_ptr.hbm [resolvable:$true] %s6096_s4 }
  0x5b   : > { %s6098_s14 = scalar_lea.hbm %s6097_s4, 64  ;;  %p6103_p3 = scmp.lt.s32.totalorder %s6097_s4, %s9315_s8 }
  0x5c   : > { %p6099_p0 = scmp.ne.s32.totalorder %s6097_s4, %s6098_s14  ;;  %p6104_p4 = scmp.lt.s32.totalorder %s6102_s25, %s6098_s14 }
  0x5e   : > { %p6100_p1 = pnand %p6099_p0, %p6251_p5  ;;  %p6105_p7 = por %p6104_p4, %p6103_p3 }
  0x60   : > { %p6101_p2 = pneg %p6100_p1 }
  0x62   : > { %p6106_p8 = pnand %p6105_p7, %p6101_p2 }
  0x8a   : > { %v558_v56 = vpop.permute.xlu2 %557 }
  0x8b   : > { %v612_v10 = vsel %vm609_vm4, %v509_v62, %v558_v56 }
  0x92   : > { %v590_v13 = vpop.permute.xlu2 %589 }
  0x93   : > { %v621_v20 = vsel %vm618_vm5, %v612_v10, %v590_v13 }
  0x94   : > { %v640_v26 = vsel %vm632_vm6, %v621_v20, 0 }
  0x95   : > { %v6436_v32 = vand.u32 4294901760, %v640_v26 }
  0x97   : > { %v693_v37 = vsub.f32 %v640_v26, %v6436_v32 }
  0x99   : > { %v694_v46 = vand.u32 4294901760, %v693_v37 }
  0x9a   : > { %v562_v40 = vpop.permute.xlu2 %561 }
  0x9b   : > { %v614_v42 = vsel %vm609_vm4, %v507_v39, %v562_v40  ;;  %v695_v50 = vsub.f32 %v693_v37, %v694_v46  ;;  %v1049_v39 = vsel %vm609_vm4, %v6328_v3, 0 }
  0x9c   : > { %v6488_v40 = vand.u32 4294901760, %v1049_v39 }
  0x9d   : > { %v696_v59 = vand.u32 4294901760, %v695_v50 }
  0xa1   : > { %v556_v54 = vpop.permute.xlu1 %555  ;;  %v554_v55 = vpop.permute.xlu0 %553 }
  0xa2   : > { %v611_v61 = vsel %vm609_vm4, %v510_v58, %v556_v54  ;;  %v610_v0 = vsel %vm609_vm4, %v512_v60, %v554_v55  ;;  %v596_v56 = vpop.permute.xlu2 %595 }
  0xa9   : > { %v588_v63 = vpop.permute.xlu1 %587  ;;  %v586_v6 = vpop.permute.xlu0 %585 }
  0xaa   : > { %v620_v5 = vsel %vm618_vm5, %v611_v61, %v588_v63  ;;  %v619_v9 = vsel %vm618_vm5, %v610_v0, %v586_v6  ;;  %v505_v0 = vsel %vm503_vm3, %v500_v47, %v501_v57  ;;  %v1046_v47 = vld [vmem:[#allocation5] sm:$0xff] }
  0xab   : > { %v637_v7 = vsel %vm632_vm6, %v620_v5, 0  ;;  %v634_v11 = vsel %vm632_vm6, %v619_v9, 0 }
  0xac   : > { %v6424_v15 = vand.u32 4294901760, %v637_v7  ;;  %v6426_v16 = vand.u32 4294901760, %v634_v11 }
  0xae   : > { %v677_v18 = vsub.f32 %v634_v11, %v6426_v16  ;;  %773 = vmatmul.f32.vlgmr.msra.gmra.mxu1 %v6426_v16  ;;  %v685_v22 = vsub.f32 %v637_v7, %v6424_v15 }
  0xb0   : > { %829 = vmatmul.f32.vlgmr.msra.gmra.mxu2 %v677_v18  ;;  %v678_v23 = vand.u32 4294901760, %v677_v18  ;;  %v686_v34 = vand.u32 4294901760, %v685_v22 }
  0xb1   : > { %v560_v27 = vpop.permute.xlu0 %559  ;;  %v592_v31 = vpop.permute.xlu1 %591 }
  0xb2   : > { %890 = vmatmul.f32.vlgmr.msra.gmra.mxu3 %v678_v23  ;;  %v679_v28 = vsub.f32 %v677_v18, %v678_v23  ;;  %v613_v29 = vsel %vm609_vm4, %v508_v25, %v560_v27  ;;  %v687_v38 = vsub.f32 %v685_v22, %v686_v34  ;;  %v568_v23 = vpop.permute.xlu2 %567 }
  0xb3   : > { %v622_v36 = vsel %vm618_vm5, %v613_v29, %v592_v31 }
  0xb4   : > { %v680_v33 = vand.u32 4294901760, %v679_v28  ;;  %v643_v41 = vsel %vm632_vm6, %v622_v36, 0  ;;  %v688_v45 = vand.u32 4294901760, %v687_v38 }
  0xb5   : > { %v6446_v44 = vand.u32 4294901760, %v643_v41 }
  0xb6   : > { %681 = vmatmul.f32.vlgmr.msra.gmra.mxu0 %v680_v33  ;;  %777 = vmatmul.f32.gmra.mxu1 %v6424_v15 }
  0xb7   : > { %v701_v49 = vsub.f32 %v643_v41, %v6446_v44 }
  0xb8   : > { %834 = vmatmul.f32.gmra.mxu2 %v685_v22  ;;  %v504_v22 = vsel %vm503_vm3, %v501_v57, %v502_v52 }
  0xb9   : > { %v594_v43 = vpop.permute.xlu0 %593  ;;  %v564_v53 = vpop.permute.xlu1 %563  ;;  %v702_v60 = vand.u32 4294901760, %v701_v49  ;;  %v617_v26 = vsel %vm609_vm4, %v504_v22, %v568_v23 }
  0xba   : > { %896 = vmatmul.f32.gmra.mxu3 %v686_v34  ;;  %v623_v48 = vsel %vm618_vm5, %v614_v42, %v594_v43  ;;  %v615_v55 = vsel %vm609_vm4, %v506_v51, %v564_v53  ;;  %v6492_v43 = vsub.f32 %v1049_v39, %v6488_v40 }
  0xbb   : > { %v646_v54 = vsel %vm632_vm6, %v623_v48, 0  ;;  %v624_v61 = vsel %vm618_vm5, %v615_v55, %v596_v56  ;;  %v703_v63 = vsub.f32 %v701_v49, %v702_v60  ;;  %v1080_v48 = vand.u32 4294901760, %v1046_v47 }
  0xbc   : > { %v6457_v58 = vand.u32 4294901760, %v646_v54  ;;  %v649_v6 = vsel %vm632_vm6, %v624_v61, 0  ;;  %v1084_v50 = vand.u32 4294901760, %v6492_v43  ;;  %v1051_v55 = vsel %vm609_vm4, %v6323_v2, 0 }
  0xbd   : > { %v6466_v10 = vand.u32 4294901760, %v649_v6  ;;  %v704_v11 = vand.u32 4294901760, %v703_v63  ;;  %1081 = vmatpush.msrb.mxu2 %v1080_v48  ;;  %v1163_v3 = vsub.f32 %v1046_v47, %v1080_v48  ;;  %1276 = vmatpush.msra.mxu1 %v1080_v48  ;;  %v1053_v63 = vsel %vm609_vm4, %v6333_v4, 0 }
  0xbe   : > { %689 = vmatmul.f32.gmra.mxu0 %v688_v45  ;;  %781 = vmatmul.f32.gmra.mxu1 %v6436_v32  ;;  %v709_v62 = vsub.f32 %v646_v54, %v6457_v58  ;;  %v1085_v53 = vsub.f32 %v6492_v43, %v1084_v50  ;;  %v1055_v4 = vsel %vm609_vm4, %v6340_v8, 0  ;;  %v1057_v8 = vsel %vm609_vm4, %v6350_v12, 0 }
  0xbf   : > { %v717_v18 = vsub.f32 %v649_v6, %v6466_v10  ;;  %v1164_v51 = vand.u32 4294901760, %v1163_v3  ;;  %1218 = vmatpush.msra.mxu0 %v1163_v3  ;;  %v6542_v22 = vand.u32 4294901760, %v1057_v8 }
  0xc0   : > { %839 = vmatmul.f32.gmra.mxu2 %v693_v37  ;;  %v710_v13 = vand.u32 4294901760, %v709_v62  ;;  %v1086_v57 = vand.u32 4294901760, %v1085_v53 }
  0xc1   : > { %v566_v5 = vpop.permute.xlu0 %565  ;;  %v598_v9 = vpop.permute.xlu1 %597  ;;  %v718_v31 = vand.u32 4294901760, %v717_v18  ;;  %v1165_v54 = vsub.f32 %v1163_v3, %v1164_v51  ;;  %1344 = vmatpush.msra.mxu2 %v1164_v51 }
  0xc2   : > { %902 = vmatmul.f32.gmra.mxu3 %v694_v46  ;;  %v616_v7 = vsel %vm609_vm4, %v505_v0, %v566_v5  ;;  %v711_v20 = vsub.f32 %v709_v62, %v710_v13  ;;  %v6514_v5 = vand.u32 4294901760, %v1053_v63 }
  0xc3   : > { %v625_v14 = vsel %vm618_vm5, %v616_v7, %v598_v9  ;;  %v719_v52 = vsub.f32 %v717_v18, %v718_v31 }
  0xc4   : > { %v652_v25 = vsel %vm632_vm6, %v625_v14, 0  ;;  %v712_v29 = vand.u32 4294901760, %v711_v20  ;;  %v6519_v6 = vsub.f32 %v1053_v63, %v6514_v5 }
  0xc5   : > { %v6477_v28 = vand.u32 4294901760, %v652_v25  ;;  %v720_v37 = vand.u32 4294901760, %v719_v52 }
  0xc6   : > { %697 = vmatmul.f32.gmra.mxu0 %v696_v59  ;;  %785 = vmatmul.f32.gmra.mxu1 %v6446_v44  ;;  %v6501_v59 = vand.u32 4294901760, %v1051_v55  ;;  %v1100_v7 = vand.u32 4294901760, %v6519_v6 }
  0xc7   : > { %v725_v34 = vsub.f32 %v652_v25, %v6477_v28 }
  0xc8   : > { %844 = vmatmul.f32.gmra.mxu2 %v701_v49  ;;  %v6505_v61 = vsub.f32 %v1051_v55, %v6501_v59  ;;  %v1101_v9 = vsub.f32 %v6519_v6, %v1100_v7 }
  0xc9   : > { %v600_v27 = vpop.permute.xlu0 %599  ;;  %v726_v38 = vand.u32 4294901760, %v725_v34 }
  0xca   : > { %908 = vmatmul.f32.gmra.mxu3 %v702_v60  ;;  %v626_v33 = vsel %vm618_vm5, %v617_v26, %v600_v27  ;;  %v1166_v60 = vand.u32 4294901760, %v1165_v54  ;;  %v1059_v26 = vsel %vm609_vm4, %v6364_v19, 0  ;;  %v1452_v54 = vld [vmem:[%s9314_s7 + $0x78] sm:$0xff] }
  0xcb   : > { %v655_v35 = vsel %vm632_vm6, %v626_v33, 0  ;;  %v727_v42 = vsub.f32 %v725_v34, %v726_v38  ;;  %v6556_v27 = vand.u32 4294901760, %v1059_v26  ;;  %v1061_v33 = vsel %vm609_vm4, %v6371_v21, 0 }
  0xcc   : > { %v6483_v36 = vand.u32 4294901760, %v655_v35  ;;  %1167 = vmatpush.msrb.mxu3 %v1166_v60  ;;  %v1063_v21 = vsel %vm609_vm4, %v6379_v24, 0  ;;  %v6658_v55 = vand.u32 4294901760, %v1452_v54 }
  0xcd   : > { %v728_v45 = vand.u32 4294901760, %v727_v42 }
  0xce   : > { %705 = vmatmul.f32.gmra.mxu0 %v704_v11  ;;  %789 = vmatmul.f32.gmra.mxu1 %v6457_v58  ;;  %v733_v41 = vsub.f32 %v655_v35, %v6483_v36  ;;  %v1102_v11 = vand.u32 4294901760, %v1101_v9  ;;  %v6669_v60 = vsub.f32 %v1452_v54, %v6658_v55 }
  0xcf   : > { %1394 = vmatpush.msra.mxu3 %v1080_v48 }
  0xd0   : > { %849 = vmatmul.f32.gmra.mxu2 %v709_v62  ;;  %v734_v46 = vand.u32 4294901760, %v733_v41  ;;  %v1092_v62 = vand.u32 4294901760, %v6505_v61  ;;  %9519 = vst [vmem:[#allocation20_spill] sm:$0xff] %v6669_v60  ;;  %v6682_v63 = vand.u32 4294901760, %v6669_v60 }
  0xd2   : > { %914 = vmatmul.f32.gmra.mxu3 %v710_v13  ;;  %v735_v49 = vsub.f32 %v733_v41, %v734_v46  ;;  %v1093_v2 = vsub.f32 %v6505_v61, %v1092_v62  ;;  %v6528_v13 = vand.u32 4294901760, %v1055_v4  ;;  %9520 = vst [vmem:[#allocation21_spill] sm:$0xff] %v6682_v63 }
  0xd4   : > { %v736_v56 = vand.u32 4294901760, %v735_v49  ;;  %v1094_v0 = vand.u32 4294901760, %v1093_v2 }
  0xd6   : > { %713 = vmatmul.f32.gmra.mxu0 %v712_v29  ;;  %793 = vmatmul.f32.gmra.mxu1 %v6466_v10 }
  0xd8   : > { %854 = vmatmul.f32.gmra.mxu2 %v717_v18 }
  0xda   : > { %920 = vmatmul.f32.gmra.mxu3 %v718_v31 }
  0xde   : > { %721 = vmatmul.f32.gmra.mxu0 %v720_v37  ;;  %797 = vmatmul.f32.gmra.mxu1 %v6477_v28 }
  0xe0   : > { %859 = vmatmul.f32.gmra.mxu2 %v725_v34  ;;  %v6568_v34 = vand.u32 4294901760, %v1061_v33 }
  0xe2   : > { %926 = vmatmul.f32.gmra.mxu3 %v726_v38  ;;  %v6580_v38 = vand.u32 4294901760, %v1063_v21 }
  0xe6   : > { %729 = vmatmul.f32.gmra.mxu0 %v728_v45  ;;  %801 = vmatmul.f32.gmra.mxu1 %v6483_v36 }
  0xe8   : > { %864 = vmatmul.f32.gmra.mxu2 %v733_v41 }
  0xea   : > { %932 = vmatmul.f32.gmra.mxu3 %v734_v46 }
  0xee   : > { %737 = vmatmul.f32.gmra.mxu0 %v736_v56  ;;  %1014 = vmatmul.f32.vlgmr.msrb.gmra.mxu1 %v6426_v16  ;;  %v1451_v56 = vld [vmem:[%s9314_s7 + $0x70] sm:$0xff] }
  0xf0   : > { %1087 = vmatmul.f32.vlgmr.msrb.gmra.mxu2 %v1086_v57 }
  0xf1   : > { %1610 = vmatpush.msrb.mxu2 %v6669_v60 }
  0xf2   : > { %1169 = vmatmul.f32.vlgmr.msrb.gmra.mxu3 %v6488_v40 }
  0xf3   : > { %1663 = vmatpush.msrb.mxu3 %v6658_v55 }
  0xf6   : > { %962 = vmatmul.f32.vlgmr.msrb.gmra.mxu0 %v6426_v16  ;;  %1018 = vmatmul.f32.gmra.mxu1 %v6424_v15  ;;  %v6533_v16 = vsub.f32 %v1055_v4, %v6528_v13 }
  0xf7   : > { %1467 = vmatpush.msrb.mxu0 %v6658_v55 }
  0xf8   : > { %1095 = vmatmul.f32.gmra.mxu2 %v1094_v0  ;;  %v1108_v14 = vand.u32 4294901760, %v6533_v16 }
  0xfa   : > { %1173 = vmatmul.f32.gmra.mxu3 %v6501_v59  ;;  %v1109_v18 = vsub.f32 %v6533_v16, %v1108_v14 }
  0xfc   : > { %v1110_v20 = vand.u32 4294901760, %v1109_v18 }
  0xfe   : > { %966 = vmatmul.f32.gmra.mxu0 %v6424_v15  ;;  %1022 = vmatmul.f32.gmra.mxu1 %v6436_v32  ;;  %v6547_v15 = vsub.f32 %v1057_v8, %v6542_v22 }
 0x100   : > { %1103 = vmatmul.f32.gmra.mxu2 %v1102_v11  ;;  %v1116_v23 = vand.u32 4294901760, %v6547_v15 }
 0x102   : > { %1177 = vmatmul.f32.gmra.mxu3 %v6514_v5  ;;  %v1117_v25 = vsub.f32 %v6547_v15, %v1116_v23 }
 0x104   : > { %v1118_v12 = vand.u32 4294901760, %v1117_v25 }
 0x106   : > { %970 = vmatmul.f32.gmra.mxu0 %v6436_v32  ;;  %1026 = vmatmul.f32.gmra.mxu1 %v6446_v44  ;;  %v6561_v32 = vsub.f32 %v1059_v26, %v6556_v27 }
 0x108   : > { %1111 = vmatmul.f32.gmra.mxu2 %v1110_v20  ;;  %v1124_v29 = vand.u32 4294901760, %v6561_v32 }
 0x10a   : > { %1181 = vmatmul.f32.gmra.mxu3 %v6528_v13  ;;  %v1125_v31 = vsub.f32 %v6561_v32, %v1124_v29 }
 0x10c   : > { %v1126_v19 = vand.u32 4294901760, %v1125_v31  ;;  %v1446_v31 = vld [vmem:[%s9314_s7 + $0x48] sm:$0xff] }
 0x10e   : > { %974 = vmatmul.f32.gmra.mxu0 %v6446_v44  ;;  %1030 = vmatmul.f32.gmra.mxu1 %v6457_v58  ;;  %v6573_v44 = vsub.f32 %v1061_v33, %v6568_v34 }
 0x110   : > { %1119 = vmatmul.f32.gmra.mxu2 %v1118_v12  ;;  %v1132_v52 = vand.u32 4294901760, %v6573_v44 }
 0x112   : > { %1185 = vmatmul.f32.gmra.mxu3 %v6542_v22  ;;  %v1133_v35 = vsub.f32 %v6573_v44, %v1132_v52 }
 0x114   : > { %v1134_v37 = vand.u32 4294901760, %v1133_v35  ;;  %v1445_v35 = vld [vmem:[%s9314_s7 + $0x40] sm:$0xff] }
 0x116   : > { %978 = vmatmul.f32.gmra.mxu0 %v6457_v58  ;;  %1034 = vmatmul.f32.gmra.mxu1 %v6466_v10  ;;  %v6585_v58 = vsub.f32 %v1063_v21, %v6580_v38 }
 0x118   : > { %1127 = vmatmul.f32.gmra.mxu2 %v1126_v19  ;;  %v1140_v39 = vand.u32 4294901760, %v6585_v58 }
 0x11a   : > { %1189 = vmatmul.f32.gmra.mxu3 %v6556_v27  ;;  %v1141_v41 = vsub.f32 %v6585_v58, %v1140_v39 }
 0x11c   : > { %v1142_v24 = vand.u32 4294901760, %v1141_v41 }
 0x11e   : > { %982 = vmatmul.f32.gmra.mxu0 %v6466_v10  ;;  %1038 = vmatmul.f32.gmra.mxu1 %v6477_v28 }
 0x120   : > { %1135 = vmatmul.f32.gmra.mxu2 %v1134_v37 }
 0x122   : > { %1193 = vmatmul.f32.gmra.mxu3 %v6568_v34 }
 0x126   : > { %986 = vmatmul.f32.gmra.mxu0 %v6477_v28  ;;  %1042 = vmatmul.f32.gmra.mxu1 %v6483_v36 }
 0x128   : > { %1143 = vmatmul.f32.gmra.mxu2 %v1142_v24  ;;  %v1444_v24 = vld [vmem:[%s9314_s7 + $0x38] sm:$0xff] }
 0x12a   : > { %1197 = vmatmul.f32.gmra.mxu3 %v6580_v38 }
 0x12b   : > { %v6595_v10 = vpop.f32.mrf.mxu1 }
 0x12e   : > { %990 = vmatmul.f32.gmra.mxu0 %v6483_v36  ;;  %1280 = vmatmul.f32.vlgmr.msra.gmra.mxu1 %v1084_v50 }
 0x130   : > { %1346 = vmatmul.f32.vlgmr.msra.gmra.mxu2 %v6488_v40 }
 0x132   : > { %1396 = vmatmul.f32.vlgmr.msra.gmra.mxu3 %v6488_v40 }
 0x133   : > { %v6602_v42 = vpop.f32.mrf.mxu0  ;;  %v6604_v45 = vpop.f32.mrf.mxu1 }
 0x134   : > { %v6644_v49 = vpop.f32.mrf.mxu2 }
 0x135   : > { %v6651_v53 = vpop.f32.mrf.mxu3 }
 0x136   : > { %1221 = vmatmul.f32.vlgmr.msra.gmra.mxu0 %v6492_v43  ;;  %1286 = vmatmul.f32.gmra.mxu1 %v1092_v62  ;;  %v1450_v62 = vld [vmem:[%s9314_s7 + $0x68] sm:$0xff] }
 0x138   : > { %1350 = vmatmul.f32.gmra.mxu2 %v6501_v59 }
 0x13a   : > { %1400 = vmatmul.f32.gmra.mxu3 %v6501_v59 }
 0x13b   : > { %v6611_v28 = vpop.f32.mrf.mxu0  ;;  %v6613_v36 = vpop.f32.mrf.mxu1 }
 0x13c   : > { %v6678_v2 = vpop.f32.mrf.mxu2 }
 0x13e   : > { %1226 = vmatmul.f32.gmra.mxu0 %v6505_v61  ;;  %1292 = vmatmul.f32.gmra.mxu1 %v1100_v7  ;;  %v6673_v61 = vand.u32 4294901760, %v1451_v56  ;;  %v1510_v7 = vsub.f32 %v6669_v60, %v6682_v63  ;;  %v1438_v60 = vld [vmem:[%s9314_s7 + $0x8] sm:$0xff] }
 0x140   : > { %1354 = vmatmul.f32.gmra.mxu2 %v6514_v5  ;;  %v6685_v0 = vsub.f32 %v1451_v56, %v6673_v61  ;;  %1469 = vmatpush.msrb.mxu0 %v6673_v61 }
 0x141   : > { %1665 = vmatpush.msrb.mxu3 %v6673_v61 }
 0x142   : > { %1404 = vmatmul.f32.gmra.mxu3 %v6514_v5  ;;  %9521 = vst [vmem:[#allocation22_spill] sm:$0xff] %v6685_v0  ;;  %v6688_v5 = vand.u32 4294901760, %v1450_v62  ;;  %1613 = vmatpush.msrb.mxu2 %v6685_v0  ;;  %v6700_v9 = vand.u32 4294901760, %v6685_v0 }
 0x143   : > { %v6620_v40 = vpop.f32.mrf.mxu0  ;;  %v6622_v43 = vpop.f32.mrf.mxu1 }
 0x144   : > { %9522 = vst [vmem:[#allocation23_spill] sm:$0xff] %v6688_v5  ;;  %v6704_v4 = vsub.f32 %v1450_v62, %v6688_v5  ;;  %1471 = vmatpush.msrb.mxu0 %v6688_v5  ;;  %v1516_v18 = vsub.f32 %v6685_v0, %v6700_v9  ;;  %1667 = vmatpush.msrb.mxu3 %v6688_v5  ;;  %v6775_v21 = vpop.f32.mrf.mxu2 }
 0x145   : > { %9523 = vst [vmem:[#allocation24_spill] sm:$0xff] %v6700_v9 }
 0x146   : > { %1231 = vmatmul.f32.gmra.mxu0 %v6519_v6  ;;  %1298 = vmatmul.f32.gmra.mxu1 %v1108_v14  ;;  %v1449_v6 = vld [vmem:[%s9314_s7 + $0x60] sm:$0xff]  ;;  %9524 = vst [vmem:[#allocation25_spill] sm:$0xff] %v6704_v4  ;;  %v6715_v14 = vand.u32 4294901760, %v1510_v7  ;;  %v6720_v8 = vand.u32 4294901760, %v6704_v4  ;;  %v6739_v12 = vand.u32 4294901760, %v1516_v18  ;;  %v1443_v18 = vld [vmem:[%s9314_s7 + $0x30] sm:$0xff] }
 0x147   : > { %v6706_v11 = vand.u32 4294901760, %v1449_v6  ;;  %1616 = vmatpush.msrb.mxu2 %v6704_v4  ;;  %v6833_v30 = vand.u32 4294901760, %v1443_v18 }
 0x148   : > { %1358 = vmatmul.f32.gmra.mxu2 %v6528_v13  ;;  %9526 = vst [vmem:[#allocation27_spill] sm:$0xff] %v6715_v14  ;;  %1512 = vmatpush.msrb.mxu1 %v6715_v14  ;;  %v1522_v26 = vsub.f32 %v6704_v4, %v6720_v8 }
 0x149   : > { %9525 = vst [vmem:[#allocation26_spill] sm:$0xff] %v6706_v11  ;;  %v6724_v20 = vsub.f32 %v1449_v6, %v6706_v11  ;;  %1473 = vmatpush.msrb.mxu0 %v6706_v11  ;;  %1669 = vmatpush.msrb.mxu3 %v6706_v11  ;;  %v6805_v6 = vand.u32 4294901760, %v1444_v24 }
 0x14a   : > { %1408 = vmatmul.f32.gmra.mxu3 %v6528_v13  ;;  %v6708_v13 = vpop.f32.mrf.mxu3  ;;  %9527 = vst [vmem:[#allocation28_spill] sm:$0xff] %v6720_v8  ;;  %1518 = vmatpush.msrb.mxu1 %v6739_v12  ;;  %v6758_v33 = vand.u32 4294901760, %v1522_v26 }
 0x14b   : > { %v6629_v46 = vpop.f32.mrf.mxu0  ;;  %v6631_v47 = vpop.f32.mrf.mxu1  ;;  %9528 = vst [vmem:[#allocation29_spill] sm:$0xff] %v6724_v20  ;;  %1619 = vmatpush.msrb.mxu2 %v6724_v20 }
 0x14c   : > { %9531 = vst [vmem:[#allocation32_spill] sm:$0xff] %v6739_v12  ;;  %1524 = vmatpush.msrb.mxu1 %v6758_v33 }
 0x14d   : > { %9535 = vst [vmem:[#allocation36_spill] sm:$0xff] %v6758_v33 }
 0x14e   : > { %1236 = vmatmul.f32.gmra.mxu0 %v6533_v16  ;;  %1304 = vmatmul.f32.gmra.mxu1 %v1116_v23  ;;  %v1448_v16 = vld [vmem:[%s9314_s7 + $0x58] sm:$0xff]  ;;  %9545 = vst [vmem:[#allocation46_spill] sm:$0xff] %v6805_v6 }
 0x14f   : > { %9551 = vst [vmem:[#allocation52_spill] sm:$0xff] %v6833_v30 }
 0x150   : > { %1362 = vmatmul.f32.gmra.mxu2 %v6542_v22 }
 0x152   : > { %1412 = vmatmul.f32.gmra.mxu3 %v6542_v22  ;;  %v6728_v22 = vand.u32 4294901760, %v1448_v16  ;;  %v6808_v7 = vpop.f32.mrf.mxu3 }
 0x153   : > { %v6638_v48 = vpop.f32.mrf.mxu0  ;;  %v6640_v3 = vpop.f32.mrf.mxu1 }
 0x154   : > { %9529 = vst [vmem:[#allocation30_spill] sm:$0xff] %v6728_v22  ;;  %1475 = vmatpush.msrb.mxu0 %v6728_v22  ;;  %1671 = vmatpush.msrb.mxu3 %v6728_v22 }
 0x156   : > { %1241 = vmatmul.f32.gmra.mxu0 %v6547_v15  ;;  %1310 = vmatmul.f32.gmra.mxu1 %v1124_v29  ;;  %v1447_v15 = vld [vmem:[%s9314_s7 + $0x50] sm:$0xff]  ;;  %v6750_v29 = vsub.f32 %v1448_v16, %v6728_v22 }
 0x158   : > { %1366 = vmatmul.f32.gmra.mxu2 %v6556_v27  ;;  %9534 = vst [vmem:[#allocation35_spill] sm:$0xff] %v6750_v29 }
 0x159   : > { %1622 = vmatpush.msrb.mxu2 %v6750_v29 }
 0x15a   : > { %1416 = vmatmul.f32.gmra.mxu3 %v6556_v27  ;;  %v6744_v27 = vand.u32 4294901760, %v6724_v20 }
 0x15b   : > { %v6647_v50 = vpop.f32.mrf.mxu0  ;;  %v6649_v51 = vpop.f32.mrf.mxu1 }
 0x15c   : > { %9532 = vst [vmem:[#allocation33_spill] sm:$0xff] %v6744_v27  ;;  %v1528_v19 = vsub.f32 %v6724_v20, %v6744_v27 }
 0x15e   : > { %1246 = vmatmul.f32.gmra.mxu0 %v6561_v32  ;;  %1316 = vmatmul.f32.gmra.mxu1 %v1132_v52  ;;  %v6747_v32 = vand.u32 4294901760, %v1447_v15  ;;  %v6769_v52 = vand.u32 4294901760, %v6750_v29  ;;  %v6778_v37 = vand.u32 4294901760, %v1528_v19 }
 0x160   : > { %1370 = vmatmul.f32.gmra.mxu2 %v6568_v34  ;;  %9533 = vst [vmem:[#allocation34_spill] sm:$0xff] %v6747_v32  ;;  %v1534_v41 = vsub.f32 %v6750_v29, %v6769_v52  ;;  %1477 = vmatpush.msrb.mxu0 %v6747_v32 }
 0x161   : > { %9538 = vst [vmem:[#allocation39_spill] sm:$0xff] %v6769_v52  ;;  %1530 = vmatpush.msrb.mxu1 %v6778_v37  ;;  %1673 = vmatpush.msrb.mxu3 %v6747_v32 }
 0x162   : > { %1420 = vmatmul.f32.gmra.mxu3 %v6568_v34  ;;  %v6763_v34 = vsub.f32 %v1447_v15, %v6747_v32  ;;  %9539 = vst [vmem:[#allocation40_spill] sm:$0xff] %v6778_v37  ;;  %v6810_v16 = vand.u32 4294901760, %v1534_v41  ;;  %v6829_v41 = vsub.f32 %v1444_v24, %v6805_v6 }
 0x163   : > { %v6664_v57 = vpop.f32.mrf.mxu0  ;;  %v6666_v59 = vpop.f32.mrf.mxu1 }
 0x164   : > { %9518 = vst [vmem:[#allocation19_spill] sm:$0xff] %v6666_v59  ;;  %1625 = vmatpush.msrb.mxu2 %v6763_v34  ;;  %1536 = vmatpush.msrb.mxu1 %v6810_v16  ;;  %v6844_v24 = vand.u32 4294901760, %v6829_v41  ;;  %v1437_v59 = vld [vmem:[%s9314_s7] sm:$0xff] }
 0x165   : > { %9536 = vst [vmem:[#allocation37_spill] sm:$0xff] %v6763_v34 }
 0x166   : > { %1251 = vmatmul.f32.gmra.mxu0 %v6573_v44  ;;  %1322 = vmatmul.f32.gmra.mxu1 %v1140_v39  ;;  %v6765_v44 = vand.u32 4294901760, %v1446_v31  ;;  %v6786_v39 = vand.u32 4294901760, %v1445_v35  ;;  %9546 = vst [vmem:[#allocation47_spill] sm:$0xff] %v6810_v16  ;;  %v6850_v16 = vsub.f32 %v1443_v18, %v6833_v30  ;;  %v1558_v12 = vsub.f32 %v6829_v41, %v6844_v24 }
 0x167   : > { %9550 = vst [vmem:[#allocation51_spill] sm:$0xff] %v6829_v41 }
 0x168   : > { %1374 = vmatmul.f32.gmra.mxu2 %v6580_v38  ;;  %9537 = vst [vmem:[#allocation38_spill] sm:$0xff] %v6765_v44  ;;  %v6803_v62 = vsub.f32 %v1445_v35, %v6786_v39  ;;  %1479 = vmatpush.msrb.mxu0 %v6765_v44  ;;  %v6868_v18 = vand.u32 4294901760, %v6850_v16 }
 0x169   : > { %9542 = vst [vmem:[#allocation43_spill] sm:$0xff] %v6786_v39  ;;  %1675 = vmatpush.msrb.mxu3 %v6765_v44 }
 0x16a   : > { %1424 = vmatmul.f32.gmra.mxu3 %v6580_v38  ;;  %v6781_v38 = vand.u32 4294901760, %v6763_v34  ;;  %9544 = vst [vmem:[#allocation45_spill] sm:$0xff] %v6803_v62  ;;  %v6826_v35 = vand.u32 4294901760, %v6803_v62  ;;  %1481 = vmatpush.msrb.mxu0 %v6786_v39 }
 0x16b   : > { %v6734_v23 = vpop.f32.mrf.mxu0  ;;  %v6736_v25 = vpop.f32.mrf.mxu1  ;;  %9553 = vst [vmem:[#allocation54_spill] sm:$0xff] %v6844_v24  ;;  %1677 = vmatpush.msrb.mxu3 %v6786_v39 }
 0x16c   : > { %9530 = vst [vmem:[#allocation31_spill] sm:$0xff] %v6736_v25  ;;  %v1540_v54 = vsub.f32 %v6763_v34, %v6781_v38  ;;  %v1552_v1 = vsub.f32 %v6803_v62, %v6826_v35  ;;  %1483 = vmatpush.msrb.mxu0 %v6805_v6 }
 0x16d   : > { %9540 = vst [vmem:[#allocation41_spill] sm:$0xff] %v6781_v38  ;;  %1679 = vmatpush.msrb.mxu3 %v6805_v6 }
 0x16e   : > { %1256 = vmatmul.f32.gmra.mxu0 %v6585_v58  ;;  %v6784_v58 = vsub.f32 %v1446_v31, %v6765_v44  ;;  %v6821_v31 = vand.u32 4294901760, %v1540_v54  ;;  %9549 = vst [vmem:[#allocation50_spill] sm:$0xff] %v6826_v35  ;;  %v1442_v54 = vld [vmem:[%s9314_s7 + $0x28] sm:$0xff]  ;;  %v6858_v33 = vand.u32 4294901760, %v1552_v1  ;;  %v1440_v1 = vld [vmem:[%s9314_s7 + $0x18] sm:$0xff] }
 0x16f   : > { %9554 = vst [vmem:[#allocation55_spill] sm:$0xff] %v6850_v16  ;;  %v6852_v37 = vand.u32 4294901760, %v1442_v54  ;;  %1485 = vmatpush.msrb.mxu0 %v6833_v30  ;;  %1681 = vmatpush.msrb.mxu3 %v6833_v30 }
 0x170   : > { %9541 = vst [vmem:[#allocation42_spill] sm:$0xff] %v6784_v58  ;;  %v6800_v56 = vand.u32 4294901760, %v6784_v58  ;;  %1628 = vmatpush.msrb.mxu2 %v6784_v58  ;;  %1542 = vmatpush.msrb.mxu1 %v6821_v31 }
 0x171   : > { %9548 = vst [vmem:[#allocation49_spill] sm:$0xff] %v6821_v31  ;;  %v6871_v31 = vsub.f32 %v1442_v54, %v6852_v37  ;;  %v1564_v54 = vsub.f32 %v6850_v16, %v6868_v18  ;;  %1487 = vmatpush.msrb.mxu0 %v6852_v37  ;;  %1683 = vmatpush.msrb.mxu3 %v6852_v37 }
 0x172   : > { %9543 = vst [vmem:[#allocation44_spill] sm:$0xff] %v6800_v56  ;;  %v1546_v19 = vsub.f32 %v6784_v58, %v6800_v56  ;;  %1631 = vmatpush.msrb.mxu2 %v6803_v62  ;;  %v6877_v62 = vpop.f32.mrf.mxu2  ;;  %v6879_v58 = vand.u32 4294901760, %v1558_v12  ;;  %v1439_v12 = vld [vmem:[%s9314_s7 + $0x10] sm:$0xff] }
 0x173   : > { %v6817_v15 = vpop.f32.mrf.mxu0  ;;  %v6819_v26 = vpop.f32.mrf.mxu1  ;;  %9555 = vst [vmem:[#allocation56_spill] sm:$0xff] %v6852_v37  ;;  %v6892_v34 = vand.u32 4294901760, %v6871_v31  ;;  %v6913_v4 = vand.u32 4294901760, %v1564_v54 }
 0x174   : > { %9547 = vst [vmem:[#allocation48_spill] sm:$0xff] %v6819_v26  ;;  %v6839_v17 = vand.u32 4294901760, %v1546_v19  ;;  %v1441_v19 = vld [vmem:[%s9314_s7 + $0x20] sm:$0xff]  ;;  %1634 = vmatpush.msrb.mxu2 %v6829_v41 }
 0x175   : > { %9556 = vst [vmem:[#allocation57_spill] sm:$0xff] %v6858_v33  ;;  %v6862_v14 = vand.u32 4294901760, %v1441_v19  ;;  %v1570_v0 = vsub.f32 %v6871_v31, %v6892_v34 }
 0x176   : > { %9552 = vst [vmem:[#allocation53_spill] sm:$0xff] %v6839_v17  ;;  %1548 = vmatpush.msrb.mxu1 %v6839_v17  ;;  %v6884_v17 = vand.u32 4294901760, %v1440_v1  ;;  %1637 = vmatpush.msrb.mxu2 %v6850_v16  ;;  %v6908_v16 = vand.u32 4294901760, %v1439_v12 }
 0x177   : > { %9557 = vst [vmem:[#allocation58_spill] sm:$0xff] %v6862_v14  ;;  %v6882_v41 = vsub.f32 %v1441_v19, %v6862_v14  ;;  %1489 = vmatpush.msrb.mxu0 %v6862_v14  ;;  %1685 = vmatpush.msrb.mxu3 %v6862_v14  ;;  %v6949_v14 = vand.u32 4294901760, %v1437_v59 }
 0x178   : > { %9558 = vst [vmem:[#allocation59_spill] sm:$0xff] %v6868_v18  ;;  %1554 = vmatpush.msrb.mxu1 %v6858_v33  ;;  %v6906_v33 = vsub.f32 %v1440_v1, %v6884_v17  ;;  %1640 = vmatpush.msrb.mxu2 %v6871_v31  ;;  %v6921_v1 = vpop.f32.mrf.mxu3  ;;  %v6929_v54 = vsub.f32 %v1439_v12, %v6908_v16 }
 0x179   : > { %9559 = vst [vmem:[#allocation60_spill] sm:$0xff] %v6871_v31  ;;  %v6903_v20 = vand.u32 4294901760, %v6882_v41  ;;  %v6936_v31 = vand.u32 4294901760, %v1438_v60  ;;  %1491 = vmatpush.msrb.mxu0 %v6884_v17  ;;  %1687 = vmatpush.msrb.mxu3 %v6884_v17  ;;  %v6963_v37 = vsub.f32 %v1437_v59, %v6949_v14 }
 0x17a   : > { %9560 = vst [vmem:[#allocation61_spill] sm:$0xff] %v6879_v58  ;;  %1560 = vmatpush.msrb.mxu1 %v6879_v58  ;;  %v6926_v25 = vand.u32 4294901760, %v6906_v33  ;;  %1643 = vmatpush.msrb.mxu2 %v6882_v41  ;;  %v6934_v58 = vand.u32 4294901760, %v1570_v0 }
 0x17b   : > { %9561 = vst [vmem:[#allocation62_spill] sm:$0xff] %v6882_v41  ;;  %v6898_v19 = vpop.f32.mrf.mxu0  ;;  %v6900_v29 = vpop.f32.mrf.mxu1  ;;  %v6955_v0 = vsub.f32 %v1438_v60, %v6936_v31  ;;  %1493 = vmatpush.msrb.mxu0 %v6908_v16  ;;  %1689 = vmatpush.msrb.mxu3 %v6908_v16  ;;  %v6979_v59 = vand.u32 4294901760, %v6963_v37 }
 0x17c   : > { %9562 = vst [vmem:[#allocation63_spill] sm:$0xff] %v6884_v17  ;;  %1566 = vmatpush.msrb.mxu1 %v6913_v4  ;;  %v1582_v12 = vsub.f32 %v6906_v33, %v6926_v25  ;;  %1646 = vmatpush.msrb.mxu2 %v6906_v33  ;;  %v6972_v60 = vpop.f32.mrf.mxu2 }
 0x17d   : > { %9563 = vst [vmem:[#allocation64_spill] sm:$0xff] %v6892_v34  ;;  %1495 = vmatpush.msrb.mxu0 %v6936_v31  ;;  %1691 = vmatpush.msrb.mxu3 %v6936_v31 }
 0x17e   : > { %9564 = vst [vmem:[#allocation65_spill] sm:$0xff] %v6900_v29  ;;  %v1576_v29 = vsub.f32 %v6882_v41, %v6903_v20  ;;  %v6947_v41 = vand.u32 4294901760, %v6929_v54  ;;  %1572 = vmatpush.msrb.mxu1 %v6934_v58  ;;  %1649 = vmatpush.msrb.mxu2 %v6929_v54 }
 0x17f   : > { %9565 = vst [vmem:[#allocation66_spill] sm:$0xff] %v6903_v20  ;;  %1497 = vmatpush.msrb.mxu0 %v6949_v14  ;;  %1693 = vmatpush.msrb.mxu3 %v6949_v14 }
 0x180   : > { %9566 = vst [vmem:[#allocation67_spill] sm:$0xff] %v6906_v33  ;;  %v6942_v26 = vand.u32 4294901760, %v1576_v29  ;;  %v6958_v29 = vand.u32 4294901760, %v1582_v12  ;;  %1652 = vmatpush.msrb.mxu2 %v6955_v0 }
 0x181   : > { %9567 = vst [vmem:[#allocation68_spill] sm:$0xff] %v6908_v16  ;;  %1704 = vmatpush.msra.mxu0 %v6682_v63  ;;  %v5887_v63 = vld [vmem:[#allocation7] ss:$0 sm:$0xff] }
 0x182   : > { %9568 = vst [vmem:[#allocation69_spill] sm:$0xff] %v6913_v4  ;;  %v1588_v4 = vsub.f32 %v6929_v54, %v6947_v41  ;;  %1578 = vmatpush.msrb.mxu1 %v6942_v26  ;;  %1655 = vmatpush.msrb.mxu2 %v6963_v37 }
 0x183   : > { %9569 = vst [vmem:[#allocation70_spill] sm:$0xff] %v6926_v25  ;;  %v6974_v12 = vpop.f32.mrf.mxu0  ;;  %1708 = vmatpush.msra.mxu0 %v6700_v9  ;;  %v683_v9 = vadd.f32 %v5887_v63, %v6602_v42 }
 0x184   : > { %9570 = vst [vmem:[#allocation71_spill] sm:$0xff] %v6929_v54  ;;  %v6976_v33 = vand.u32 4294901760, %v1588_v4  ;;  %1584 = vmatpush.msrb.mxu1 %v6958_v29  ;;  %v6987_v54 = vpop.f32.mrf.mxu1  ;;  %v1600_v4 = vsub.f32 %v6963_v37, %v6979_v59 }
 0x185   : > { %9571 = vst [vmem:[#allocation72_spill] sm:$0xff] %v6934_v58  ;;  %v6969_v58 = vand.u32 4294901760, %v6955_v0  ;;  %1712 = vmatpush.msra.mxu0 %v6720_v8  ;;  %v699_v8 = vadd.f32 %v5887_v63, %v6620_v40  ;;  %v715_v40 = vadd.f32 %v5887_v63, %v6638_v48 }
 0x186   : > { %9572 = vst [vmem:[#allocation73_spill] sm:$0xff] %v6936_v31  ;;  %1590 = vmatpush.msrb.mxu1 %v6976_v33 }
 0x187   : > { %9573 = vst [vmem:[#allocation74_spill] sm:$0xff] %v6942_v26  ;;  %v1594_v26 = vsub.f32 %v6955_v0, %v6969_v58  ;;  %1716 = vmatpush.msra.mxu0 %v6744_v27  ;;  %v791_v48 = vadd.f32 %v6631_v47, %v715_v40 }
 0x188   : > { %9574 = vst [vmem:[#allocation75_spill] sm:$0xff] %v6947_v41 }
 0x189   : > { %9575 = vst [vmem:[#allocation76_spill] sm:$0xff] %v6949_v14  ;;  %v6994_v16 = vand.u32 4294901760, %v1594_v26  ;;  %v855_v26 = vpop.f32.mrf.mxu2  ;;  %1720 = vmatpush.msra.mxu0 %v6769_v52  ;;  %v707_v52 = vadd.f32 %v5887_v63, %v6629_v46 }
 0x18a   : > { %9576 = vst [vmem:[#allocation77_spill] sm:$0xff] %v6955_v0  ;;  %v6999_v0 = vand.u32 4294901760, %v1600_v4  ;;  %v691_v4 = vadd.f32 %v5887_v63, %v6611_v28  ;;  %v775_v28 = vadd.f32 %v6595_v10, %v683_v9 }
 0x18b   : > { %9577 = vst [vmem:[#allocation78_spill] sm:$0xff] %v6958_v29  ;;  %v6997_v29 = vpop.f32.mrf.mxu3  ;;  %1596 = vmatpush.msrb.mxu1 %v6994_v16  ;;  %1724 = vmatpush.msra.mxu0 %v6781_v38  ;;  %v783_v38 = vadd.f32 %v6613_v36, %v699_v8  ;;  %v787_v46 = vadd.f32 %v6622_v43, %v707_v52 }
 0x18c   : > { %9578 = vst [vmem:[#allocation79_spill] sm:$0xff] %v6963_v37  ;;  %v975_v37 = vpop.f32.mrf.mxu0  ;;  %v779_v27 = vadd.f32 %v6604_v45, %v691_v4  ;;  %v831_v10 = vadd.f32 %v6644_v49, %v775_v28 }
 0x18d   : > { %9579 = vst [vmem:[#allocation80_spill] sm:$0xff] %v6969_v58  ;;  %1602 = vmatpush.msrb.mxu1 %v6999_v0  ;;  %1728 = vmatpush.msra.mxu0 %v6800_v56  ;;  %v841_v36 = vadd.f32 %v6775_v21, %v783_v38  ;;  %v846_v49 = vadd.f32 %v6877_v62, %v787_v46  ;;  %v9589_v46 = vld [vmem:[#allocation65_spill] sm:$0xff] }
 0x18e   : > { %9580 = vst [vmem:[#allocation81_spill] sm:$0xff] %v6976_v33  ;;  %v723_v33 = vadd.f32 %v5887_v63, %v6647_v50  ;;  %v836_v45 = vadd.f32 %v6678_v2, %v779_v27  ;;  %v731_v50 = vadd.f32 %v5887_v63, %v6664_v57  ;;  %v892_v2 = vadd.f32 %v6651_v53, %v831_v10 }
 0x18f   : > { %9581 = vst [vmem:[#allocation82_spill] sm:$0xff] %v6979_v59  ;;  %1771 = vmatpush.msra.mxu1 %v6658_v55  ;;  %1732 = vmatpush.msra.mxu0 %v6826_v35  ;;  %v904_v47 = vadd.f32 %v6808_v7, %v841_v36  ;;  %v910_v53 = vadd.f32 %v6921_v1, %v846_v49  ;;  %v9584_v7 = vld [vmem:[#allocation56_spill] sm:$0xff]  ;;  %v9586_v1 = vld [vmem:[#allocation58_spill] sm:$0xff] }
 0x190   : > { %9582 = vst [vmem:[#allocation83_spill] sm:$0xff] %v6994_v16  ;;  %v7011_v16 = vpop.f32.mrf.mxu1  ;;  %v795_v8 = vadd.f32 %v6640_v3, %v723_v33  ;;  %v898_v43 = vadd.f32 %v6708_v13, %v836_v45  ;;  %v851_v3 = vadd.f32 %v6972_v60, %v791_v48  ;;  %v799_v57 = vadd.f32 %v6649_v51, %v731_v50  ;;  %v9585_v60 = vld [vmem:[#allocation48_spill] sm:$0xff] }
 0x191   : > { %9583 = vst [vmem:[#allocation84_spill] sm:$0xff] %v6999_v0  ;;  %1773 = vmatpush.msra.mxu1 %v6673_v61  ;;  %1736 = vmatpush.msra.mxu0 %v6844_v24  ;;  %v860_v9 = vpop.f32.mrf.mxu2  ;;  %v739_v13 = vadd.f32 %v5887_v63, %v6734_v23  ;;  %v964_v38 = vadd.f32 %v6817_v15, %v892_v2  ;;  %v9587_v63 = vld [vmem:[#allocation19_spill] sm:$0xff] }
 0x192   : > { %v968_v33 = vadd.f32 %v6898_v19, %v898_v43  ;;  %v856_v21 = vadd.f32 %v855_v26, %v795_v8  ;;  %v972_v62 = vadd.f32 %v6974_v12, %v904_v47  ;;  %v916_v51 = vadd.f32 %v6997_v29, %v851_v3  ;;  %v9588_v15 = vld [vmem:[#allocation31_spill] sm:$0xff]  ;;  %v9590_v43 = vld [vmem:[#allocation68_spill] sm:$0xff] }
 0x193   : > { %1775 = vmatpush.msra.mxu1 %v6688_v5  ;;  %v921_v0 = vpop.f32.mrf.mxu3  ;;  %1740 = vmatpush.msra.mxu0 %v6868_v18  ;;  %v861_v19 = vadd.f32 %v860_v9, %v799_v57  ;;  %v976_v28 = vadd.f32 %v975_v37, %v910_v53  ;;  %v803_v23 = vadd.f32 %v9587_v63, %v739_v13 }
 0x194   : > { %v979_v42 = vpop.f32.mrf.mxu0  ;;  %v7058_v26 = vadd.f32 %v9585_v60, %v968_v33  ;;  %v922_v40 = vadd.f32 %v921_v0, %v856_v21  ;;  %v7064_v12 = vadd.f32 %v9588_v15, %v964_v38  ;;  %v7067_v10 = vadd.f32 %v9589_v46, %v972_v62 }
 0x195   : > { %1777 = vmatpush.msra.mxu1 %v6706_v11  ;;  %1744 = vmatpush.msra.mxu0 %v6892_v34  ;;  %v980_v29 = vadd.f32 %v979_v42, %v916_v51  ;;  %v7074_v48 = vadd.f32 %v6987_v54, %v976_v28 }
 0x196   : > { %v1453_v0 = vadd.f32 %v7058_v26, %v7064_v12 }
 0x197   : > { %1779 = vmatpush.msra.mxu1 %v6728_v22  ;;  %1748 = vmatpush.msra.mxu0 %v6903_v20  ;;  %v7079_v2 = vadd.f32 %v7011_v16, %v980_v29 }
 0x198   : > { %v1035_v4 = vpop.f32.mrf.mxu1  ;;  %v1454_v42 = vadd.f32 %v1453_v0, %v7067_v10 }
 0x199   : > { %1781 = vmatpush.msra.mxu1 %v6747_v32  ;;  %1752 = vmatpush.msra.mxu0 %v6926_v25  ;;  %v865_v45 = vpop.f32.mrf.mxu2 }
 0x19a   : > { %v866_v49 = vadd.f32 %v865_v45, %v803_v23 }
 0x19b   : > { %1783 = vmatpush.msra.mxu1 %v6765_v44  ;;  %v927_v27 = vpop.f32.mrf.mxu3  ;;  %1756 = vmatpush.msra.mxu0 %v6947_v41 }
 0x19c   : > { %v983_v52 = vpop.f32.mrf.mxu0  ;;  %v928_v37 = vadd.f32 %v927_v27, %v861_v19  ;;  %v1455_v27 = vadd.f32 %v1454_v42, %v7074_v48 }
 0x19d   : > { %1785 = vmatpush.msra.mxu1 %v6786_v39  ;;  %1760 = vmatpush.msra.mxu0 %v6969_v58  ;;  %v984_v50 = vadd.f32 %v983_v52, %v922_v40 }
 0x19e   : > { %v1456_v52 = vadd.f32 %v1455_v27, %v7079_v2  ;;  %v9601_v27 = vld [vmem:[#allocation25_spill] sm:$0xff] }
 0x19f   : > { %1787 = vmatpush.msra.mxu1 %v6805_v6  ;;  %1764 = vmatpush.msra.mxu0 %v6979_v59  ;;  %v7083_v3 = vadd.f32 %v1035_v4, %v984_v50 }
 0x1a0   : > { %v1039_v9 = vpop.f32.mrf.mxu1 }
 0x1a1   : > { %1789 = vmatpush.msra.mxu1 %v6833_v30  ;;  %v7085_v57 = vpop.f32.mrf.mxu2  ;;  %v1457_v16 = vadd.f32 %v1456_v52, %v7083_v3 }
 0x1a2   : > { %9591 = vst [vmem:[#allocation48_spill] sm:$0xff] %v7085_v57 }
 0x1a3   : > { %1791 = vmatpush.msra.mxu1 %v9584_v7  ;;  %v933_v8 = vpop.f32.mrf.mxu3 }
 0x1a4   : > { %v987_v36 = vpop.f32.mrf.mxu0  ;;  %v934_v54 = vadd.f32 %v933_v8, %v866_v49  ;;  %v9598_v49 = vld [vmem:[#allocation20_spill] sm:$0xff] }
 0x1a5   : > { %1793 = vmatpush.msra.mxu1 %v9586_v1  ;;  %v988_v47 = vadd.f32 %v987_v36, %v928_v37 }
 0x1a7   : > { %1795 = vmatpush.msra.mxu1 %v6884_v17  ;;  %v7089_v33 = vadd.f32 %v1039_v9, %v988_v47  ;;  %v9600_v47 = vld [vmem:[#allocation22_spill] sm:$0xff] }
 0x1a8   : > { %v1043_v38 = vpop.f32.mrf.mxu1 }
 0x1a9   : > { %1797 = vmatpush.msra.mxu1 %v9590_v43  ;;  %v1458_v62 = vadd.f32 %v1457_v16, %v7089_v33  ;;  %v7098_v60 = vpop.f32.mrf.mxu2  ;;  %v9605_v16 = vld [vmem:[#allocation37_spill] sm:$0xff] }
 0x1aa   : > { %9593 = vst [vmem:[#allocation31_spill] sm:$0xff] %v7098_v60 }
 0x1ab   : > { %1799 = vmatpush.msra.mxu1 %v6936_v31  ;;  %v7092_v13 = vpop.f32.mrf.mxu3 }
 0x1ac   : > { %v991_v21 = vpop.f32.mrf.mxu0  ;;  %9592 = vst [vmem:[#allocation19_spill] sm:$0xff] %v7092_v13 }
 0x1ad   : > { %1801 = vmatpush.msra.mxu1 %v6949_v14  ;;  %v992_v53 = vadd.f32 %v991_v21, %v934_v54  ;;  %v9602_v54 = vld [vmem:[#allocation29_spill] sm:$0xff]  ;;  %v9604_v21 = vld [vmem:[#allocation35_spill] sm:$0xff] }
 0x1af   : > { %v7095_v4 = vadd.f32 %v1043_v38, %v992_v53  ;;  %v9607_v38 = vld [vmem:[#allocation42_spill] sm:$0xff] }
 0x1b1   : > { %v1459_v51 = vadd.f32 %v1458_v62, %v7095_v4  ;;  %v7102_v46 = vpop.f32.mrf.mxu2  ;;  %v9608_v62 = vld [vmem:[#allocation45_spill] sm:$0xff] }
 0x1b2   : > { %9595 = vst [vmem:[#allocation85_spill] sm:$0xff] %v7102_v46 }
 0x1b3   : > { %v1460_v19 = vrot.slane %v1459_v51, 4  ;;  %v7100_v45 = vpop.f32.mrf.mxu3 }
 0x1b4   : > { %9594 = vst [vmem:[#allocation65_spill] sm:$0xff] %v7100_v45 }
 0x1b5   : > { %v1461_v28 = vadd.f32 %v1460_v19, %v1459_v51  ;;  %v9609_v51 = vld [vmem:[#allocation51_spill] sm:$0xff] }
 0x1b7   : > { %v1462_v40 = vrot.slane %v1461_v28, 2 }
 0x1b9   : > { %v1463_v63 = vadd.f32 %v1462_v40, %v1461_v28  ;;  %v7109_v8 = vpop.f32.mrf.mxu2  ;;  %v9611_v28 = vld [vmem:[#allocation55_spill] sm:$0xff]  ;;  %v9612_v40 = vld [vmem:[#allocation60_spill] sm:$0xff] }
 0x1ba   : > { %9597 = vst [vmem:[#allocation87_spill] sm:$0xff] %v7109_v8 }
 0x1bb   : > { %v1464_v23 = vrot.slane %v1463_v63, 1  ;;  %v7104_v36 = vpop.f32.mrf.mxu3 }
 0x1bc   : > { %9596 = vst [vmem:[#allocation86_spill] sm:$0xff] %v7104_v36 }
 0x1bd   : > { %v1465_v15 = vadd.f32 %v1464_v23, %v1463_v63  ;;  %v9614_v23 = vld [vmem:[#allocation62_spill] sm:$0xff] }
 0x1bf   : > { %v1498_v29 = vand.u32 4294901760, %v1465_v15 }
 0x1c1   : > { %1604 = vmatmul.f32.vlgmr.msrb.gmra.mxu1 %v1498_v29  ;;  %v1499_v9 = vsub.f32 %v1465_v15, %v1498_v29  ;;  %v7122_v52 = vpop.f32.mrf.mxu2  ;;  %v9615_v15 = vld [vmem:[#allocation67_spill] sm:$0xff] }
 0x1c2   : > { %2183 = vmatpush.msrb.mxu1 %v6658_v55  ;;  %9603 = vst [vmem:[#allocation89_spill] sm:$0xff] %v7122_v52 }
 0x1c3   : > { %1658 = vmatmul.f32.vlgmr.msrb.gmra.mxu2 %v1499_v9  ;;  %v1500_v37 = vand.u32 4294901760, %v1499_v9  ;;  %v7114_v42 = vpop.f32.mrf.mxu3 }
 0x1c4   : > { %2185 = vmatpush.msrb.mxu1 %v6673_v61  ;;  %9599 = vst [vmem:[#allocation88_spill] sm:$0xff] %v7114_v42 }
 0x1c5   : > { %1697 = vmatmul.f32.vlgmr.msrb.gmra.mxu3 %v1500_v37  ;;  %v1501_v0 = vsub.f32 %v1499_v9, %v1500_v37  ;;  %v9618_v37 = vld [vmem:[#allocation77_spill] sm:$0xff] }
 0x1c6   : > { %2187 = vmatpush.msrb.mxu1 %v6688_v5 }
 0x1c7   : > { %v1502_v50 = vand.u32 4294901760, %v1501_v0  ;;  %v9619_v0 = vld [vmem:[#allocation79_spill] sm:$0xff] }
 0x1c8   : > { %2189 = vmatpush.msrb.mxu1 %v6706_v11 }
 0x1c9   : > { %1503 = vmatmul.f32.vlgmr.msrb.gmra.mxu0 %v1502_v50  ;;  %1803 = vmatmul.f32.vlgmr.msra.gmra.mxu1 %v1498_v29  ;;  %v7136_v19 = vpop.f32.mrf.mxu2 }
 0x1ca   : > { %2130 = vmatpush.msrb.mxu0 %v9598_v49  ;;  %2191 = vmatpush.msrb.mxu1 %v6728_v22  ;;  %9610 = vst [vmem:[#allocation91_spill] sm:$0xff] %v7136_v19  ;;  %v7160_v19 = vpop.f32.mrf.mxu1 }
 0x1cb   : > { %v7128_v53 = vpop.f32.mrf.mxu3  ;;  %9624 = vst [vmem:[#allocation98_spill] sm:$0xff] %v7160_v19 }
 0x1cc   : > { %2133 = vmatpush.msrb.mxu0 %v9600_v47  ;;  %2193 = vmatpush.msrb.mxu1 %v6747_v32  ;;  %9606 = vst [vmem:[#allocation90_spill] sm:$0xff] %v7128_v53 }
 0x1ce   : > { %2136 = vmatpush.msrb.mxu0 %v9601_v27  ;;  %2195 = vmatpush.msrb.mxu1 %v6765_v44 }
 0x1d0   : > { %2139 = vmatpush.msrb.mxu0 %v9602_v54  ;;  %2197 = vmatpush.msrb.mxu1 %v6786_v39 }
 0x1d1   : > { %1766 = vmatmul.f32.vlgmr.msra.gmra.mxu0 %v1498_v29  ;;  %v9616_v29 = vld [vmem:[#allocation71_spill] sm:$0xff]  ;;  %v7148_v9 = vpop.f32.mrf.mxu2 }
 0x1d2   : > { %2142 = vmatpush.msrb.mxu0 %v9604_v21  ;;  %2199 = vmatpush.msrb.mxu1 %v6805_v6  ;;  %9617 = vst [vmem:[#allocation93_spill] sm:$0xff] %v7148_v9  ;;  %v7168_v9 = vpop.f32.mrf.mxu1 }
 0x1d3   : > { %v7142_v63 = vpop.f32.mrf.mxu3  ;;  %9628 = vst [vmem:[#allocation102_spill] sm:$0xff] %v7168_v9 }
 0x1d4   : > { %2145 = vmatpush.msrb.mxu0 %v9605_v16  ;;  %2201 = vmatpush.msrb.mxu1 %v6833_v30  ;;  %9613 = vst [vmem:[#allocation92_spill] sm:$0xff] %v7142_v63  ;;  %v7158_v63 = vpop.f32.mrf.mxu0  ;;  %v9680_v16 = vld [vmem:[#allocation41_spill] sm:$0xff] }
 0x1d5   : > { %9623 = vst [vmem:[#allocation97_spill] sm:$0xff] %v7158_v63 }
 0x1d6   : > { %2148 = vmatpush.msrb.mxu0 %v9607_v38  ;;  %2203 = vmatpush.msrb.mxu1 %v9584_v7  ;;  %v9679_v38 = vld [vmem:[#allocation39_spill] sm:$0xff] }
 0x1d8   : > { %2151 = vmatpush.msrb.mxu0 %v9608_v62  ;;  %2205 = vmatpush.msrb.mxu1 %v9586_v1  ;;  %v9678_v62 = vld [vmem:[#allocation33_spill] sm:$0xff] }
 0x1d9   : > { %v7154_v53 = vpop.f32.mrf.mxu2 }
 0x1da   : > { %2154 = vmatpush.msrb.mxu0 %v9609_v51  ;;  %2207 = vmatpush.msrb.mxu1 %v6884_v17  ;;  %9621 = vst [vmem:[#allocation95_spill] sm:$0xff] %v7154_v53  ;;  %v7176_v53 = vpop.f32.mrf.mxu1  ;;  %v9677_v51 = vld [vmem:[#allocation28_spill] sm:$0xff] }
 0x1db   : > { %v7152_v50 = vpop.f32.mrf.mxu3  ;;  %9632 = vst [vmem:[#allocation106_spill] sm:$0xff] %v7176_v53 }
 0x1dc   : > { %2157 = vmatpush.msrb.mxu0 %v9611_v28  ;;  %2209 = vmatpush.msrb.mxu1 %v9590_v43  ;;  %9620 = vst [vmem:[#allocation94_spill] sm:$0xff] %v7152_v50  ;;  %v7166_v36 = vpop.f32.mrf.mxu0  ;;  %v9676_v28 = vld [vmem:[#allocation24_spill] sm:$0xff] }
 0x1dd   : > { %9627 = vst [vmem:[#allocation101_spill] sm:$0xff] %v7166_v36 }
 0x1de   : > { %2160 = vmatpush.msrb.mxu0 %v9612_v40  ;;  %2211 = vmatpush.msrb.mxu1 %v6936_v31 }
 0x1e0   : > { %2163 = vmatpush.msrb.mxu0 %v9614_v23  ;;  %2213 = vmatpush.msrb.mxu1 %v6949_v14 }
 0x1e1   : > { %v7162_v52 = vpop.f32.mrf.mxu2 }
 0x1e2   : > { %2166 = vmatpush.msrb.mxu0 %v9615_v15  ;;  %9625 = vst [vmem:[#allocation99_spill] sm:$0xff] %v7162_v52  ;;  %v7184_v52 = vpop.f32.mrf.mxu1 }
 0x1e3   : > { %v7156_v42 = vpop.f32.mrf.mxu3  ;;  %9636 = vst [vmem:[#allocation110_spill] sm:$0xff] %v7184_v52 }
 0x1e4   : > { %2169 = vmatpush.msrb.mxu0 %v9616_v29  ;;  %9622 = vst [vmem:[#allocation96_spill] sm:$0xff] %v7156_v42  ;;  %v7174_v50 = vpop.f32.mrf.mxu0 }
 0x1e5   : > { %9631 = vst [vmem:[#allocation105_spill] sm:$0xff] %v7174_v50 }
 0x1e6   : > { %2172 = vmatpush.msrb.mxu0 %v9618_v37 }
 0x1e8   : > { %2175 = vmatpush.msrb.mxu0 %v9619_v0 }
 0x1e9   : > { %v7170_v45 = vpop.f32.mrf.mxu2 }
 0x1ea   : > { %9629 = vst [vmem:[#allocation103_spill] sm:$0xff] %v7170_v45  ;;  %v7192_v45 = vpop.f32.mrf.mxu1 }
 0x1eb   : > { %v7164_v8 = vpop.f32.mrf.mxu3  ;;  %9640 = vst [vmem:[#allocation114_spill] sm:$0xff] %v7192_v45 }
 0x1ec   : > { %9626 = vst [vmem:[#allocation100_spill] sm:$0xff] %v7164_v8  ;;  %v7182_v19 = vpop.f32.mrf.mxu0 }
 0x1ed   : > { %9635 = vst [vmem:[#allocation109_spill] sm:$0xff] %v7182_v19 }
 0x1f1   : > { %v7178_v42 = vpop.f32.mrf.mxu2 }
 0x1f2   : > { %9633 = vst [vmem:[#allocation107_spill] sm:$0xff] %v7178_v42  ;;  %v7200_v42 = vpop.f32.mrf.mxu1 }
 0x1f3   : > { %v7172_v13 = vpop.f32.mrf.mxu3  ;;  %9644 = vst [vmem:[#allocation118_spill] sm:$0xff] %v7200_v42 }
 0x1f4   : > { %9630 = vst [vmem:[#allocation104_spill] sm:$0xff] %v7172_v13  ;;  %v7190_v9 = vpop.f32.mrf.mxu0 }
 0x1f5   : > { %9639 = vst [vmem:[#allocation113_spill] sm:$0xff] %v7190_v9 }
 0x1f9   : > { %v7186_v8 = vpop.f32.mrf.mxu2 }
 0x1fa   : > { %9637 = vst [vmem:[#allocation111_spill] sm:$0xff] %v7186_v8  ;;  %v7221_v42 = vpop.f32.mrf.mxu1 }
 0x1fb   : > { %v7180_v63 = vpop.f32.mrf.mxu3  ;;  %9651 = vst [vmem:[#allocation125_spill] sm:$0xff] %v7221_v42 }
 0x1fc   : > { %9634 = vst [vmem:[#allocation108_spill] sm:$0xff] %v7180_v63  ;;  %v7198_v53 = vpop.f32.mrf.mxu0  ;;  %v1436_v63 = vld [vmem:[#allocation8] sm:$0xff] }
 0x1fd   : > { %9643 = vst [vmem:[#allocation117_spill] sm:$0xff] %v7198_v53  ;;  %v7204_v52 = vand.u32 4294901760, %v1436_v63 }
 0x1ff   : > { %9646 = vst [vmem:[#allocation120_spill] sm:$0xff] %v7204_v52  ;;  %v7207_v8 = vsub.f32 %v1436_v63, %v7204_v52  ;;  %1826 = vmatpush.msra.mxu2 %v7204_v52  ;;  %2346 = vmatpush.msra.mxu0 %v7204_v52 }
 0x201   : > { %v7194_v13 = vpop.f32.mrf.mxu2  ;;  %9647 = vst [vmem:[#allocation121_spill] sm:$0xff] %v7207_v8  ;;  %1879 = vmatpush.msrb.mxu2 %v7207_v8 }
 0x202   : > { %9641 = vst [vmem:[#allocation115_spill] sm:$0xff] %v7194_v13  ;;  %v7234_v9 = vpop.f32.mrf.mxu1 }
 0x203   : > { %v7188_v36 = vpop.f32.mrf.mxu3  ;;  %9656 = vst [vmem:[#allocation130_spill] sm:$0xff] %v7234_v9 }
 0x204   : > { %9638 = vst [vmem:[#allocation112_spill] sm:$0xff] %v7188_v36 }
 0x209   : > { %v7202_v19 = vpop.f32.mrf.mxu2 }
 0x20a   : > { %9645 = vst [vmem:[#allocation119_spill] sm:$0xff] %v7202_v19  ;;  %v7219_v19 = vpop.f32.mrf.mxu0 }
 0x20b   : > { %v7196_v50 = vpop.f32.mrf.mxu3  ;;  %9650 = vst [vmem:[#allocation124_spill] sm:$0xff] %v7219_v19 }
 0x20c   : > { %9642 = vst [vmem:[#allocation116_spill] sm:$0xff] %v7196_v50  ;;  %v7214_v50 = vand.u32 4294901760, %v7207_v8 }
 0x20e   : > { %9649 = vst [vmem:[#allocation123_spill] sm:$0xff] %v7214_v50  ;;  %v1854_v13 = vsub.f32 %v7207_v8, %v7214_v50 }
 0x210   : > { %v7223_v63 = vand.u32 4294901760, %v1854_v13 }
 0x211   : > { %v7225_v45 = vpop.f32.mrf.mxu2 }
 0x212   : > { %9652 = vst [vmem:[#allocation126_spill] sm:$0xff] %v7223_v63  ;;  %1856 = vmatpush.msra.mxu3 %v7223_v63  ;;  %2376 = vmatpush.msra.mxu1 %v7223_v63  ;;  %v7232_v53 = vpop.f32.mrf.mxu0 }
 0x213   : > { %v7211_v36 = vpop.f32.mrf.mxu3  ;;  %9653 = vst [vmem:[#allocation127_spill] sm:$0xff] %v7225_v45 }
 0x214   : > { %9648 = vst [vmem:[#allocation122_spill] sm:$0xff] %v7211_v36  ;;  %1902 = vmatpush.msrb.mxu3 %v7204_v52 }
 0x215   : > { %9655 = vst [vmem:[#allocation129_spill] sm:$0xff] %v7232_v53 }
 0x219   : > { %v7236_v46 = vpop.f32.mrf.mxu2 }
 0x21a   : > { %9657 = vst [vmem:[#allocation131_spill] sm:$0xff] %v7236_v46 }
 0x21b   : > { %v7230_v36 = vpop.f32.mrf.mxu3 }
 0x21c   : > { %9654 = vst [vmem:[#allocation128_spill] sm:$0xff] %v7230_v36 }
 0x223   : > { %v7238_v19 = vpop.f32.mrf.mxu3 }
 0x224   : > { %9658 = vst [vmem:[#allocation132_spill] sm:$0xff] %v7238_v19 }
 0x23e   : > { %v1605_v13 = vpop.f32.mrf.mxu1 }
 0x246   : > { %v1504_v42 = vpop.f32.mrf.mxu0  ;;  %v1659_v45 = vpop.f32.mrf.mxu2 }
 0x247   : > { %v1606_v60 = vadd.f32 %v1605_v13, %v1504_v42  ;;  %v1804_v15 = vpop.f32.mrf.mxu1  ;;  %v9662_v42 = vld [vmem:[#allocation40_spill] sm:$0xff]  ;;  %v9675_v13 = vld [vmem:[#allocation21_spill] sm:$0xff] }
 0x248   : > { %v1698_v0 = vpop.f32.mrf.mxu3 }
 0x249   : > { %v1660_v57 = vadd.f32 %v1659_v45, %v1606_v60  ;;  %v9659_v60 = vld [vmem:[#allocation27_spill] sm:$0xff]  ;;  %v9661_v45 = vld [vmem:[#allocation36_spill] sm:$0xff] }
 0x24b   : > { %v1699_v37 = vadd.f32 %v1698_v0, %v1660_v57  ;;  %v9660_v57 = vld [vmem:[#allocation32_spill] sm:$0xff]  ;;  %v9673_v0 = vld [vmem:[#allocation83_spill] sm:$0xff] }
 0x24e   : > { %v1767_v63 = vpop.f32.mrf.mxu0 }
 0x24f   : > { %v1768_v29 = vadd.f32 %v1767_v63, %v1699_v37  ;;  %v9671_v37 = vld [vmem:[#allocation78_spill] sm:$0xff]  ;;  %v9674_v63 = vld [vmem:[#allocation84_spill] sm:$0xff] }
 0x251   : > { %v1805_v23 = vadd.f32 %v1804_v15, %v1768_v29  ;;  %v9668_v15 = vld [vmem:[#allocation69_spill] sm:$0xff]  ;;  %v9669_v29 = vld [vmem:[#allocation72_spill] sm:$0xff] }
 0x253   : > { %v1808_v36 = vsel %vm609_vm4, %v1805_v23, 0  ;;  %v9666_v23 = vld [vmem:[#allocation57_spill] sm:$0xff] }
 0x254   : > { %v1827_v53 = vand.u32 4294901760, %v1808_v36 }
 0x256   : > { %v1828_v40 = vsub.f32 %v1808_v36, %v1827_v53  ;;  %1858 = vmatmul.f32.vlgmr.msra.gmra.mxu3 %v1827_v53  ;;  %v9663_v36 = vld [vmem:[#allocation47_spill] sm:$0xff] }
 0x257   : > { %1950 = vmatpush.msra.mxu3 %v7204_v52 }
 0x258   : > { %v1829_v46 = vand.u32 4294901760, %v1828_v40 }
 0x25a   : > { %v1830_v19 = vsub.f32 %v1828_v40, %v1829_v46 }
 0x25c   : > { %v1831_v9 = vand.u32 4294901760, %v1830_v19  ;;  %v9664_v19 = vld [vmem:[#allocation49_spill] sm:$0xff] }
 0x25e   : > { %1832 = vmatmul.f32.vlgmr.msra.gmra.mxu2 %v1831_v9  ;;  %1906 = vmatmul.f32.vlgmr.msrb.gmra.mxu3 %v1829_v46  ;;  %v9665_v46 = vld [vmem:[#allocation53_spill] sm:$0xff]  ;;  %v9670_v9 = vld [vmem:[#allocation74_spill] sm:$0xff] }
 0x25f   : > { %1928 = vmatpush.msra.mxu2 %v7214_v50  ;;  %2032 = vmatpush.msrb.mxu3 %v9659_v60 }
 0x261   : > { %2038 = vmatpush.msrb.mxu3 %v9660_v57 }
 0x263   : > { %2044 = vmatpush.msrb.mxu3 %v9661_v45 }
 0x265   : > { %2050 = vmatpush.msrb.mxu3 %v9662_v42 }
 0x266   : > { %1882 = vmatmul.f32.vlgmr.msrb.gmra.mxu2 %v1828_v40  ;;  %1952 = vmatmul.f32.vlgmr.msra.gmra.mxu3 %v1827_v53  ;;  %v9667_v40 = vld [vmem:[#allocation61_spill] sm:$0xff] }
 0x267   : > { %1987 = vmatpush.msrb.mxu2 %v6658_v55  ;;  %2056 = vmatpush.msrb.mxu3 %v9663_v36 }
 0x269   : > { %1989 = vmatpush.msrb.mxu2 %v6673_v61  ;;  %2062 = vmatpush.msrb.mxu3 %v9664_v19 }
 0x26b   : > { %1991 = vmatpush.msrb.mxu2 %v6688_v5  ;;  %2068 = vmatpush.msrb.mxu3 %v9665_v46 }
 0x26d   : > { %1993 = vmatpush.msrb.mxu2 %v6706_v11  ;;  %2074 = vmatpush.msrb.mxu3 %v9666_v23 }
 0x26e   : > { %1930 = vmatmul.f32.vlgmr.msra.gmra.mxu2 %v1827_v53  ;;  %v9672_v53 = vld [vmem:[#allocation81_spill] sm:$0xff] }
 0x26f   : > { %1995 = vmatpush.msrb.mxu2 %v6728_v22  ;;  %2080 = vmatpush.msrb.mxu3 %v9667_v40  ;;  %v2717_v40 = vld [vmem:[%s9310_s3 + $0x88] sm:$0xff] }
 0x270   : > { %v7527_v46 = vand.u32 4294901760, %v2717_v40 }
 0x271   : > { %1997 = vmatpush.msrb.mxu2 %v6747_v32  ;;  %2086 = vmatpush.msrb.mxu3 %v9668_v15 }
 0x273   : > { %1999 = vmatpush.msrb.mxu2 %v6765_v44  ;;  %2092 = vmatpush.msrb.mxu3 %v9669_v29 }
 0x275   : > { %2001 = vmatpush.msrb.mxu2 %v6786_v39  ;;  %2098 = vmatpush.msrb.mxu3 %v9670_v9  ;;  %v2719_v9 = vld [vmem:[%s9310_s3 + $0x98] sm:$0xff] }
 0x277   : > { %2003 = vmatpush.msrb.mxu2 %v6805_v6  ;;  %2104 = vmatpush.msrb.mxu3 %v9671_v37 }
 0x279   : > { %2005 = vmatpush.msrb.mxu2 %v6833_v30  ;;  %2110 = vmatpush.msrb.mxu3 %v9672_v53 }
 0x27b   : > { %2007 = vmatpush.msrb.mxu2 %v9584_v7  ;;  %2116 = vmatpush.msrb.mxu3 %v9673_v0 }
 0x27d   : > { %2009 = vmatpush.msrb.mxu2 %v9586_v1  ;;  %2122 = vmatpush.msrb.mxu3 %v9674_v63 }
 0x27f   : > { %2291 = vmatpush.msra.mxu3 %v6658_v55  ;;  %2011 = vmatpush.msrb.mxu2 %v6884_v17 }
 0x281   : > { %2293 = vmatpush.msra.mxu3 %v6673_v61  ;;  %2013 = vmatpush.msrb.mxu2 %v9590_v43 }
 0x283   : > { %2295 = vmatpush.msra.mxu3 %v6688_v5  ;;  %2015 = vmatpush.msrb.mxu2 %v6936_v31 }
 0x285   : > { %2297 = vmatpush.msra.mxu3 %v6706_v11  ;;  %2017 = vmatpush.msrb.mxu2 %v6949_v14 }
 0x287   : > { %2224 = vmatpush.msra.mxu2 %v9675_v13  ;;  %2299 = vmatpush.msra.mxu3 %v6728_v22 }
 0x289   : > { %2228 = vmatpush.msra.mxu2 %v9676_v28  ;;  %2301 = vmatpush.msra.mxu3 %v6747_v32 }
 0x28b   : > { %2232 = vmatpush.msra.mxu2 %v9677_v51  ;;  %2303 = vmatpush.msra.mxu3 %v6765_v44 }
 0x28d   : > { %2236 = vmatpush.msra.mxu2 %v9678_v62  ;;  %2305 = vmatpush.msra.mxu3 %v6786_v39 }
 0x28f   : > { %2240 = vmatpush.msra.mxu2 %v9679_v38  ;;  %2307 = vmatpush.msra.mxu3 %v6805_v6 }
 0x291   : > { %2244 = vmatpush.msra.mxu2 %v9680_v16  ;;  %2309 = vmatpush.msra.mxu3 %v6833_v30 }
 0x293   : > { %2248 = vmatpush.msra.mxu2 %v6800_v56  ;;  %2311 = vmatpush.msra.mxu3 %v9584_v7  ;;  %v2720_v7 = vld [vmem:[%s9310_s3 + $0xa0] sm:$0xff] }
 0x295   : > { %2252 = vmatpush.msra.mxu2 %v6826_v35  ;;  %2313 = vmatpush.msra.mxu3 %v9586_v1 }
 0x297   : > { %2256 = vmatpush.msra.mxu2 %v6844_v24  ;;  %2315 = vmatpush.msra.mxu3 %v6884_v17 }
 0x299   : > { %2260 = vmatpush.msra.mxu2 %v6868_v18  ;;  %2317 = vmatpush.msra.mxu3 %v9590_v43 }
 0x29b   : > { %2264 = vmatpush.msra.mxu2 %v6892_v34  ;;  %2319 = vmatpush.msra.mxu3 %v6936_v31 }
 0x29d   : > { %2268 = vmatpush.msra.mxu2 %v6903_v20  ;;  %2321 = vmatpush.msra.mxu3 %v6949_v14 }
 0x29f   : > { %2272 = vmatpush.msra.mxu2 %v6926_v25 }
 0x2a1   : > { %2276 = vmatpush.msra.mxu2 %v6947_v41 }
 0x2a3   : > { %2280 = vmatpush.msra.mxu2 %v6969_v58 }
 0x2a5   : > { %2284 = vmatpush.msra.mxu2 %v6979_v59 }
 0x2d9   : > { %v1859_v21 = vpop.f32.mrf.mxu3 }
 0x2e1   : > { %v1833_v54 = vpop.f32.mrf.mxu2  ;;  %v1907_v27 = vpop.f32.mrf.mxu3 }
 0x2e2   : > { %v1860_v47 = vadd.f32 %v1859_v21, %v1833_v54 }
 0x2e9   : > { %v1883_v18 = vpop.f32.mrf.mxu2  ;;  %v1953_v20 = vpop.f32.mrf.mxu3 }
 0x2ea   : > { %v1884_v34 = vadd.f32 %v1883_v18, %v1860_v47 }
 0x2ec   : > { %v1908_v49 = vadd.f32 %v1907_v27, %v1884_v34 }
 0x2f1   : > { %v1931_v24 = vpop.f32.mrf.mxu2 }
 0x2f2   : > { %v1932_v35 = vadd.f32 %v1931_v24, %v1908_v49 }
 0x2f4   : > { %v1954_v31 = vadd.f32 %v1953_v20, %v1932_v35 }
 0x2f6   : > { %v1956_v14 = vperm.slane %v1954_v31, 0 }
 0x2f8   : > { %v7308_v25 = vsub.f32 %v7064_v12, %v1956_v14  ;;  %v7311_v41 = vsub.f32 %v7058_v26, %v1956_v14  ;;  %v7314_v59 = vsub.f32 %v7067_v10, %v1956_v14  ;;  %v7317_v58 = vsub.f32 %v7074_v48, %v1956_v14 }
 0x2f9   : > { %v7324_v20 = vsub.f32 %v7079_v2, %v1956_v14  ;;  %v7329_v18 = vsub.f32 %v7083_v3, %v1956_v14  ;;  %v7334_v10 = vsub.f32 %v7089_v33, %v1956_v14  ;;  %v7339_v2 = vsub.f32 %v7095_v4, %v1956_v14 }
 0x2fa   : > { %v1965_v34 = vmul.f32 %v7308_v25, %v7308_v25  ;;  %v1966_v24 = vmul.f32 %v7311_v41, %v7311_v41  ;;  %v1967_v31 = vmul.f32 %v7314_v59, %v7314_v59  ;;  %v1968_v26 = vmul.f32 %v7317_v58, %v7317_v58 }
 0x2fb   : > { %v1969_v48 = vmul.f32 %v7324_v20, %v7324_v20  ;;  %v1970_v47 = vmul.f32 %v7329_v18, %v7329_v18  ;;  %v1971_v3 = vmul.f32 %v7334_v10, %v7334_v10  ;;  %v1972_v21 = vmul.f32 %v7339_v2, %v7339_v2 }
 0x2fc   : > { %v1973_v35 = vadd.f32 %v1966_v24, %v1965_v34 }
 0x2fe   : > { %v1974_v12 = vadd.f32 %v1973_v35, %v1967_v31 }
 0x300   : > { %v1975_v49 = vadd.f32 %v1974_v12, %v1968_v26 }
 0x302   : > { %v1976_v27 = vadd.f32 %v1975_v49, %v1969_v48 }
 0x304   : > { %v1977_v54 = vadd.f32 %v1976_v27, %v1970_v47 }
 0x306   : > { %v1978_v33 = vadd.f32 %v1977_v54, %v1971_v3 }
 0x308   : > { %v1979_v34 = vadd.f32 %v1978_v33, %v1972_v21 }
 0x30a   : > { %v1980_v24 = vrot.slane %v1979_v34, 4 }
 0x30c   : > { %v1981_v31 = vadd.f32 %v1980_v24, %v1979_v34 }
 0x30e   : > { %v1982_v35 = vrot.slane %v1981_v31, 2 }
 0x310   : > { %v1983_v26 = vadd.f32 %v1982_v35, %v1981_v31 }
 0x312   : > { %v1984_v12 = vrot.slane %v1983_v26, 1 }
 0x314   : > { %v1985_v14 = vadd.f32 %v1984_v12, %v1983_v26 }
 0x316   : > { %v2018_v4 = vand.u32 4294901760, %v1985_v14 }
 0x318   : > { %2124 = vmatmul.f32.vlgmr.msrb.gmra.mxu3 %v2018_v4  ;;  %v2019_v56 = vsub.f32 %v1985_v14, %v2018_v4 }
 0x31a   : > { %2178 = vmatmul.f32.vlgmr.msrb.gmra.mxu0 %v2019_v56  ;;  %v2020_v48 = vand.u32 4294901760, %v2019_v56 }
 0x31b   : > { %2399 = vmatpush.msrb.mxu0 %v7207_v8 }
 0x31c   : > { %2217 = vmatmul.f32.vlgmr.msrb.gmra.mxu1 %v2020_v48  ;;  %v2021_v49 = vsub.f32 %v2019_v56, %v2020_v48 }
 0x31d   : > { %2422 = vmatpush.msrb.mxu1 %v7204_v52 }
 0x31e   : > { %v2022_v47 = vand.u32 4294901760, %v2021_v49 }
 0x320   : > { %2023 = vmatmul.f32.vlgmr.msrb.gmra.mxu2 %v2022_v47  ;;  %2323 = vmatmul.f32.vlgmr.msra.gmra.mxu3 %v2018_v4 }
 0x328   : > { %2286 = vmatmul.f32.vlgmr.msra.gmra.mxu2 %v2018_v4 }
 0x397   : > { %v2179_v21 = vpop.f32.mrf.mxu0 }
 0x399   : > { %v2218_v34 = vpop.f32.mrf.mxu1 }
 0x39b   : > { %v2125_v27 = vpop.f32.mrf.mxu3 }
 0x3a3   : > { %v2024_v3 = vpop.f32.mrf.mxu2  ;;  %v2324_v26 = vpop.f32.mrf.mxu3 }
 0x3a4   : > { %v2126_v54 = vadd.f32 %v2125_v27, %v2024_v3 }
 0x3a6   : > { %v2180_v33 = vadd.f32 %v2179_v21, %v2126_v54 }
 0x3a8   : > { %v2219_v24 = vadd.f32 %v2218_v34, %v2180_v33 }
 0x3ab   : > { %v2287_v31 = vpop.f32.mrf.mxu2 }
 0x3ac   : > { %v2288_v35 = vadd.f32 %v2287_v31, %v2219_v24 }
 0x3ae   : > { %v2325_v12 = vadd.f32 %v2324_v26, %v2288_v35  ;;  %v2731_v35 = vld [vmem:[%s9310_s3 + $0xf8] sm:$0xff]  ;;  %v2730_v26 = vld [vmem:[%s9310_s3 + $0xf0] sm:$0xff] }
 0x3b0   : > { %v2328_v14 = vsel %vm609_vm4, %v2325_v12, 0  ;;  %v2729_v12 = vld [vmem:[%s9310_s3 + $0xe8] sm:$0xff] }
 0x3b1   : > { %v2347_v56 = vand.u32 4294901760, %v2328_v14 }
 0x3b3   : > { %v2348_v48 = vsub.f32 %v2328_v14, %v2347_v56  ;;  %2378 = vmatmul.f32.vlgmr.msra.gmra.mxu1 %v2347_v56 }
 0x3b4   : > { %2470 = vmatpush.msra.mxu1 %v7204_v52 }
 0x3b5   : > { %v2349_v49 = vand.u32 4294901760, %v2348_v48 }
 0x3b7   : > { %v2350_v4 = vsub.f32 %v2348_v48, %v2349_v49 }
 0x3b9   : > { %v2351_v47 = vand.u32 4294901760, %v2350_v4  ;;  %v2728_v4 = vld [vmem:[%s9310_s3 + $0xe0] sm:$0xff] }
 0x3bb   : > { %2352 = vmatmul.f32.vlgmr.msra.gmra.mxu0 %v2351_v47  ;;  %2426 = vmatmul.f32.vlgmr.msrb.gmra.mxu1 %v2349_v49  ;;  %v7365_v49 = vand.u32 4294901760, %v2729_v12  ;;  %v2727_v47 = vld [vmem:[%s9310_s3 + $0xd8] sm:$0xff] }
 0x3bc   : > { %2448 = vmatpush.msra.mxu0 %v7214_v50 }
 0x3bd   : > { %v7392_v52 = vsub.f32 %v2729_v12, %v7365_v49 }
 0x3bf   : > { %v9439_v16 = vand.u32 4294901760, %v7392_v52 }
 0x3c1   : > { %v2844_v63 = vsub.f32 %v7392_v52, %v9439_v16  ;;  %v2722_v16 = vld [vmem:[%s9310_s3 + $0xb0] sm:$0xff] }
 0x3c2   : > { %v7467_v37 = vand.u32 4294901760, %v2722_v16 }
 0x3c3   : > { %2402 = vmatmul.f32.vlgmr.msrb.gmra.mxu0 %v2348_v48  ;;  %2472 = vmatmul.f32.vlgmr.msra.gmra.mxu1 %v2347_v56  ;;  %v7363_v48 = vand.u32 4294901760, %v2730_v26  ;;  %v2845_v53 = vand.u32 4294901760, %v2844_v63 }
 0x3c5   : > { %v7389_v8 = vsub.f32 %v2730_v26, %v7363_v48 }
 0x3c7   : > { %v9438_v17 = vand.u32 4294901760, %v7389_v8 }
 0x3cb   : > { %2450 = vmatmul.f32.vlgmr.msra.gmra.mxu0 %v2347_v56  ;;  %v7361_v56 = vand.u32 4294901760, %v2731_v35 }
 0x3cd   : > { %v7386_v50 = vsub.f32 %v2731_v35, %v7361_v56  ;;  %3048 = vmatpush.msrb.mxu3 %v7361_v56  ;;  %2733 = vmatpush.msrb.mxu0 %v7361_v56 }
 0x3cf   : > { %v9440_v12 = vand.u32 4294901760, %v7386_v50  ;;  %2960 = vmatpush.msrb.mxu2 %v7386_v50  ;;  %3050 = vmatpush.msrb.mxu3 %v7363_v48  ;;  %v9690_v36 = vand.u32 4294901760, %v7386_v50 }
 0x3d0   : > { %2735 = vmatpush.msrb.mxu0 %v7363_v48 }
 0x3d1   : > { %2963 = vmatpush.msrb.mxu2 %v7389_v8  ;;  %3052 = vmatpush.msrb.mxu3 %v7365_v49 }
 0x3d2   : > { %2737 = vmatpush.msrb.mxu0 %v7365_v49 }
 0x3d3   : > { %2966 = vmatpush.msrb.mxu2 %v7392_v52 }
 0x430   : > { %v2379_v27 = vpop.f32.mrf.mxu1 }
 0x438   : > { %v2353_v3 = vpop.f32.mrf.mxu0  ;;  %v2427_v21 = vpop.f32.mrf.mxu1 }
 0x439   : > { %v2354_v54 = vadd.f32 1e-05, %v2353_v3 }
 0x43b   : > { %v2380_v34 = vadd.f32 %v2379_v27, %v2354_v54  ;;  %v2726_v27 = vld [vmem:[%s9310_s3 + $0xd0] sm:$0xff]  ;;  %v7376_v54 = vand.u32 4294901760, %v2728_v4 }
 0x43d   : > { %v7401_v43 = vsub.f32 %v2728_v4, %v7376_v54  ;;  %v2724_v4 = vld [vmem:[%s9310_s3 + $0xc0] sm:$0xff]  ;;  %3054 = vmatpush.msrb.mxu3 %v7376_v54  ;;  %2739 = vmatpush.msrb.mxu0 %v7376_v54 }
 0x43e   : > { %v7437_v1 = vand.u32 4294901760, %v2724_v4 }
 0x43f   : > { %2969 = vmatpush.msrb.mxu2 %v7401_v43 }
 0x440   : > { %v2403_v33 = vpop.f32.mrf.mxu0 }
 0x441   : > { %v2404_v24 = vadd.f32 %v2403_v33, %v2380_v34  ;;  %v7380_v33 = vand.u32 4294901760, %v2726_v27  ;;  %v2725_v34 = vld [vmem:[%s9310_s3 + $0xc8] sm:$0xff] }
 0x443   : > { %v2428_v31 = vadd.f32 %v2427_v21, %v2404_v24  ;;  %v7378_v21 = vand.u32 4294901760, %v2727_v47  ;;  %v2473_v24 = vpop.f32.mrf.mxu1  ;;  %v7407_v26 = vsub.f32 %v2726_v27, %v7380_v33 }
 0x445   : > { %v7404_v35 = vsub.f32 %v2727_v47, %v7378_v21  ;;  %v9683_v30 = vand.u32 4294901760, %v7407_v26  ;;  %3056 = vmatpush.msrb.mxu3 %v7378_v21  ;;  %2741 = vmatpush.msrb.mxu0 %v7378_v21 }
 0x447   : > { %2972 = vmatpush.msrb.mxu2 %v7404_v35  ;;  %3058 = vmatpush.msrb.mxu3 %v7380_v33 }
 0x448   : > { %v2451_v14 = vpop.f32.mrf.mxu0  ;;  %2743 = vmatpush.msrb.mxu0 %v7380_v33 }
 0x449   : > { %v2452_v3 = vadd.f32 %v2451_v14, %v2428_v31  ;;  %v7396_v31 = vand.u32 4294901760, %v2725_v34  ;;  %2975 = vmatpush.msrb.mxu2 %v7407_v26 }
 0x44b   : > { %v7398_v14 = vadd.f32 %v2473_v24, %v2452_v3  ;;  %v7421_v27 = vsub.f32 %v2725_v34, %v7396_v31  ;;  %v2832_v3 = vsub.f32 %v7386_v50, %v9440_v12  ;;  %v2838_v24 = vsub.f32 %v7389_v8, %v9438_v17  ;;  %v2723_v17 = vld [vmem:[%s9310_s3 + $0xb8] sm:$0xff]  ;;  %v2721_v12 = vld [vmem:[%s9310_s3 + $0xa8] sm:$0xff]  ;;  %3060 = vmatpush.msrb.mxu3 %v7396_v31 }
 0x44c   : > { %v9681_v34 = vand.u32 4294901760, %v7401_v43  ;;  %v7465_v62 = vand.u32 4294901760, %v2723_v17  ;;  %v7469_v51 = vand.u32 4294901760, %v2721_v12  ;;  %2745 = vmatpush.msrb.mxu0 %v7396_v31 }
 0x44d   : > { %5894 = vrsqrt.f32 %v7398_v14  ;;  %v2833_v47 = vand.u32 4294901760, %v2832_v3  ;;  %v2839_v38 = vand.u32 4294901760, %v2838_v24  ;;  %v7459_v3 = vsub.f32 %v2724_v4, %v7437_v1  ;;  %2978 = vmatpush.msrb.mxu2 %v7421_v27  ;;  %3062 = vmatpush.msrb.mxu3 %v7437_v1 }
 0x44e   : > { %v2850_v0 = vsub.f32 %v7401_v43, %v9681_v34  ;;  %v9682_v24 = vand.u32 4294901760, %v7404_v35  ;;  %v2862_v4 = vsub.f32 %v7407_v26, %v9683_v30  ;;  %v7488_v30 = vsub.f32 %v2723_v17, %v7465_v62  ;;  %2747 = vmatpush.msrb.mxu0 %v7437_v1 }
 0x44f   : > { %2834 = vmatpush.msrb.mxu1 %v2833_v47  ;;  %v7491_v47 = vsub.f32 %v2722_v16, %v7467_v37  ;;  %v9684_v28 = vand.u32 4294901760, %v7421_v27  ;;  %v7499_v13 = vsub.f32 %v2721_v12, %v7469_v51  ;;  %v9685_v12 = vand.u32 4294901760, %v7459_v3  ;;  %2981 = vmatpush.msrb.mxu2 %v7459_v3 }
 0x450   : > { %v2856_v34 = vsub.f32 %v7404_v35, %v9682_v24  ;;  %v7479_v24 = vand.u32 4294901760, %v2720_v7  ;;  %v2851_v29 = vand.u32 4294901760, %v2850_v0  ;;  %vm2482_vm8 = vweird.f32 %v7398_v14  ;;  %3064 = vmatpush.msrb.mxu3 %v7465_v62  ;;  %2749 = vmatpush.msrb.mxu0 %v7465_v62 }
 0x451   : > { %2840 = vmatpush.msrb.mxu1 %v2839_v38  ;;  %v2868_v15 = vsub.f32 %v7421_v27, %v9684_v28  ;;  %v2718_v38 = vld [vmem:[%s9310_s3 + $0x90] sm:$0xff]  ;;  %v7507_v28 = vand.u32 4294901760, %v2719_v9  ;;  %v2874_v39 = vsub.f32 %v7459_v3, %v9685_v12  ;;  %2984 = vmatpush.msrb.mxu2 %v7488_v30  ;;  %v9688_v0 = vand.u32 4294901760, %v7499_v13 }
 0x452   : > { %v2857_v16 = vand.u32 4294901760, %v2856_v34  ;;  %v2863_v34 = vand.u32 4294901760, %v2862_v4  ;;  %v7522_v23 = vand.u32 4294901760, %v2718_v38  ;;  %v9686_v4 = vand.u32 4294901760, %v7488_v30  ;;  %3066 = vmatpush.msrb.mxu3 %v7467_v37  ;;  %2751 = vmatpush.msrb.mxu0 %v7467_v37 }
 0x453   : > { %v7471_v63 = vpop.eup %5894  ;;  %2846 = vmatpush.msrb.mxu1 %v2845_v53  ;;  %v2869_v44 = vand.u32 4294901760, %v2868_v15  ;;  %v2875_v12 = vand.u32 4294901760, %v2874_v39  ;;  %v2486_v39 = vmul.f32 0.5, %v7398_v14  ;;  %2987 = vmatpush.msrb.mxu2 %v7491_v47 }
 0x454   : > { %v2477_v6 = vmul.f32 %v7471_v63, %v7398_v14  ;;  %vm2483_vm7 = vweird.f32 %v7471_v63  ;;  %v2880_v15 = vsub.f32 %v7488_v30, %v9686_v4  ;;  %3068 = vmatpush.msrb.mxu3 %v7469_v51  ;;  %2753 = vmatpush.msrb.mxu0 %v7469_v51 }
 0x455   : > { %2852 = vmatpush.msrb.mxu1 %v2851_v29  ;;  %vm2484_vm9 = vmor %vm2482_vm8, %vm2483_vm7  ;;  %2990 = vmatpush.msrb.mxu2 %v7499_v13 }
 0x456   : > { %v2478_v17 = vmul.f32 %v7471_v63, %v2477_v6  ;;  %v7518_v6 = vsub.f32 %v2720_v7, %v7479_v24  ;;  %v2716_v7 = vld [vmem:[%s9310_s3 + $0x80] sm:$0xff]  ;;  %3070 = vmatpush.msrb.mxu3 %v7479_v24  ;;  %2755 = vmatpush.msrb.mxu0 %v7479_v24 }
 0x457   : > { %2858 = vmatpush.msrb.mxu1 %v2857_v16  ;;  %v7552_v32 = vand.u32 4294901760, %v2716_v7 }
 0x458   : > { %v2479_v53 = vmul.f32 0.5, %v2478_v17  ;;  %v7538_v17 = vsub.f32 %v2719_v9, %v7507_v28  ;;  %v7550_v9 = vsub.f32 %v2718_v38, %v7522_v23  ;;  %2993 = vmatpush.msrb.mxu2 %v7518_v6  ;;  %3072 = vmatpush.msrb.mxu3 %v7507_v28 }
 0x459   : > { %2864 = vmatpush.msrb.mxu1 %v2863_v34  ;;  %v2892_v34 = vsub.f32 %v7499_v13, %v9688_v0  ;;  %v7569_v14 = vsub.f32 %v2716_v7, %v7552_v32  ;;  %2757 = vmatpush.msrb.mxu0 %v7507_v28 }
 0x45a   : > { %v2480_v29 = vsub.f32 1.5, %v2479_v53  ;;  %v9687_v53 = vand.u32 4294901760, %v7491_v47  ;;  %v9457_v19 = vand.u32 4294901760, %v7538_v17  ;;  %2996 = vmatpush.msrb.mxu2 %v7538_v17  ;;  %3074 = vmatpush.msrb.mxu3 %v7522_v23 }
 0x45b   : > { %2870 = vmatpush.msrb.mxu1 %v2869_v44  ;;  %v9454_v44 = vand.u32 4294901760, %v7550_v9  ;;  %2759 = vmatpush.msrb.mxu0 %v7522_v23 }
 0x45c   : > { %v2481_v16 = vmul.f32 %v7471_v63, %v2480_v29  ;;  %v2886_v4 = vsub.f32 %v7491_v47, %v9687_v53  ;;  %v7563_v29 = vsub.f32 %v2717_v40, %v7527_v46  ;;  %v2881_v53 = vand.u32 4294901760, %v2880_v15  ;;  %2999 = vmatpush.msrb.mxu2 %v7550_v9  ;;  %3076 = vmatpush.msrb.mxu3 %v7527_v46 }
 0x45d   : > { %2876 = vmatpush.msrb.mxu1 %v2875_v12  ;;  %v9689_v40 = vand.u32 4294901760, %v7518_v6  ;;  %v2904_v12 = vsub.f32 %v7538_v17, %v9457_v19  ;;  %2761 = vmatpush.msrb.mxu0 %v7527_v46 }
 0x45e   : > { %v2485_v38 = vsel %vm2484_vm9, %v7471_v63, %v2481_v16  ;;  %v2887_v0 = vand.u32 4294901760, %v2886_v4  ;;  %v9456_v7 = vand.u32 4294901760, %v7563_v29  ;;  %v2893_v16 = vand.u32 4294901760, %v2892_v34  ;;  %3002 = vmatpush.msrb.mxu2 %v7563_v29  ;;  %3078 = vmatpush.msrb.mxu3 %v7552_v32 }
 0x45f   : > { %v2487_v22 = vmul.f32 %v2486_v39, %v2485_v38  ;;  %v2898_v63 = vsub.f32 %v7518_v6, %v9689_v40  ;;  %2882 = vmatpush.msrb.mxu1 %v2881_v53  ;;  %v9455_v4 = vand.u32 4294901760, %v7569_v14  ;;  %v2910_v53 = vsub.f32 %v7550_v9, %v9454_v44  ;;  %v5889_v44 = vld [vmem:[#allocation7 + $0x1] ss:$0 sm:$0xff]  ;;  %2763 = vmatpush.msrb.mxu0 %v7552_v32 }
 0x460   : > { %v2916_v40 = vsub.f32 %v7563_v29, %v9456_v7  ;;  %3005 = vmatpush.msrb.mxu2 %v7569_v14 }
 0x461   : > { %v2488_v15 = vmul.f32 %v2487_v22, %v2485_v38  ;;  %2888 = vmatpush.msrb.mxu1 %v2887_v0  ;;  %v2899_v22 = vand.u32 4294901760, %v2898_v63  ;;  %v2922_v0 = vsub.f32 %v7569_v14, %v9455_v4  ;;  %3131 = vmatpush.msra.mxu0 %v9690_v36 }
 0x463   : > { %v2489_v39 = vsub.f32 1.5, %v2488_v15  ;;  %2894 = vmatpush.msrb.mxu1 %v2893_v16  ;;  %v2905_v15 = vand.u32 4294901760, %v2904_v12  ;;  %v5890_v12 = vld [vmem:[#allocation7 + $0x2] ss:$0 sm:$0xff]  ;;  %v2923_v7 = vand.u32 4294901760, %v2922_v0 }
 0x465   : > { %v2490_v34 = vmul.f32 %v2489_v39, %v2485_v38  ;;  %2900 = vmatpush.msrb.mxu1 %v2899_v22  ;;  %v2911_v38 = vand.u32 4294901760, %v2910_v53  ;;  %v2917_v39 = vand.u32 4294901760, %v2916_v40 }
 0x467   : > { %v2493_v63 = vperm.slane %v2490_v34, 0  ;;  %2906 = vmatpush.msrb.mxu1 %v2905_v15 }
 0x469   : > { %v2494_v16 = vmul.f32 %v2493_v63, %v7308_v25  ;;  %v2495_v4 = vmul.f32 %v2493_v63, %v7311_v41  ;;  %v2496_v34 = vmul.f32 %v2493_v63, %v7314_v59  ;;  %v2497_v22 = vmul.f32 %v2493_v63, %v7317_v58  ;;  %2912 = vmatpush.msrb.mxu1 %v2911_v38 }
 0x46a   : > { %v2498_v53 = vmul.f32 %v2493_v63, %v7324_v20  ;;  %v2499_v40 = vmul.f32 %v2493_v63, %v7329_v18  ;;  %v2500_v41 = vmul.f32 %v2493_v63, %v7334_v10  ;;  %v2501_v42 = vmul.f32 %v2493_v63, %v7339_v2 }
 0x46b   : > { %v2503_v25 = vmul.f32 %v5889_v44, %v2494_v16  ;;  %v2504_v19 = vmul.f32 %v5889_v44, %v2495_v4  ;;  %v2505_v11 = vmul.f32 %v5889_v44, %v2496_v34  ;;  %v2506_v59 = vmul.f32 %v5889_v44, %v2497_v22  ;;  %2918 = vmatpush.msrb.mxu1 %v2917_v39 }
 0x46c   : > { %v2507_v15 = vmul.f32 %v5889_v44, %v2498_v53  ;;  %v2508_v0 = vmul.f32 %v5889_v44, %v2499_v40  ;;  %v9691_v20 = vand.u32 4294901760, %v7389_v8  ;;  %v9692_v63 = vand.u32 4294901760, %v7392_v52 }
 0x46d   : > { %v7617_v5 = vadd.f32 %v5890_v12, %v2503_v25  ;;  %v7619_v58 = vadd.f32 %v5890_v12, %v2504_v19  ;;  %v7623_v18 = vadd.f32 %v5890_v12, %v2505_v11  ;;  %v7625_v50 = vadd.f32 %v5890_v12, %v2506_v59  ;;  %2924 = vmatpush.msrb.mxu1 %v2923_v7 }
 0x46e   : > { %3135 = vmatpush.msra.mxu0 %v9691_v20  ;;  %v7627_v36 = vadd.f32 %v5890_v12, %v2507_v15  ;;  %v7629_v10 = vadd.f32 %v5890_v12, %v2508_v0  ;;  %v2509_v19 = vmul.f32 %v5889_v44, %v2500_v41  ;;  %v2510_v38 = vmul.f32 %v5889_v44, %v2501_v42 }
 0x46f   : > { %v2520_v4 = vmin.f32 %v7617_v5, 20.0  ;;  %v2521_v2 = vmin.f32 %v7619_v58, 20.0  ;;  %v2522_v11 = vmin.f32 %v7623_v18, 20.0  ;;  %v2523_v8 = vmin.f32 %v7625_v50, 20.0  ;;  %3226 = vmatpush.msra.mxu1 %v7361_v56 }
 0x470   : > { %3139 = vmatpush.msra.mxu0 %v9692_v63  ;;  %v9693_v34 = vand.u32 4294901760, %v7401_v43  ;;  %v2524_v22 = vmin.f32 %v7627_v36, 20.0  ;;  %v2525_v52 = vmin.f32 %v7629_v10, 20.0  ;;  %v9694_v42 = vand.u32 4294901760, %v7404_v35 }
 0x471   : > { %v2528_v39 = vmul.f32 1.442695, %v2520_v4  ;;  %v2530_v16 = vmul.f32 1.442695, %v2521_v2  ;;  %v2532_v53 = vmul.f32 1.442695, %v2522_v11  ;;  %3228 = vmatpush.msra.mxu1 %v7363_v48  ;;  %v7645_v7 = vadd.f32 %v5890_v12, %v2509_v19 }
 0x472   : > { %3143 = vmatpush.msra.mxu0 %v9693_v34  ;;  %v2534_v40 = vmul.f32 1.442695, %v2523_v8  ;;  %v2536_v44 = vmul.f32 1.442695, %v2524_v22  ;;  %v7647_v25 = vadd.f32 %v5890_v12, %v2510_v38  ;;  %v2538_v43 = vmul.f32 1.442695, %v2525_v52 }
 0x473   : > { %5896 = vpow2.f32 %v2528_v39  ;;  %3230 = vmatpush.msra.mxu1 %v7365_v49  ;;  %v9695_v56 = vand.u32 4294901760, %v7407_v26  ;;  %v2526_v48 = vmin.f32 %v7645_v7, 20.0  ;;  %v9696_v35 = vand.u32 4294901760, %v7421_v27 }
 0x474   : > { %3147 = vmatpush.msra.mxu0 %v9694_v42  ;;  %5898 = vpow2.f32 %v2530_v16  ;;  %v2527_v41 = vmin.f32 %v7647_v25, 20.0  ;;  %v9697_v49 = vand.u32 4294901760, %v7459_v3  ;;  %v9699_v38 = vand.u32 4294901760, %v7491_v47 }
 0x475   : > { %5900 = vpow2.f32 %v2532_v53  ;;  %3232 = vmatpush.msra.mxu1 %v7376_v54  ;;  %v2540_v0 = vmul.f32 1.442695, %v2526_v48  ;;  %v9698_v54 = vand.u32 4294901760, %v7488_v30  ;;  %v9700_v22 = vand.u32 4294901760, %v7499_v13 }
 0x476   : > { %3151 = vmatpush.msra.mxu0 %v9695_v56  ;;  %5902 = vpow2.f32 %v2534_v40  ;;  %v2542_v26 = vmul.f32 1.442695, %v2527_v41  ;;  %v9701_v40 = vand.u32 4294901760, %v7518_v6  ;;  %v9702_v13 = vand.u32 4294901760, %v7538_v17 }
 0x477   : > { %5904 = vpow2.f32 %v2536_v44  ;;  %3234 = vmatpush.msra.mxu1 %v7378_v21  ;;  %vm2600_vm10 = vcmp.gt.f32.partialorder %v7617_v5, 20.0  ;;  %vm2601_vm11 = vcmp.gt.f32.partialorder %v7619_v58, 20.0  ;;  %vm2602_vm12 = vcmp.gt.f32.partialorder %v7623_v18, 20.0 }
 0x478   : > { %3155 = vmatpush.msra.mxu0 %v9696_v35  ;;  %5906 = vpow2.f32 %v2538_v43  ;;  %vm2603_vm13 = vcmp.gt.f32.partialorder %v7625_v50, 20.0  ;;  %vm2604_vm14 = vcmp.gt.f32.partialorder %v7627_v36, 20.0  ;;  %vm2605_vm15 = vcmp.gt.f32.partialorder %v7629_v10, 20.0 }
 0x479   : > { %v5897_v12 = vpop.eup %5896  ;;  %3236 = vmatpush.msra.mxu1 %v7380_v33  ;;  %5908 = vpow2.f32 %v2542_v26  ;;  %vm2607_vm1 = vcmp.gt.f32.partialorder %v7647_v25, 20.0  ;;  %vm2606_vm2 = vcmp.gt.f32.partialorder %v7645_v7, 20.0 }
 0x47a   : > { %3159 = vmatpush.msra.mxu0 %v9697_v49  ;;  %v5899_v59 = vpop.eup %5898  ;;  %v2544_v15 = vadd.f32 2.0, %v5897_v12  ;;  %5910 = vpow2.f32 %v2540_v0 }
 0x47b   : > { %v5901_v20 = vpop.eup %5900  ;;  %v2545_v4 = vadd.f32 2.0, %v5899_v59  ;;  %3238 = vmatpush.msra.mxu1 %v7396_v31 }
 0x47c   : > { %3163 = vmatpush.msra.mxu0 %v9698_v54  ;;  %v5903_v27 = vpop.eup %5902  ;;  %v7663_v2 = vmul.f32 %v5897_v12, %v2544_v15  ;;  %v2546_v63 = vadd.f32 2.0, %v5901_v20 }
 0x47d   : > { %v5905_v19 = vpop.eup %5904  ;;  %v7665_v21 = vmul.f32 %v5899_v59, %v2545_v4  ;;  %v2547_v3 = vadd.f32 2.0, %v5903_v27  ;;  %3240 = vmatpush.msra.mxu1 %v7437_v1 }
 0x47e   : > { %3167 = vmatpush.msra.mxu0 %v9699_v38  ;;  %v5907_v11 = vpop.eup %5906  ;;  %v2560_v33 = vadd.f32 2.0, %v7663_v2  ;;  %v2554_v8 = vmul.f32 %v5901_v20, %v2546_v63  ;;  %v2548_v30 = vadd.f32 2.0, %v5905_v19 }
 0x47f   : > { %v2561_v39 = vadd.f32 2.0, %v7665_v21  ;;  %v7672_v16 = vmul.f32 %v5903_v27, %v2547_v3  ;;  %v2549_v34 = vadd.f32 2.0, %v5907_v11  ;;  %3242 = vmatpush.msra.mxu1 %v7465_v62  ;;  %v5909_v42 = vpop.eup %5908  ;;  %v9703_v62 = vand.u32 4294901760, %v7550_v9 }
 0x480   : > { %3171 = vmatpush.msra.mxu0 %v9700_v22  ;;  %5912 = vrcp.f32 %v2560_v33  ;;  %v2562_v31 = vadd.f32 2.0, %v2554_v8  ;;  %v7677_v47 = vmul.f32 %v5905_v19, %v2548_v30  ;;  %v5911_v44 = vpop.eup %5910  ;;  %v2551_v56 = vadd.f32 2.0, %v5909_v42  ;;  %v7707_v19 = vld [vmem:[%s6318_s18] ss:$0 sm:$0xff] }
 0x481   : > { %5914 = vrcp.f32 %v2561_v39  ;;  %v2563_v53 = vadd.f32 2.0, %v7672_v16  ;;  %v7684_v1 = vmul.f32 %v5907_v11, %v2549_v34  ;;  %3244 = vmatpush.msra.mxu1 %v7467_v37  ;;  %v2550_v35 = vadd.f32 2.0, %v5911_v44  ;;  %v7715_v34 = vld [vmem:[%s6318_s18 + $0x1] ss:$0 sm:$0xff] }
 0x482   : > { %3175 = vmatpush.msra.mxu0 %v9701_v40  ;;  %5916 = vrcp.f32 %v2562_v31  ;;  %v2564_v52 = vadd.f32 2.0, %v7677_v47  ;;  %v9704_v37 = vand.u32 4294901760, %v7563_v29  ;;  %v9705_v9 = vand.u32 4294901760, %v7569_v14 }
 0x483   : > { %5918 = vrcp.f32 %v2563_v53  ;;  %3246 = vmatpush.msra.mxu1 %v7469_v51  ;;  %v2565_v43 = vadd.f32 2.0, %v7684_v1  ;;  %v7699_v20 = vmul.f32 %v5909_v42, %v2551_v56  ;;  %v7701_v4 = vmul.f32 %v5911_v44, %v2550_v35  ;;  %v2714_v35 = vld [vmem:[%s9310_s3 + $0x70] sm:$0xff] }
 0x484   : > { %3179 = vmatpush.msra.mxu0 %v9702_v13  ;;  %5920 = vrcp.f32 %v2564_v52 }
 0x485   : > { %3248 = vmatpush.msra.mxu1 %v7479_v24  ;;  %5922 = vrcp.f32 %v2565_v43  ;;  %v2567_v11 = vadd.f32 2.0, %v7699_v20 }
 0x486   : > { %3183 = vmatpush.msra.mxu0 %v9703_v62  ;;  %v5913_v6 = vpop.eup %5912 }
 0x487   : > { %v5915_v41 = vpop.eup %5914  ;;  %v2576_v48 = vmul.f32 %v5913_v6, %v2560_v33  ;;  %3250 = vmatpush.msra.mxu1 %v7507_v28  ;;  %5924 = vrcp.f32 %v2567_v11 }
 0x488   : > { %3187 = vmatpush.msra.mxu0 %v9704_v37  ;;  %v5917_v17 = vpop.eup %5916  ;;  %v2577_v12 = vmul.f32 %v5915_v41, %v2561_v39 }
 0x489   : > { %v5919_v49 = vpop.eup %5918  ;;  %v2584_v26 = vsub.f32 2.0, %v2576_v48  ;;  %v2578_v51 = vmul.f32 %v5917_v17, %v2562_v31  ;;  %3252 = vmatpush.msra.mxu1 %v7522_v23  ;;  %v2566_v23 = vadd.f32 2.0, %v7701_v4 }
 0x48a   : > { %3191 = vmatpush.msra.mxu0 %v9705_v9  ;;  %v5921_v59 = vpop.eup %5920  ;;  %v2585_v15 = vsub.f32 2.0, %v2577_v12  ;;  %v2579_v0 = vmul.f32 %v5919_v49, %v2563_v53  ;;  %v2713_v9 = vld [vmem:[%s9310_s3 + $0x68] sm:$0xff] }
 0x48b   : > { %v2592_v24 = vmul.f32 %v5913_v6, %v2584_v26  ;;  %v2586_v29 = vsub.f32 2.0, %v2578_v51  ;;  %v2580_v28 = vmul.f32 %v5921_v59, %v2564_v52  ;;  %3254 = vmatpush.msra.mxu1 %v7527_v46  ;;  %v5923_v39 = vpop.eup %5922  ;;  %5926 = vrcp.f32 %v2566_v23 }
 0x48c   : > { %v2593_v54 = vmul.f32 %v5915_v41, %v2585_v15  ;;  %v2587_v27 = vsub.f32 2.0, %v2579_v0  ;;  %v2581_v52 = vmul.f32 %v5923_v39, %v2565_v43  ;;  %v7777_v15 = vand.u32 4294901760, %v2713_v9 }
 0x48d   : > { %v2608_v14 = vmul.f32 %v2592_v24, %v7663_v2  ;;  %v2594_v63 = vmul.f32 %v5917_v17, %v2586_v29  ;;  %3256 = vmatpush.msra.mxu1 %v7552_v32  ;;  %v2588_v2 = vsub.f32 2.0, %v2580_v28  ;;  %v7747_v56 = vpop.eup %5924 }
 0x48e   : > { %v2609_v3 = vmul.f32 %v2593_v54, %v7665_v21  ;;  %v2595_v38 = vmul.f32 %v5919_v49, %v2587_v27  ;;  %v2589_v43 = vsub.f32 2.0, %v2581_v52  ;;  %v7766_v49 = vand.u32 4294901760, %v2714_v35 }
 0x48f   : > { %v2616_v33 = vmul.f32 %v2608_v14, %v7617_v5  ;;  %v2610_v30 = vmul.f32 %v2594_v63, %v2554_v8  ;;  %v2596_v42 = vmul.f32 %v5921_v59, %v2588_v2  ;;  %v2583_v24 = vmul.f32 %v7747_v56, %v2567_v11 }
 0x490   : > { %v2617_v46 = vmul.f32 %v2609_v3, %v7619_v58  ;;  %v2611_v31 = vmul.f32 %v2595_v38, %v7672_v16  ;;  %v2597_v0 = vmul.f32 %v5923_v39, %v2589_v43 }
 0x491   : > { %v2624_v21 = vsel %vm2600_vm10, %v7617_v5, %v2616_v33  ;;  %v2618_v8 = vmul.f32 %v2610_v30, %v7623_v18  ;;  %v2612_v48 = vmul.f32 %v2596_v42, %v7677_v47  ;;  %v7756_v37 = vpop.eup %5926  ;;  %v2591_v39 = vsub.f32 2.0, %v2583_v24 }
 0x492   : > { %v2634_v22 = vmul.f32 %v7707_v19, %v2624_v21  ;;  %v2625_v32 = vsel %vm2601_vm11, %v7619_v58, %v2617_v46  ;;  %v2619_v16 = vmul.f32 %v2611_v31, %v7625_v50  ;;  %v2582_v27 = vmul.f32 %v7756_v37, %v2566_v23  ;;  %v2712_v23 = vld [vmem:[%s9310_s3 + $0x60] sm:$0xff] }
 0x493   : > { %v2635_v53 = vmul.f32 %v7707_v19, %v2625_v32  ;;  %v2626_v40 = vsel %vm2602_vm12, %v7623_v18, %v2618_v8  ;;  %v2715_v18 = vld [vmem:[%s9310_s3 + $0x78] sm:$0xff]  ;;  %v2620_v54 = vmul.f32 %v2612_v48, %v7627_v36  ;;  %v2613_v30 = vmul.f32 %v2597_v0, %v7684_v1 }
 0x494   : > { %v7729_v5 = vadd.f32 %v7715_v34, %v2634_v22  ;;  %v2636_v44 = vmul.f32 %v7707_v19, %v2626_v40  ;;  %v7745_v6 = vand.u32 4294901760, %v2715_v18  ;;  %v2627_v51 = vsel %vm2603_vm13, %v7625_v50, %v2619_v16 }
 0x495   : > { %v7732_v13 = vadd.f32 %v7715_v34, %v2635_v53  ;;  %v7783_v50 = vsub.f32 %v2714_v35, %v7766_v49  ;;  %v2637_v14 = vmul.f32 %v7707_v19, %v2627_v51  ;;  %v2628_v46 = vsel %vm2604_vm14, %v7627_v36, %v2620_v54  ;;  %v2711_v36 = vld [vmem:[%s9310_s3 + $0x58] sm:$0xff] }
 0x496   : > { %v7736_v58 = vand.u32 4294901760, %v7729_v5  ;;  %v7759_v17 = vadd.f32 %v7715_v34, %v2636_v44  ;;  %3291 = vmatpush.msra.mxu2 %v7745_v6  ;;  %v7764_v12 = vsub.f32 %v2715_v18, %v7745_v6  ;;  %v7806_v21 = vand.u32 4294901760, %v2712_v23  ;;  %v2710_v18 = vld [vmem:[%s9310_s3 + $0x50] sm:$0xff] }
 0x497   : > { %v7743_v62 = vand.u32 4294901760, %v7732_v13  ;;  %v9471_v11 = vand.u32 4294901760, %v7783_v50  ;;  %v2590_v8 = vsub.f32 2.0, %v2582_v27  ;;  %v7813_v22 = vadd.f32 %v7715_v34, %v2637_v14 }
 0x498   : > { %2926 = vmatmul.f32.vlgmr.msrb.gmra.mxu1 %v7736_v58  ;;  %v2765_v41 = vsub.f32 %v7729_v5, %v7736_v58  ;;  %3293 = vmatpush.msra.mxu2 %v7766_v49  ;;  %v9474_v59 = vand.u32 4294901760, %v7764_v12  ;;  %v7787_v28 = vand.u32 4294901760, %v7759_v17  ;;  %v7817_v32 = vsub.f32 %v2713_v9, %v7777_v15 }
 0x499   : > { %3606 = vmatpush.msrb.mxu1 %v7745_v6  ;;  %v2773_v26 = vsub.f32 %v7732_v13, %v7743_v62  ;;  %v3396_v2 = vsub.f32 %v7783_v50, %v9471_v11  ;;  %v7823_v40 = vand.u32 4294901760, %v2711_v36  ;;  %v7826_v52 = vsub.f32 %v2712_v23, %v7806_v21  ;;  %v2708_v23 = vld [vmem:[%s9310_s3 + $0x40] sm:$0xff] }
 0x49a   : > { %3008 = vmatmul.f32.vlgmr.msrb.gmra.mxu2 %v2765_v41  ;;  %v2766_v47 = vand.u32 4294901760, %v2765_v41  ;;  %v3390_v63 = vsub.f32 %v7764_v12, %v9474_v59  ;;  %v7810_v1 = vsub.f32 %v7759_v17, %v7787_v28  ;;  %v2638_v42 = vmul.f32 %v7707_v19, %v2628_v46 }
 0x49b   : > { %3608 = vmatpush.msrb.mxu1 %v7766_v49  ;;  %3295 = vmatpush.msra.mxu2 %v7777_v15  ;;  %v2774_v38 = vand.u32 4294901760, %v2773_v26  ;;  %v3397_v53 = vand.u32 4294901760, %v3396_v2  ;;  %v2621_v44 = vmul.f32 %v2613_v30, %v7629_v10  ;;  %v9470_v16 = vand.u32 4294901760, %v7817_v32 }
 0x49c   : > { %3082 = vmatmul.f32.vlgmr.msrb.gmra.mxu3 %v2766_v47  ;;  %v2767_v29 = vsub.f32 %v2765_v41, %v2766_v47  ;;  %v3391_v33 = vand.u32 4294901760, %v3390_v63  ;;  %v2599_v43 = vmul.f32 %v7747_v56, %v2591_v39  ;;  %v9469_v41 = vand.u32 4294901760, %v7826_v52  ;;  %v2709_v47 = vld [vmem:[%s9310_s3 + $0x48] sm:$0xff] }
 0x49d   : > { %3610 = vmatpush.msrb.mxu1 %v7777_v15  ;;  %v2775_v31 = vsub.f32 %v2773_v26, %v2774_v38  ;;  %3297 = vmatpush.msra.mxu2 %v7806_v21  ;;  %v7839_v48 = vand.u32 4294901760, %v2710_v18  ;;  %v7842_v35 = vsub.f32 %v2711_v36, %v7823_v40  ;;  %v2782_v56 = vand.u32 4294901760, %v7810_v1 }
 0x49e   : > { %v2768_v3 = vand.u32 4294901760, %v2767_v29  ;;  %3392 = vmatpush.msra.mxu3 %v3391_v33  ;;  %v7851_v51 = vand.u32 4294901760, %v7813_v22  ;;  %v3402_v9 = vsub.f32 %v7817_v32, %v9470_v16  ;;  %v7857_v0 = vand.u32 4294901760, %v2709_v47 }
 0x49f   : > { %3612 = vmatpush.msrb.mxu1 %v7806_v21  ;;  %3299 = vmatpush.msra.mxu2 %v7823_v40  ;;  %v2776_v24 = vand.u32 4294901760, %v2775_v31  ;;  %v9468_v29 = vand.u32 4294901760, %v7842_v35  ;;  %v7864_v54 = vsub.f32 %v2710_v18, %v7839_v48  ;;  %v7869_v27 = vadd.f32 %v7715_v34, %v2638_v42 }
 0x4a0   : > { %2769 = vmatmul.f32.vlgmr.msrb.gmra.mxu0 %v2768_v3  ;;  %2930 = vmatmul.f32.gmra.mxu1 %v7743_v62  ;;  %v2629_v14 = vsel %vm2605_vm15, %v7629_v10, %v2621_v44  ;;  %v3403_v63 = vand.u32 4294901760, %v3402_v9  ;;  %v2615_v3 = vmul.f32 %v2599_v43, %v7699_v20  ;;  %v7885_v10 = vsub.f32 %v2709_v47, %v7857_v0  ;;  %v2706_v47 = vld [vmem:[%s9310_s3 + $0x30] sm:$0xff] }
 0x4a1   : > { %3518 = vmatpush.msrb.mxu0 %v7764_v12  ;;  %3614 = vmatpush.msrb.mxu1 %v7823_v40  ;;  %v3414_v33 = vsub.f32 %v7842_v35, %v9468_v29  ;;  %v9466_v30 = vand.u32 4294901760, %v7864_v54  ;;  %v7889_v20 = vsub.f32 %v7813_v22, %v7851_v51  ;;  %v7893_v46 = vand.u32 4294901760, %v2708_v23 }
 0x4a2   : > { %3013 = vmatmul.f32.gmra.mxu2 %v2773_v26  ;;  %v2598_v26 = vmul.f32 %v7756_v37, %v2590_v8  ;;  %3398 = vmatpush.msra.mxu3 %v3397_v53  ;;  %v3408_v37 = vsub.f32 %v7826_v52, %v9469_v41  ;;  %v2783_v2 = vsub.f32 %v7810_v1, %v2782_v56  ;;  %v9464_v31 = vand.u32 4294901760, %v7885_v10  ;;  %v2707_v53 = vld [vmem:[%s9310_s3 + $0x38] sm:$0xff] }
 0x4a3   : > { %3521 = vmatpush.msrb.mxu0 %v7783_v50  ;;  %3616 = vmatpush.msrb.mxu1 %v7839_v48  ;;  %v3415_v8 = vand.u32 4294901760, %v3414_v33  ;;  %v3420_v36 = vsub.f32 %v7864_v54, %v9466_v30  ;;  %v7907_v42 = vand.u32 4294901760, %v2707_v53  ;;  %v7914_v44 = vand.u32 4294901760, %v7869_v27 }
 0x4a4   : > { %3088 = vmatmul.f32.gmra.mxu3 %v2774_v38  ;;  %3301 = vmatpush.msra.mxu2 %v7839_v48  ;;  %v3409_v38 = vand.u32 4294901760, %v3408_v37  ;;  %v2614_v39 = vmul.f32 %v2598_v26, %v7701_v4  ;;  %v2639_v4 = vmul.f32 %v7707_v19, %v2629_v14  ;;  %v3426_v43 = vsub.f32 %v7885_v10, %v9464_v31  ;;  %v2705_v26 = vld [vmem:[%s9310_s3 + $0x28] sm:$0xff] }
 0x4a5   : > { %3524 = vmatpush.msrb.mxu0 %v7817_v32  ;;  %3404 = vmatpush.msra.mxu3 %v3403_v63  ;;  %v3421_v18 = vand.u32 4294901760, %v3420_v36  ;;  %v2623_v9 = vmul.f32 %v2615_v3, %v7647_v25  ;;  %v7932_v37 = vsub.f32 %v2707_v53, %v7907_v42  ;;  %v7934_v14 = vand.u32 4294901760, %v2705_v26 }
 0x4a6   : > { %3303 = vmatpush.msra.mxu2 %v7857_v0  ;;  %v2784_v63 = vand.u32 4294901760, %v2783_v2  ;;  %v2622_v33 = vmul.f32 %v2614_v39, %v7645_v7  ;;  %v3427_v3 = vand.u32 4294901760, %v3426_v43  ;;  %3618 = vmatpush.msrb.mxu1 %v7857_v0  ;;  %v7954_v39 = vsub.f32 %v7869_v27, %v7914_v44 }
 0x4a7   : > { %3527 = vmatpush.msrb.mxu0 %v7826_v52  ;;  %3410 = vmatpush.msra.mxu3 %v3409_v38  ;;  %v2790_v38 = vand.u32 4294901760, %v7889_v20  ;;  %v9463_v2 = vand.u32 4294901760, %v7932_v37  ;;  %v2631_v53 = vsel %vm2607_vm1, %v7647_v25, %v2623_v9  ;;  %v9707_v57 = vand.u32 4294901760, %v7783_v50 }
 0x4a8   : > { %2777 = vmatmul.f32.gmra.mxu0 %v2776_v24  ;;  %2934 = vmatmul.f32.gmra.mxu1 %v7787_v28  ;;  %v7929_v24 = vand.u32 4294901760, %v2706_v47  ;;  %v2630_v9 = vsel %vm2606_vm2, %v7645_v7, %v2622_v33 }
 0x4a9   : > { %3305 = vmatpush.msra.mxu2 %v7893_v46  ;;  %3530 = vmatpush.msrb.mxu0 %v7842_v35  ;;  %v2791_v25 = vsub.f32 %v7889_v20, %v2790_v38  ;;  %v2640_v41 = vmul.f32 %v7707_v19, %v2630_v9  ;;  %v2700_v9 = vld [vmem:[%s9310_s3] sm:$0xff] }
 0x4aa   : > { %3018 = vmatmul.f32.gmra.mxu2 %v7810_v1  ;;  %v7910_v1 = vsub.f32 %v2708_v23, %v7893_v46  ;;  %3416 = vmatpush.msra.mxu3 %v3415_v8  ;;  %v7941_v23 = vadd.f32 %v7715_v34, %v2639_v4  ;;  %v7949_v36 = vsub.f32 %v2706_v47, %v7929_v24  ;;  %v2704_v4 = vld [vmem:[%s9310_s3 + $0x20] sm:$0xff] }
 0x4ab   : > { %3307 = vmatpush.msra.mxu2 %v7907_v42  ;;  %3533 = vmatpush.msrb.mxu0 %v7864_v54  ;;  %v3438_v47 = vsub.f32 %v7932_v37, %v9463_v2  ;;  %v2792_v29 = vand.u32 4294901760, %v2791_v25 }
 0x4ac   : > { %3094 = vmatmul.f32.gmra.mxu3 %v2782_v56  ;;  %v9462_v56 = vand.u32 4294901760, %v7910_v1  ;;  %v7992_v33 = vand.u32 4294901760, %v7941_v23  ;;  %3620 = vmatpush.msrb.mxu1 %v7893_v46 }
 0x4ad   : > { %3422 = vmatpush.msra.mxu3 %v3421_v18  ;;  %3309 = vmatpush.msra.mxu2 %v7929_v24  ;;  %v7964_v18 = vsub.f32 %v2705_v26, %v7934_v14 }
 0x4ae   : > { %v3432_v8 = vsub.f32 %v7910_v1, %v9462_v56  ;;  %v7971_v56 = vand.u32 4294901760, %v2704_v4  ;;  %3536 = vmatpush.msrb.mxu0 %v7885_v10  ;;  %3622 = vmatpush.msrb.mxu1 %v7907_v42 }
 0x4af   : > { %3428 = vmatpush.msra.mxu3 %v3427_v3  ;;  %3311 = vmatpush.msra.mxu2 %v7934_v14  ;;  %v9467_v26 = vand.u32 4294901760, %v7964_v18  ;;  %v2703_v3 = vld [vmem:[%s9310_s3 + $0x18] sm:$0xff] }
 0x4b0   : > { %2785 = vmatmul.f32.gmra.mxu0 %v2784_v63  ;;  %2938 = vmatmul.f32.gmra.mxu1 %v7851_v51  ;;  %v3433_v43 = vand.u32 4294901760, %v3432_v8  ;;  %v9465_v63 = vand.u32 4294901760, %v7949_v36  ;;  %v3439_v8 = vand.u32 4294901760, %v3438_v47  ;;  %v7985_v31 = vand.u32 4294901760, %v2703_v3 }
 0x4b1   : > { %3313 = vmatpush.msra.mxu2 %v7971_v56  ;;  %v7988_v7 = vsub.f32 %v2704_v4, %v7971_v56  ;;  %v3450_v47 = vsub.f32 %v7964_v18, %v9467_v26  ;;  %v2701_v4 = vld [vmem:[%s9310_s3 + $0x8] sm:$0xff]  ;;  %3539 = vmatpush.msrb.mxu0 %v7910_v1 }
 0x4b2   : > { %3023 = vmatmul.f32.gmra.mxu2 %v7889_v20  ;;  %3434 = vmatpush.msra.mxu3 %v3433_v43  ;;  %v3444_v2 = vsub.f32 %v7949_v36, %v9465_v63  ;;  %v2798_v20 = vand.u32 4294901760, %v7954_v39  ;;  %v2641_v43 = vmul.f32 %v7707_v19, %v2631_v53  ;;  %v2702_v63 = vld [vmem:[%s9310_s3 + $0x10] sm:$0xff]  ;;  %v8010_v26 = vsub.f32 %v2703_v3, %v7985_v31 }
 0x4b3   : > { %3315 = vmatpush.msra.mxu2 %v7985_v31  ;;  %v9473_v53 = vand.u32 4294901760, %v7988_v7  ;;  %v8007_v30 = vand.u32 4294901760, %v2702_v63  ;;  %v3451_v16 = vand.u32 4294901760, %v3450_v47  ;;  %v8013_v11 = vand.u32 4294901760, %v2701_v4  ;;  %3542 = vmatpush.msrb.mxu0 %v7932_v37 }
 0x4b4   : > { %3100 = vmatmul.f32.gmra.mxu3 %v2790_v38  ;;  %v3445_v38 = vand.u32 4294901760, %v3444_v2  ;;  %v9472_v3 = vand.u32 4294901760, %v8010_v26  ;;  %v8027_v19 = vadd.f32 %v7715_v34, %v2641_v43  ;;  %v2799_v43 = vsub.f32 %v7954_v39, %v2798_v20  ;;  %3624 = vmatpush.msrb.mxu1 %v7929_v24 }
 0x4b5   : > { %3440 = vmatpush.msra.mxu3 %v3439_v8  ;;  %v3456_v2 = vsub.f32 %v7988_v7, %v9473_v53  ;;  %3317 = vmatpush.msra.mxu2 %v8007_v30  ;;  %v8023_v25 = vsub.f32 %v2702_v63, %v8007_v30  ;;  %v8033_v8 = vsub.f32 %v2701_v4, %v8013_v11 }
 0x4b6   : > { %v3462_v63 = vsub.f32 %v8010_v26, %v9472_v3  ;;  %v2805_v4 = vsub.f32 %v7941_v23, %v7992_v33  ;;  %3545 = vmatpush.msrb.mxu0 %v7949_v36  ;;  %3626 = vmatpush.msrb.mxu1 %v7934_v14 }
 0x4b7   : > { %3446 = vmatpush.msra.mxu3 %v3445_v38  ;;  %v3457_v47 = vand.u32 4294901760, %v3456_v2  ;;  %3319 = vmatpush.msra.mxu2 %v8013_v11  ;;  %v8040_v38 = vand.u32 4294901760, %v2700_v9  ;;  %v9477_v2 = vand.u32 4294901760, %v8033_v8 }
 0x4b8   : > { %2793 = vmatmul.f32.gmra.mxu0 %v2792_v29  ;;  %2942 = vmatmul.f32.gmra.mxu1 %v7914_v44  ;;  %v9475_v29 = vand.u32 4294901760, %v8023_v25  ;;  %v3463_v3 = vand.u32 4294901760, %v3462_v63  ;;  %v2806_v45 = vand.u32 4294901760, %v2805_v4 }
 0x4b9   : > { %3452 = vmatpush.msra.mxu3 %v3451_v16  ;;  %v8047_v16 = vadd.f32 %v7715_v34, %v2640_v41  ;;  %3321 = vmatpush.msra.mxu2 %v8040_v38  ;;  %v3474_v34 = vsub.f32 %v8033_v8, %v9477_v2  ;;  %v9478_v41 = vrot.slane %v7729_v5, 7  ;;  %v9711_v2 = vld [vmem:[#allocation17_spill] sm:$0xff] }
 0x4ba   : > { %3028 = vmatmul.f32.gmra.mxu2 %v7954_v39  ;;  %v3468_v53 = vsub.f32 %v8023_v25, %v9475_v29  ;;  %v8056_v39 = vsub.f32 %v2700_v9, %v8040_v38  ;;  %v2800_v9 = vand.u32 4294901760, %v2799_v43  ;;  %3548 = vmatpush.msrb.mxu0 %v7964_v18  ;;  %v2677_v43 = vrot.slane %v7732_v13, 1 }
 0x4bb   : > { %3458 = vmatpush.msra.mxu3 %v3457_v47  ;;  %v9706_v47 = vand.u32 4294901760, %v7764_v12  ;;  %v3475_v59 = vand.u32 4294901760, %v3474_v34  ;;  %3628 = vmatpush.msrb.mxu1 %v7971_v56 }
 0x4bc   : > { %3106 = vmatmul.f32.gmra.mxu3 %v2798_v20  ;;  %v3469_v63 = vand.u32 4294901760, %v3468_v53  ;;  %v9476_v29 = vand.u32 4294901760, %v8056_v39  ;;  %v8068_v20 = vand.u32 4294901760, %v8047_v16  ;;  %v9708_v53 = vrot.slane %v8027_v19, 7  ;;  %3551 = vmatpush.msrb.mxu0 %v7988_v7 }
 0x4bd   : > { %3689 = vmatpush.msrb.mxu2 %v9706_v47  ;;  %3464 = vmatpush.msra.mxu3 %v3463_v3  ;;  %v9710_v47 = vand.u32 4294901760, %v7817_v32  ;;  %v3862_v3 = vld [vmem:[%s9310_s3 + $0x170] sm:$0xff] }
 0x4be   : > { %v3480_v12 = vsub.f32 %v8056_v39, %v9476_v29  ;;  %v2667_v50 = vsel %vm503_vm3, %v9708_v53, %v9478_v41  ;;  %v2813_v29 = vsub.f32 %v8047_v16, %v8068_v20  ;;  %v2679_v53 = vrot.slane %v7813_v22, 1  ;;  %3554 = vmatpush.msrb.mxu0 %v8010_v26  ;;  %3630 = vmatpush.msrb.mxu1 %v7985_v31 }
 0x4bf   : > { %3693 = vmatpush.msrb.mxu2 %v9707_v57  ;;  %3470 = vmatpush.msra.mxu3 %v3469_v63  ;;  %v2676_v57 = vrot.slane %v7729_v5, 1  ;;  %v2678_v63 = vrot.slane %v7759_v17, 1  ;;  %v2668_v41 = vmul.f32 %v9711_v2, %v2667_v50  ;;  %v8113_v50 = vand.u32 4294901760, %v8027_v19 }
 0x4c0   : > { %2801 = vmatmul.f32.gmra.mxu0 %v2800_v9  ;;  %2946 = vmatmul.f32.gmra.mxu1 %v7992_v33  ;;  %v3481_v34 = vand.u32 4294901760, %v3480_v12  ;;  %v2807_v9 = vsub.f32 %v2805_v4, %v2806_v45  ;;  %v2814_v2 = vand.u32 4294901760, %v2813_v29 }
 0x4c1   : > { %3476 = vmatpush.msra.mxu3 %v3475_v59  ;;  %3697 = vmatpush.msrb.mxu2 %v9710_v47  ;;  %v9712_v59 = vand.u32 4294901760, %v7826_v52  ;;  %v8099_v32 = vsel %vm528_vm0, %v2676_v57, %v2677_v43  ;;  %v8107_v12 = vsel %vm528_vm0, %v2678_v63, %v2679_v53  ;;  %v9713_v52 = vand.u32 4294901760, %v7842_v35 }
 0x4c2   : > { %3033 = vmatmul.f32.gmra.mxu2 %v2805_v4  ;;  %v8103_v4 = vsel %vm528_vm0, %v2677_v43, %v2678_v63  ;;  %v2680_v43 = vrot.slane %v7869_v27, 1  ;;  %v2653_v47 = vrot.slane %v7732_v13, 7  ;;  %v9715_v63 = vand.u32 4294901760, %v7885_v10  ;;  %3632 = vmatpush.msrb.mxu1 %v8007_v30 }
 0x4c3   : > { %3482 = vmatpush.msra.mxu3 %v3481_v34  ;;  %3701 = vmatpush.msrb.mxu2 %v9712_v59  ;;  %v9714_v34 = vand.u32 4294901760, %v7864_v54  ;;  %v2821_v54 = vsub.f32 %v8027_v19, %v8113_v50  ;;  %v2682_v59 = vrot.slane %v8047_v16, 1  ;;  %v9716_v13 = vand.u32 4294901760, %v7910_v1 }
 0x4c4   : > { %3112 = vmatmul.f32.gmra.mxu3 %v2806_v45  ;;  %v2808_v45 = vand.u32 4294901760, %v2807_v9  ;;  %v8126_v35 = vsel %vm528_vm0, %v2679_v53, %v2680_v43  ;;  %v2681_v9 = vrot.slane %v7941_v23, 1  ;;  %v9717_v53 = vrot.slane %v7729_v5, 7  ;;  %3557 = vmatpush.msrb.mxu0 %v8023_v25 }
 0x4c5   : > { %3784 = vmatpush.msrb.mxu3 %v7745_v6  ;;  %3705 = vmatpush.msrb.mxu2 %v9713_v52  ;;  %v8122_v6 = vand.u32 4294901760, %v2668_v41  ;;  %v9718_v1 = vand.u32 4294901760, %v7932_v37 }
 0x4c6   : > { %v8146_v10 = vsel %vm528_vm0, %v2680_v43, %v2681_v9  ;;  %3634 = vmatpush.msrb.mxu1 %v8013_v11  ;;  %3560 = vmatpush.msrb.mxu0 %v8033_v8 }
 0x4c7   : > { %3786 = vmatpush.msrb.mxu3 %v7766_v49  ;;  %3709 = vmatpush.msrb.mxu2 %v9714_v34  ;;  %v2815_v49 = vsub.f32 %v2813_v29, %v2814_v2  ;;  %v2654_v34 = vrot.slane %v7759_v17, 7 }
 0x4c8   : > { %2809 = vmatmul.f32.gmra.mxu0 %v2808_v45  ;;  %2950 = vmatmul.f32.gmra.mxu1 %v8068_v20  ;;  %v2822_v45 = vand.u32 4294901760, %v2821_v54 }
 0x4c9   : > { %3788 = vmatpush.msrb.mxu3 %v7777_v15  ;;  %3713 = vmatpush.msrb.mxu2 %v9715_v63  ;;  %v8141_v15 = vsub.f32 %v2668_v41, %v8122_v6  ;;  %v8158_v41 = vsel %vm528_vm0, %v2681_v9, %v2682_v59  ;;  %v2816_v52 = vand.u32 4294901760, %v2815_v49 }
 0x4ca   : > { %3038 = vmatmul.f32.gmra.mxu2 %v2813_v29  ;;  %v2683_v29 = vrot.slane %v8027_v19, 1  ;;  %3636 = vmatpush.msrb.mxu1 %v8040_v38 }
 0x4cb   : > { %3790 = vmatpush.msrb.mxu3 %v7806_v21  ;;  %3717 = vmatpush.msrb.mxu2 %v9716_v13  ;;  %v2666_v21 = vsel %vm503_vm3, %v9717_v53, %v2653_v47 }
 0x4cc   : > { %3118 = vmatmul.f32.gmra.mxu3 %v2814_v2  ;;  %v8164_v5 = vsel %vm528_vm0, %v2682_v59, %v2683_v29  ;;  %v8171_v37 = vsel %vm528_vm0, %v2683_v29, %v2676_v57  ;;  %v3324_v2 = vand.u32 4294901760, %v8141_v15  ;;  %v8175_v43 = vand.u32 4294901760, %v2666_v21  ;;  %3563 = vmatpush.msrb.mxu0 %v8056_v39 }
 0x4cd   : > { %3792 = vmatpush.msrb.mxu3 %v7823_v40  ;;  %3721 = vmatpush.msrb.mxu2 %v9718_v1  ;;  %9719 = vst [vmem:[#allocation16_spill] sm:$0xff] %v8164_v5  ;;  %v9720_v40 = vand.u32 4294901760, %v7949_v36  ;;  %v2823_v36 = vsub.f32 %v2821_v54, %v2822_v45  ;;  %v9723_v57 = vand.u32 4294901760, %v7988_v7  ;;  %v9725_v7 = vand.u32 4294901760, %v8023_v25 }
 0x4ce   : > { %9721 = vst [vmem:[#allocation17_spill] sm:$0xff] %v8171_v37  ;;  %v3325_v63 = vsub.f32 %v8141_v15, %v3324_v2  ;;  %v8189_v17 = vsub.f32 %v2666_v21, %v8175_v43  ;;  %v2657_v59 = vrot.slane %v7941_v23, 7  ;;  %v2658_v1 = vrot.slane %v8047_v16, 7 }
 0x4cf   : > { %3794 = vmatpush.msrb.mxu3 %v7839_v48  ;;  %3725 = vmatpush.msrb.mxu2 %v9720_v40  ;;  %v9722_v48 = vand.u32 4294901760, %v7964_v18  ;;  %v2824_v18 = vand.u32 4294901760, %v2823_v36 }
 0x4d0   : > { %2817 = vmatmul.f32.gmra.mxu0 %v2816_v52  ;;  %2954 = vmatmul.f32.gmra.mxu1 %v8113_v50  ;;  %v3326_v49 = vand.u32 4294901760, %v3325_v63 }
 0x4d1   : > { %3796 = vmatpush.msrb.mxu3 %v7857_v0  ;;  %3729 = vmatpush.msrb.mxu2 %v9722_v48  ;;  %v2665_v0 = vsel %vm503_vm3, %v2653_v47, %v2654_v34 }
 0x4d2   : > { %3043 = vmatmul.f32.gmra.mxu2 %v2821_v54  ;;  %v3332_v54 = vand.u32 4294901760, %v8189_v17  ;;  %v8203_v47 = vand.u32 4294901760, %v2665_v0 }
 0x4d3   : > { %3798 = vmatpush.msrb.mxu3 %v7893_v46  ;;  %3733 = vmatpush.msrb.mxu2 %v9723_v57  ;;  %v9724_v46 = vand.u32 4294901760, %v8010_v26  ;;  %v9726_v26 = vand.u32 4294901760, %v8033_v8  ;;  %v9728_v57 = vrot.slane %v8027_v19, 7 }
 0x4d4   : > { %3124 = vmatmul.f32.gmra.mxu3 %v2822_v45  ;;  %v3333_v25 = vsub.f32 %v8189_v17, %v3332_v54  ;;  %v8217_v9 = vsub.f32 %v2665_v0, %v8203_v47 }
 0x4d5   : > { %3800 = vmatpush.msrb.mxu3 %v7907_v42  ;;  %3737 = vmatpush.msrb.mxu2 %v9724_v46  ;;  %v2655_v42 = vrot.slane %v7813_v22, 7 }
 0x4d7   : > { %3802 = vmatpush.msrb.mxu3 %v7929_v24  ;;  %3741 = vmatpush.msrb.mxu2 %v9725_v7  ;;  %v9727_v24 = vand.u32 4294901760, %v8056_v39  ;;  %v2664_v22 = vsel %vm503_vm3, %v2654_v34, %v2655_v42  ;;  %v2656_v39 = vrot.slane %v7869_v27, 7 }
 0x4d8   : > { %2825 = vmatmul.f32.gmra.mxu0 %v2824_v18  ;;  %3258 = vmatmul.f32.vlgmr.msra.gmra.mxu1 %v7736_v58  ;;  %v8226_v8 = vand.u32 4294901760, %v2664_v22  ;;  %v3863_v18 = vld [vmem:[%s9310_s3 + $0x178] sm:$0xff] }
 0x4d9   : > { %3804 = vmatpush.msrb.mxu3 %v7934_v14  ;;  %3745 = vmatpush.msrb.mxu2 %v9726_v26  ;;  %v3340_v14 = vand.u32 4294901760, %v8217_v9  ;;  %v8294_v7 = vand.u32 4294901760, %v3863_v18 }
 0x4da   : > { %3327 = vmatmul.f32.vlgmr.msra.gmra.mxu2 %v3326_v49 }
 0x4db   : > { %3806 = vmatpush.msrb.mxu3 %v7971_v56  ;;  %3749 = vmatpush.msrb.mxu2 %v9727_v24  ;;  %v3334_v56 = vand.u32 4294901760, %v3333_v25  ;;  %v8308_v49 = vsub.f32 %v3863_v18, %v8294_v7 }
 0x4dc   : > { %3484 = vmatmul.f32.vlgmr.msra.gmra.mxu3 %v8122_v6 }
 0x4dd   : > { %3808 = vmatpush.msrb.mxu3 %v7985_v31  ;;  %v2663_v31 = vsel %vm503_vm3, %v2655_v42, %v2656_v39  ;;  %v8310_v42 = vand.u32 4294901760, %v3862_v3  ;;  %v9491_v26 = vand.u32 4294901760, %v8308_v49  ;;  %4092 = vmatpush.msra.mxu2 %v8308_v49 }
 0x4df   : > { %3810 = vmatpush.msrb.mxu3 %v8007_v30  ;;  %v8236_v30 = vsub.f32 %v2664_v22, %v8226_v8  ;;  %v8320_v22 = vsub.f32 %v3862_v3, %v8310_v42 }
 0x4e0   : > { %3193 = vmatmul.f32.vlgmr.msra.gmra.mxu0 %v7736_v58  ;;  %3262 = vmatmul.f32.gmra.mxu1 %v7743_v62  ;;  %v3341_v58 = vsub.f32 %v8217_v9, %v3340_v14 }
 0x4e1   : > { %3812 = vmatpush.msrb.mxu3 %v8013_v11  ;;  %v3348_v27 = vand.u32 4294901760, %v8236_v30  ;;  %3865 = vmatpush.msra.mxu0 %v8294_v7 }
 0x4e2   : > { %3335 = vmatmul.f32.gmra.mxu2 %v3334_v56  ;;  %v3342_v11 = vand.u32 4294901760, %v3341_v58  ;;  %v3964_v56 = vsub.f32 %v8308_v49, %v9491_v26 }
 0x4e3   : > { %3814 = vmatpush.msrb.mxu3 %v8040_v38  ;;  %v8243_v38 = vand.u32 4294901760, %v2663_v31  ;;  %v3349_v13 = vsub.f32 %v8236_v30, %v3348_v27  ;;  %3867 = vmatpush.msra.mxu0 %v8310_v42 }
 0x4e4   : > { %3488 = vmatmul.f32.gmra.mxu3 %v8175_v43  ;;  %v3965_v58 = vand.u32 4294901760, %v3964_v56  ;;  %4095 = vmatpush.msra.mxu2 %v8320_v22 }
 0x4e5   : > { %v8251_v29 = vsub.f32 %v2663_v31, %v8243_v38  ;;  %v3350_v53 = vand.u32 4294901760, %v3349_v13  ;;  %4180 = vmatpush.msra.mxu3 %v8294_v7  ;;  %v3860_v13 = vld [vmem:[%s9310_s3 + $0x160] sm:$0xff] }
 0x4e6   : > { %3966 = vmatpush.msra.mxu1 %v3965_v58 }
 0x4e7   : > { %v9493_v23 = vand.u32 4294901760, %v8251_v29  ;;  %4182 = vmatpush.msra.mxu3 %v8310_v42 }
 0x4e8   : > { %3197 = vmatmul.f32.gmra.mxu0 %v7743_v62  ;;  %3266 = vmatmul.f32.gmra.mxu1 %v7787_v28  ;;  %v2662_v62 = vsel %vm503_vm3, %v2656_v39, %v2657_v59  ;;  %v9490_v39 = vand.u32 4294901760, %v8320_v22 }
 0x4e9   : > { %v8258_v21 = vand.u32 4294901760, %v2662_v62  ;;  %v3357_v52 = vsub.f32 %v8251_v29, %v9493_v23 }
 0x4ea   : > { %3343 = vmatmul.f32.gmra.mxu2 %v3342_v11 }
 0x4eb   : > { %v8266_v45 = vsub.f32 %v2662_v62, %v8258_v21  ;;  %v3358_v40 = vand.u32 4294901760, %v3357_v52 }
 0x4ec   : > { %3492 = vmatmul.f32.gmra.mxu3 %v8203_v47 }
 0x4ed   : > { %v9492_v16 = vand.u32 4294901760, %v8266_v45 }
 0x4ef   : > { %v3365_v48 = vsub.f32 %v8266_v45, %v9492_v16 }
 0x4f0   : > { %3201 = vmatmul.f32.gmra.mxu0 %v7787_v28  ;;  %3270 = vmatmul.f32.gmra.mxu1 %v7851_v51  ;;  %v2661_v28 = vsel %vm503_vm3, %v2657_v59, %v2658_v1  ;;  %v3970_v59 = vsub.f32 %v8320_v22, %v9490_v39 }
 0x4f1   : > { %v8273_v34 = vand.u32 4294901760, %v2661_v28  ;;  %v3366_v63 = vand.u32 4294901760, %v3365_v48 }
 0x4f2   : > { %3351 = vmatmul.f32.gmra.mxu2 %v3350_v53  ;;  %v8347_v53 = vand.u32 4294901760, %v3860_v13 }
 0x4f3   : > { %v8280_v36 = vsub.f32 %v2661_v28, %v8273_v34 }
 0x4f4   : > { %3496 = vmatmul.f32.gmra.mxu3 %v8226_v8 }
 0x4f5   : > { %v9484_v0 = vand.u32 4294901760, %v8280_v36 }
 0x4f8   : > { %3205 = vmatmul.f32.gmra.mxu0 %v7851_v51  ;;  %3274 = vmatmul.f32.gmra.mxu1 %v7914_v44  ;;  %v2660_v51 = vsel %vm503_vm3, %v2658_v1, %v9728_v57  ;;  %v3971_v1 = vand.u32 4294901760, %v3970_v59 }
 0x4f9   : > { %v8289_v46 = vand.u32 4294901760, %v2660_v51 }
 0x4fa   : > { %3359 = vmatmul.f32.gmra.mxu2 %v3358_v40  ;;  %v8356_v40 = vsub.f32 %v3860_v13, %v8347_v53  ;;  %3972 = vmatpush.msra.mxu1 %v3971_v1 }
 0x4fb   : > { %v8301_v19 = vsub.f32 %v2660_v51, %v8289_v46 }
 0x4fc   : > { %3500 = vmatmul.f32.gmra.mxu3 %v8243_v38  ;;  %v9486_v57 = vand.u32 4294901760, %v8356_v40 }
 0x4fd   : > { %v9479_v25 = vand.u32 4294901760, %v8301_v19 }
 0x4fe   : > { %v3982_v18 = vsub.f32 %v8356_v40, %v9486_v57 }
 0x4ff   : > { %v3381_v11 = vsub.f32 %v8301_v19, %v9479_v25 }
 0x500   : > { %3209 = vmatmul.f32.gmra.mxu0 %v7914_v44  ;;  %3278 = vmatmul.f32.gmra.mxu1 %v7992_v33  ;;  %v3373_v44 = vsub.f32 %v8280_v36, %v9484_v0 }
 0x501   : > { %v3382_v28 = vand.u32 4294901760, %v3381_v11 }
 0x502   : > { %3367 = vmatmul.f32.gmra.mxu2 %v3366_v63  ;;  %v3374_v24 = vand.u32 4294901760, %v3373_v44  ;;  %v3858_v44 = vld [vmem:[%s9310_s3 + $0x150] sm:$0xff] }
 0x503   : > { %v8380_v56 = vand.u32 4294901760, %v3858_v44 }
 0x504   : > { %3504 = vmatmul.f32.gmra.mxu3 %v8258_v21 }
 0x505   : > { %v8390_v11 = vsub.f32 %v3858_v44, %v8380_v56 }
 0x507   : > { %v9480_v13 = vand.u32 4294901760, %v8390_v11 }
 0x508   : > { %3213 = vmatmul.f32.gmra.mxu0 %v7992_v33  ;;  %3282 = vmatmul.f32.gmra.mxu1 %v8068_v20  ;;  %v3861_v33 = vld [vmem:[%s9310_s3 + $0x168] sm:$0xff] }
 0x509   : > { %v8330_v31 = vand.u32 4294901760, %v3861_v33 }
 0x50a   : > { %3375 = vmatmul.f32.gmra.mxu2 %v3374_v24 }
 0x50b   : > { %3869 = vmatpush.msra.mxu0 %v8330_v31  ;;  %v8345_v62 = vsub.f32 %v3861_v33, %v8330_v31  ;;  %4184 = vmatpush.msra.mxu3 %v8330_v31  ;;  %v3983_v33 = vand.u32 4294901760, %v3982_v18 }
 0x50c   : > { %3508 = vmatmul.f32.gmra.mxu3 %v8273_v34 }
 0x50d   : > { %v9488_v52 = vand.u32 4294901760, %v8345_v62  ;;  %3871 = vmatpush.msra.mxu0 %v8347_v53  ;;  %4098 = vmatpush.msra.mxu2 %v8345_v62 }
 0x50e   : > { %4186 = vmatpush.msra.mxu3 %v8347_v53 }
 0x50f   : > { %v3976_v48 = vsub.f32 %v8345_v62, %v9488_v52  ;;  %4101 = vmatpush.msra.mxu2 %v8356_v40 }
 0x510   : > { %3217 = vmatmul.f32.gmra.mxu0 %v8068_v20  ;;  %3286 = vmatmul.f32.gmra.mxu1 %v8113_v50  ;;  %v3859_v20 = vld [vmem:[%s9310_s3 + $0x158] sm:$0xff] }
 0x511   : > { %v3977_v51 = vand.u32 4294901760, %v3976_v48  ;;  %v8366_v63 = vand.u32 4294901760, %v3859_v20  ;;  %v3856_v48 = vld [vmem:[%s9310_s3 + $0x140] sm:$0xff] }
 0x512   : > { %3383 = vmatmul.f32.gmra.mxu2 %v3382_v28  ;;  %v3994_v28 = vsub.f32 %v8390_v11, %v9480_v13  ;;  %v8415_v44 = vand.u32 4294901760, %v3856_v48 }
 0x513   : > { %3978 = vmatpush.msra.mxu1 %v3977_v51  ;;  %3873 = vmatpush.msra.mxu0 %v8366_v63  ;;  %v8378_v24 = vsub.f32 %v3859_v20, %v8366_v63 }
 0x514   : > { %3512 = vmatmul.f32.gmra.mxu3 %v8289_v46 }
 0x515   : > { %v2927_v3 = vpop.f32.mrf.mxu1  ;;  %4188 = vmatpush.msra.mxu3 %v8366_v63  ;;  %v9482_v58 = vand.u32 4294901760, %v8378_v24  ;;  %3875 = vmatpush.msra.mxu0 %v8380_v56 }
 0x516   : > { %4104 = vmatpush.msra.mxu2 %v8378_v24  ;;  %3984 = vmatpush.msra.mxu1 %v3983_v33 }
 0x517   : > { %v3988_v59 = vsub.f32 %v8378_v24, %v9482_v58  ;;  %4190 = vmatpush.msra.mxu3 %v8380_v56 }
 0x518   : > { %3221 = vmatmul.f32.gmra.mxu0 %v8113_v50  ;;  %3640 = vmatmul.f32.vlgmr.msrb.gmra.mxu1 %v3324_v2  ;;  %v3857_v50 = vld [vmem:[%s9310_s3 + $0x148] sm:$0xff] }
 0x519   : > { %v3989_v1 = vand.u32 4294901760, %v3988_v59  ;;  %v8401_v2 = vand.u32 4294901760, %v3857_v50  ;;  %4107 = vmatpush.msra.mxu2 %v8390_v11  ;;  %v3995_v59 = vand.u32 4294901760, %v3994_v28 }
 0x51a   : > { %3751 = vmatmul.f32.vlgmr.msrb.gmra.mxu2 %v8122_v6 }
 0x51b   : > { %3990 = vmatpush.msra.mxu1 %v3989_v1  ;;  %3877 = vmatpush.msra.mxu0 %v8401_v2  ;;  %v8413_v18 = vsub.f32 %v3857_v50, %v8401_v2  ;;  %v8425_v50 = vsub.f32 %v3856_v48, %v8415_v44 }
 0x51c   : > { %3816 = vmatmul.f32.vlgmr.msrb.gmra.mxu3 %v8122_v6 }
 0x51d   : > { %v2770_v20 = vpop.f32.mrf.mxu0  ;;  %v2931_v51 = vpop.f32.mrf.mxu1  ;;  %4192 = vmatpush.msra.mxu3 %v8401_v2  ;;  %v9481_v13 = vand.u32 4294901760, %v8413_v18  ;;  %3879 = vmatpush.msra.mxu0 %v8415_v44 }
 0x51e   : > { %v2928_v33 = vadd.f32 %v2927_v3, %v2770_v20  ;;  %v3009_v6 = vpop.f32.mrf.mxu2  ;;  %4110 = vmatpush.msra.mxu2 %v8413_v18  ;;  %3996 = vmatpush.msra.mxu1 %v3995_v59  ;;  %v9483_v20 = vand.u32 4294901760, %v8425_v50 }
 0x51f   : > { %v3083_v25 = vpop.f32.mrf.mxu3  ;;  %v4000_v3 = vsub.f32 %v8413_v18, %v9481_v13  ;;  %4194 = vmatpush.msra.mxu3 %v8415_v44 }
 0x520   : > { %v3010_v1 = vadd.f32 %v3009_v6, %v2928_v33  ;;  %3566 = vmatmul.f32.vlgmr.msrb.gmra.mxu0 %v8141_v15  ;;  %3646 = vmatmul.f32.gmra.mxu1 %v3332_v54  ;;  %v3855_v15 = vld [vmem:[%s9310_s3 + $0x138] sm:$0xff]  ;;  %v3854_v33 = vld [vmem:[%s9310_s3 + $0x130] sm:$0xff] }
 0x521   : > { %v4001_v54 = vand.u32 4294901760, %v4000_v3  ;;  %v8438_v48 = vand.u32 4294901760, %v3855_v15  ;;  %4113 = vmatpush.msra.mxu2 %v8425_v50  ;;  %v8452_v3 = vand.u32 4294901760, %v3854_v33 }
 0x522   : > { %v8431_v28 = vadd.f32 %v3083_v25, %v3010_v1  ;;  %3755 = vmatmul.f32.gmra.mxu2 %v8175_v43  ;;  %v4006_v25 = vsub.f32 %v8425_v50, %v9483_v20 }
 0x523   : > { %4002 = vmatpush.msra.mxu1 %v4001_v54  ;;  %3881 = vmatpush.msra.mxu0 %v8438_v48  ;;  %v8450_v1 = vsub.f32 %v3855_v15, %v8438_v48  ;;  %v8462_v15 = vsub.f32 %v3854_v33, %v8452_v3 }
 0x524   : > { %3820 = vmatmul.f32.gmra.mxu3 %v8175_v43  ;;  %v4007_v58 = vand.u32 4294901760, %v4006_v25 }
 0x525   : > { %v2778_v6 = vpop.f32.mrf.mxu0  ;;  %v2935_v59 = vpop.f32.mrf.mxu1  ;;  %4196 = vmatpush.msra.mxu3 %v8438_v48  ;;  %v9485_v0 = vand.u32 4294901760, %v8450_v1  ;;  %3883 = vmatpush.msra.mxu0 %v8452_v3 }
 0x526   : > { %v2932_v13 = vadd.f32 %v2931_v51, %v2778_v6  ;;  %v3014_v43 = vpop.f32.mrf.mxu2  ;;  %4116 = vmatpush.msra.mxu2 %v8450_v1  ;;  %4008 = vmatpush.msra.mxu1 %v4007_v58 }
 0x527   : > { %v3089_v20 = vpop.f32.mrf.mxu3  ;;  %v4012_v51 = vsub.f32 %v8450_v1, %v9485_v0  ;;  %4198 = vmatpush.msra.mxu3 %v8452_v3 }
 0x528   : > { %v3015_v54 = vadd.f32 %v3014_v43, %v2932_v13  ;;  %3571 = vmatmul.f32.gmra.mxu0 %v8189_v17  ;;  %3652 = vmatmul.f32.gmra.mxu1 %v3340_v14  ;;  %v9487_v13 = vand.u32 4294901760, %v8462_v15  ;;  %v3853_v17 = vld [vmem:[%s9310_s3 + $0x128] sm:$0xff] }
 0x529   : > { %v4013_v14 = vand.u32 4294901760, %v4012_v51  ;;  %v8475_v33 = vand.u32 4294901760, %v3853_v17  ;;  %4119 = vmatpush.msra.mxu2 %v8462_v15 }
 0x52a   : > { %v8468_v25 = vadd.f32 %v3089_v20, %v3015_v54  ;;  %3759 = vmatmul.f32.gmra.mxu2 %v8203_v47  ;;  %v4018_v58 = vsub.f32 %v8462_v15, %v9487_v13  ;;  %v3852_v20 = vld [vmem:[%s9310_s3 + $0x120] sm:$0xff] }
 0x52b   : > { %4014 = vmatpush.msra.mxu1 %v4013_v14  ;;  %3885 = vmatpush.msra.mxu0 %v8475_v33  ;;  %v8487_v54 = vsub.f32 %v3853_v17, %v8475_v33  ;;  %v8489_v51 = vand.u32 4294901760, %v3852_v20 }
 0x52c   : > { %3824 = vmatmul.f32.gmra.mxu3 %v8203_v47  ;;  %v4019_v57 = vand.u32 4294901760, %v4018_v58 }
 0x52d   : > { %v2786_v6 = vpop.f32.mrf.mxu0  ;;  %v2939_v43 = vpop.f32.mrf.mxu1  ;;  %4200 = vmatpush.msra.mxu3 %v8475_v33  ;;  %v9489_v52 = vand.u32 4294901760, %v8487_v54  ;;  %3887 = vmatpush.msra.mxu0 %v8489_v51  ;;  %v8499_v17 = vsub.f32 %v3852_v20, %v8489_v51 }
 0x52e   : > { %v2936_v0 = vadd.f32 %v2935_v59, %v2786_v6  ;;  %v3019_v47 = vpop.f32.mrf.mxu2  ;;  %4122 = vmatpush.msra.mxu2 %v8487_v54  ;;  %4020 = vmatpush.msra.mxu1 %v4019_v57 }
 0x52f   : > { %v3095_v13 = vpop.f32.mrf.mxu3  ;;  %v4024_v59 = vsub.f32 %v8487_v54, %v9489_v52  ;;  %4202 = vmatpush.msra.mxu3 %v8489_v51 }
 0x530   : > { %v3020_v14 = vadd.f32 %v3019_v47, %v2936_v0  ;;  %3576 = vmatmul.f32.gmra.mxu0 %v8217_v9  ;;  %3658 = vmatmul.f32.gmra.mxu1 %v3348_v27  ;;  %v9494_v0 = vand.u32 4294901760, %v8499_v17  ;;  %v3851_v9 = vld [vmem:[%s9310_s3 + $0x118] sm:$0xff]  ;;  %v3850_v27 = vld [vmem:[%s9310_s3 + $0x110] sm:$0xff] }
 0x531   : > { %v4025_v57 = vand.u32 4294901760, %v4024_v59  ;;  %v8515_v20 = vand.u32 4294901760, %v3851_v9  ;;  %4125 = vmatpush.msra.mxu2 %v8499_v17  ;;  %v8518_v6 = vand.u32 4294901760, %v3850_v27 }
 0x532   : > { %v8505_v58 = vadd.f32 %v3095_v13, %v3020_v14  ;;  %3763 = vmatmul.f32.gmra.mxu2 %v8226_v8  ;;  %v4030_v13 = vsub.f32 %v8499_v17, %v9494_v0 }
 0x533   : > { %4026 = vmatpush.msra.mxu1 %v4025_v57  ;;  %3889 = vmatpush.msra.mxu0 %v8515_v20  ;;  %v8526_v52 = vsub.f32 %v3851_v9, %v8515_v20  ;;  %v8529_v59 = vsub.f32 %v3850_v27, %v8518_v6  ;;  %v9729_v9 = vand.u32 4294901760, %v8251_v29 }
 0x534   : > { %3828 = vmatmul.f32.gmra.mxu3 %v8226_v8  ;;  %v4031_v16 = vand.u32 4294901760, %v4030_v13 }
 0x535   : > { %v2794_v47 = vpop.f32.mrf.mxu0  ;;  %v2943_v14 = vpop.f32.mrf.mxu1  ;;  %4204 = vmatpush.msra.mxu3 %v8515_v20  ;;  %v9496_v23 = vand.u32 4294901760, %v8526_v52  ;;  %v9495_v0 = vand.u32 4294901760, %v8529_v59  ;;  %4128 = vmatpush.msra.mxu2 %v8526_v52 }
 0x536   : > { %v2940_v39 = vadd.f32 %v2939_v43, %v2794_v47  ;;  %v3024_v26 = vpop.f32.mrf.mxu2  ;;  %3891 = vmatpush.msra.mxu0 %v8518_v6  ;;  %v3849_v43 = vld [vmem:[%s9310_s3 + $0x108] sm:$0xff]  ;;  %4032 = vmatpush.msra.mxu1 %v4031_v16  ;;  %v3848_v16 = vld [vmem:[%s9310_s3 + $0x100] sm:$0xff] }
 0x537   : > { %v3101_v8 = vpop.f32.mrf.mxu3  ;;  %v4036_v27 = vsub.f32 %v8526_v52, %v9496_v23  ;;  %v4042_v13 = vsub.f32 %v8529_v59, %v9495_v0  ;;  %v8548_v47 = vand.u32 4294901760, %v3849_v43  ;;  %4131 = vmatpush.msra.mxu2 %v8529_v59  ;;  %4206 = vmatpush.msra.mxu3 %v8518_v6  ;;  %v8561_v0 = vand.u32 4294901760, %v3848_v16 }
 0x538   : > { %v3025_v57 = vadd.f32 %v3024_v26, %v2940_v39  ;;  %3581 = vmatmul.f32.gmra.mxu0 %v8236_v30  ;;  %3664 = vmatmul.f32.gmra.mxu1 %v9729_v9 }
 0x539   : > { %v4037_v26 = vand.u32 4294901760, %v4036_v27  ;;  %v4043_v39 = vand.u32 4294901760, %v4042_v13  ;;  %v8559_v9 = vsub.f32 %v3849_v43, %v8548_v47  ;;  %3893 = vmatpush.msra.mxu0 %v8548_v47  ;;  %v8567_v37 = vsub.f32 %v3848_v16, %v8561_v0  ;;  %4208 = vmatpush.msra.mxu3 %v8548_v47 }
 0x53a   : > { %v8551_v30 = vadd.f32 %v3101_v8, %v3025_v57  ;;  %3767 = vmatmul.f32.gmra.mxu2 %v8243_v38 }
 0x53b   : > { %4038 = vmatpush.msra.mxu1 %v4037_v26  ;;  %v9498_v23 = vand.u32 4294901760, %v8559_v9  ;;  %4134 = vmatpush.msra.mxu2 %v8559_v9  ;;  %v4053_v26 = vand.u32 4294901760, %v8567_v37 }
 0x53c   : > { %3832 = vmatmul.f32.gmra.mxu3 %v8243_v38  ;;  %3895 = vmatpush.msra.mxu0 %v8561_v0 }
 0x53d   : > { %v2802_v8 = vpop.f32.mrf.mxu0  ;;  %v2947_v57 = vpop.f32.mrf.mxu1  ;;  %4044 = vmatpush.msra.mxu1 %v4043_v39  ;;  %v4048_v38 = vsub.f32 %v8559_v9, %v9498_v23  ;;  %4137 = vmatpush.msra.mxu2 %v8567_v37  ;;  %v4054_v5 = vsub.f32 %v8567_v37, %v4053_v26  ;;  %v9731_v39 = vand.u32 4294901760, %v8308_v49  ;;  %v9733_v49 = vand.u32 4294901760, %v8345_v62  ;;  %v9763_v37 = vld [vmem:[#allocation69_spill] sm:$0xff] }
 0x53e   : > { %v2944_v27 = vadd.f32 %v2943_v14, %v2802_v8  ;;  %v3029_v13 = vpop.f32.mrf.mxu2  ;;  %v9730_v14 = vand.u32 4294901760, %v8266_v45  ;;  %4210 = vmatpush.msra.mxu3 %v8561_v0  ;;  %v9737_v62 = vand.u32 4294901760, %v8378_v24  ;;  %v9741_v24 = vand.u32 4294901760, %v8413_v18 }
 0x53f   : > { %v3107_v43 = vpop.f32.mrf.mxu3  ;;  %v4049_v8 = vand.u32 4294901760, %v4048_v38  ;;  %4263 = vmatpush.msrb.mxu0 %v9731_v39  ;;  %4454 = vmatpush.msrb.mxu2 %v6658_v55  ;;  %v9746_v18 = vand.u32 4294901760, %v8450_v1 }
 0x540   : > { %v3030_v16 = vadd.f32 %v3029_v13, %v2944_v27  ;;  %3586 = vmatmul.f32.gmra.mxu0 %v8251_v29  ;;  %3670 = vmatmul.f32.gmra.mxu1 %v9730_v14  ;;  %v4055_v29 = vand.u32 4294901760, %v4054_v5  ;;  %v9732_v27 = vand.u32 4294901760, %v8320_v22  ;;  %v9734_v22 = vand.u32 4294901760, %v8356_v40  ;;  %v9735_v14 = vld [vmem:[#allocation32_spill] sm:$0xff] }
 0x541   : > { %4499 = vmatpush.msrb.mxu3 %v9659_v60  ;;  %4050 = vmatpush.msra.mxu1 %v4049_v8  ;;  %v9736_v8 = vand.u32 4294901760, %v8280_v36  ;;  %v9739_v40 = vand.u32 4294901760, %v8390_v11  ;;  %v9743_v11 = vld [vmem:[#allocation26_spill] sm:$0xff] }
 0x542   : > { %v8586_v23 = vadd.f32 %v3107_v43, %v3030_v16  ;;  %3771 = vmatmul.f32.gmra.mxu2 %v8258_v21  ;;  %4267 = vmatpush.msrb.mxu0 %v9732_v27  ;;  %v9810_v60 = vld [vmem:[#allocation82_spill] sm:$0xff] }
 0x543   : > { %4056 = vmatpush.msra.mxu1 %v4055_v29  ;;  %4456 = vmatpush.msrb.mxu2 %v6673_v61 }
 0x544   : > { %3836 = vmatmul.f32.gmra.mxu3 %v8258_v21  ;;  %4271 = vmatpush.msrb.mxu0 %v9733_v49 }
 0x545   : > { %v2810_v13 = vpop.f32.mrf.mxu0  ;;  %v2951_v38 = vpop.f32.mrf.mxu1  ;;  %4358 = vmatpush.msrb.mxu1 %v8294_v7  ;;  %4505 = vmatpush.msrb.mxu3 %v9735_v14 }
 0x546   : > { %v2948_v43 = vadd.f32 %v2947_v57, %v2810_v13  ;;  %v3034_v16 = vpop.f32.mrf.mxu2  ;;  %4275 = vmatpush.msrb.mxu0 %v9734_v22  ;;  %v9738_v57 = vld [vmem:[#allocation36_spill] sm:$0xff]  ;;  %v8620_v13 = vand.u32 4294901760, %v8099_v32 }
 0x547   : > { %v3113_v5 = vpop.f32.mrf.mxu3  ;;  %4360 = vmatpush.msrb.mxu1 %v8310_v42  ;;  %4511 = vmatpush.msrb.mxu3 %v9738_v57  ;;  %v9808_v57 = vld [vmem:[#allocation45_spill] sm:$0xff] }
 0x548   : > { %v3035_v21 = vadd.f32 %v3034_v16, %v2948_v43  ;;  %3591 = vmatmul.f32.gmra.mxu0 %v8266_v45  ;;  %3676 = vmatmul.f32.gmra.mxu1 %v9736_v8  ;;  %v9740_v45 = vld [vmem:[#allocation23_spill] sm:$0xff]  ;;  %v8648_v8 = vand.u32 4294901760, %v8103_v4 }
 0x549   : > { %4279 = vmatpush.msrb.mxu0 %v9737_v62  ;;  %4362 = vmatpush.msrb.mxu1 %v8330_v31  ;;  %v9742_v31 = vld [vmem:[#allocation40_spill] sm:$0xff]  ;;  %v9753_v62 = vand.u32 4294901760, %v8499_v17  ;;  %v9757_v17 = vld [vmem:[#allocation38_spill] sm:$0xff] }
 0x54a   : > { %v8607_v7 = vadd.f32 %v3113_v5, %v3035_v21  ;;  %3775 = vmatmul.f32.gmra.mxu2 %v8273_v34  ;;  %4517 = vmatpush.msrb.mxu3 %v9742_v31  ;;  %v9750_v5 = vand.u32 4294901760, %v8487_v54  ;;  %v9754_v54 = vand.u32 4294901760, %v8526_v52 }
 0x54b   : > { %4283 = vmatpush.msrb.mxu0 %v9739_v40  ;;  %4458 = vmatpush.msrb.mxu2 %v9740_v45 }
 0x54c   : > { %3840 = vmatmul.f32.gmra.mxu3 %v8273_v34  ;;  %4364 = vmatpush.msrb.mxu1 %v8347_v53  ;;  %v9744_v34 = vand.u32 4294901760, %v8425_v50  ;;  %v9745_v53 = vand.u32 4294901760, %v8301_v19  ;;  %v9747_v50 = vld [vmem:[#allocation47_spill] sm:$0xff] }
 0x54d   : > { %v2818_v39 = vpop.f32.mrf.mxu0  ;;  %v2955_v42 = vpop.f32.mrf.mxu1  ;;  %4287 = vmatpush.msrb.mxu0 %v9741_v24  ;;  %4460 = vmatpush.msrb.mxu2 %v9743_v11  ;;  %v9758_v24 = vand.u32 4294901760, %v8559_v9 }
 0x54e   : > { %v2952_v29 = vadd.f32 %v2951_v38, %v2818_v39  ;;  %v3039_v27 = vpop.f32.mrf.mxu2  ;;  %4366 = vmatpush.msrb.mxu1 %v8366_v63  ;;  %v3897_v63 = vsub.f32 %v8099_v32, %v8620_v13  ;;  %4523 = vmatpush.msrb.mxu3 %v9747_v50  ;;  %v9801_v50 = vld [vmem:[#allocation70_spill] sm:$0xff] }
 0x54f   : > { %v3119_v49 = vpop.f32.mrf.mxu3  ;;  %4291 = vmatpush.msrb.mxu0 %v9744_v34  ;;  %v9760_v34 = vld [vmem:[#allocation43_spill] sm:$0xff] }
 0x550   : > { %v3040_v43 = vadd.f32 %v3039_v27, %v2952_v29  ;;  %3596 = vmatmul.f32.gmra.mxu0 %v8280_v36  ;;  %3682 = vmatmul.f32.gmra.mxu1 %v9745_v53  ;;  %v9748_v36 = vand.u32 4294901760, %v8462_v15  ;;  %v3898_v21 = vand.u32 4294901760, %v3897_v63  ;;  %v9752_v15 = vld [vmem:[#allocation34_spill] sm:$0xff] }
 0x551   : > { %4368 = vmatpush.msrb.mxu1 %v8380_v56  ;;  %4295 = vmatpush.msrb.mxu0 %v9746_v18  ;;  %v9749_v56 = vld [vmem:[#allocation30_spill] sm:$0xff]  ;;  %v9762_v18 = vld [vmem:[#allocation21_spill] sm:$0xff] }
 0x552   : > { %v8633_v38 = vadd.f32 %v3119_v49, %v3040_v43  ;;  %3779 = vmatmul.f32.gmra.mxu2 %v8289_v46  ;;  %v3899_v39 = vsub.f32 %v3897_v63, %v3898_v21 }
 0x553   : > { %4370 = vmatpush.msrb.mxu1 %v8401_v2  ;;  %4299 = vmatpush.msrb.mxu0 %v9748_v36  ;;  %v9751_v2 = vld [vmem:[#allocation49_spill] sm:$0xff] }
 0x554   : > { %3844 = vmatmul.f32.gmra.mxu3 %v8289_v46  ;;  %4462 = vmatpush.msrb.mxu2 %v9749_v56  ;;  %v3900_v27 = vand.u32 4294901760, %v3899_v39  ;;  %v9772_v39 = vld [vmem:[#allocation81_spill] sm:$0xff] }
 0x555   : > { %v2826_v1 = vpop.f32.mrf.mxu0  ;;  %v3259_v16 = vpop.f32.mrf.mxu1  ;;  %4372 = vmatpush.msrb.mxu1 %v8415_v44  ;;  %4303 = vmatpush.msrb.mxu0 %v9750_v5  ;;  %v8702_v5 = vand.u32 4294901760, %v8126_v35 }
 0x556   : > { %v2956_v22 = vadd.f32 %v2955_v42, %v2826_v1  ;;  %v3044_v32 = vpop.f32.mrf.mxu2  ;;  %4529 = vmatpush.msrb.mxu3 %v9751_v2  ;;  %4464 = vmatpush.msrb.mxu2 %v9752_v15  ;;  %v9755_v42 = vld [vmem:[#allocation53_spill] sm:$0xff] }
 0x557   : > { %v3125_v46 = vpop.f32.mrf.mxu3  ;;  %4374 = vmatpush.msrb.mxu1 %v8438_v48  ;;  %4307 = vmatpush.msrb.mxu0 %v9753_v62  ;;  %v3905_v48 = vsub.f32 %v8103_v4, %v8648_v8  ;;  %v3921_v62 = vsub.f32 %v8126_v35, %v8702_v5 }
 0x558   : > { %v3045_v44 = vadd.f32 %v3044_v32, %v2956_v22  ;;  %3601 = vmatmul.f32.gmra.mxu0 %v8301_v19  ;;  %4058 = vmatmul.f32.vlgmr.msra.gmra.mxu1 %v8620_v13  ;;  %v9756_v19 = vand.u32 4294901760, %v8529_v59  ;;  %v9759_v59 = vld [vmem:[#allocation57_spill] sm:$0xff]  ;;  %v9767_v32 = vld [vmem:[#allocation74_spill] sm:$0xff] }
 0x559   : > { %4376 = vmatpush.msrb.mxu1 %v8452_v3  ;;  %4311 = vmatpush.msrb.mxu0 %v9754_v54  ;;  %v3906_v49 = vand.u32 4294901760, %v3905_v48  ;;  %v9771_v54 = vld [vmem:[#allocation52_spill] sm:$0xff] }
 0x55a   : > { %v8660_v40 = vadd.f32 %v3125_v46, %v3045_v44  ;;  %4140 = vmatmul.f32.vlgmr.msra.gmra.mxu2 %v3897_v63  ;;  %4535 = vmatpush.msrb.mxu3 %v9755_v42  ;;  %v9770_v44 = vld [vmem:[#allocation33_spill] sm:$0xff] }
 0x55b   : > { %4378 = vmatpush.msrb.mxu1 %v8475_v33  ;;  %4315 = vmatpush.msrb.mxu0 %v9756_v19  ;;  %v8676_v33 = vand.u32 4294901760, %v8107_v12  ;;  %v3907_v9 = vsub.f32 %v3905_v48, %v3906_v49  ;;  %v9796_v42 = vld [vmem:[#allocation29_spill] sm:$0xff] }
 0x55c   : > { %4214 = vmatmul.f32.vlgmr.msra.gmra.mxu3 %v3898_v21  ;;  %4466 = vmatpush.msrb.mxu2 %v9757_v17 }
 0x55d   : > { %v3194_v3 = vpop.f32.mrf.mxu0  ;;  %v3263_v52 = vpop.f32.mrf.mxu1  ;;  %4380 = vmatpush.msrb.mxu1 %v8489_v51  ;;  %4319 = vmatpush.msrb.mxu0 %v9758_v24  ;;  %v3913_v53 = vsub.f32 %v8107_v12, %v8676_v33  ;;  %v3908_v12 = vand.u32 4294901760, %v3907_v9  ;;  %v9775_v9 = vld [vmem:[#allocation39_spill] sm:$0xff] }
 0x55e   : > { %v3195_v29 = vadd.f32 %v3194_v3, %v8431_v28  ;;  %v8673_v4 = vpop.f32.mrf.mxu2  ;;  %4541 = vmatpush.msrb.mxu3 %v9759_v59  ;;  %4468 = vmatpush.msrb.mxu2 %v9760_v34  ;;  %v9761_v28 = vld [vmem:[#allocation61_spill] sm:$0xff]  ;;  %v9773_v3 = vld [vmem:[#allocation56_spill] sm:$0xff] }
 0x55f   : > { %v8680_v43 = vpop.f32.mrf.mxu3  ;;  %4382 = vmatpush.msrb.mxu1 %v8515_v20  ;;  %4323 = vmatpush.msrb.mxu0 %v4053_v26  ;;  %v9764_v20 = vld [vmem:[#allocation24_spill] sm:$0xff] }
 0x560   : > { %v8685_v51 = vadd.f32 %v3259_v16, %v3195_v29  ;;  %3901 = vmatmul.f32.vlgmr.msra.gmra.mxu0 %v3900_v27  ;;  %4062 = vmatmul.f32.gmra.mxu1 %v8648_v8  ;;  %v3914_v16 = vand.u32 4294901760, %v3913_v53  ;;  %v3922_v27 = vand.u32 4294901760, %v3921_v62 }
 0x561   : > { %4384 = vmatpush.msrb.mxu1 %v8518_v6  ;;  %4547 = vmatpush.msrb.mxu3 %v9761_v28  ;;  %v9765_v6 = vld [vmem:[#allocation72_spill] sm:$0xff]  ;;  %v9795_v28 = vld [vmem:[#allocation18_spill] sm:$0xff] }
 0x562   : > { %4145 = vmatmul.f32.gmra.mxu2 %v3905_v48  ;;  %4691 = vmatpush.msra.mxu0 %v9762_v18  ;;  %v3915_v46 = vsub.f32 %v3913_v53, %v3914_v16 }
 0x563   : > { %4386 = vmatpush.msrb.mxu1 %v8548_v47  ;;  %4553 = vmatpush.msrb.mxu3 %v9763_v37  ;;  %v9766_v47 = vld [vmem:[#allocation46_spill] sm:$0xff]  ;;  %v9794_v37 = vld [vmem:[#allocation17_spill] sm:$0xff] }
 0x564   : > { %4220 = vmatmul.f32.gmra.mxu3 %v3906_v49  ;;  %4695 = vmatpush.msra.mxu0 %v9764_v20  ;;  %v3916_v35 = vand.u32 4294901760, %v3915_v46  ;;  %v8727_v49 = vand.u32 4294901760, %v8146_v10  ;;  %v9778_v46 = vld [vmem:[#allocation41_spill] sm:$0xff]  ;;  %v2699_v59 = vmul.f32 %v9795_v28, %v9794_v37 }
 0x565   : > { %v3198_v26 = vpop.f32.mrf.mxu0  ;;  %v3267_v63 = vpop.f32.mrf.mxu1  ;;  %4388 = vmatpush.msrb.mxu1 %v8561_v0  ;;  %4559 = vmatpush.msrb.mxu3 %v9765_v6  ;;  %v9768_v0 = vld [vmem:[#allocation28_spill] sm:$0xff]  ;;  %v9783_v20 = vld [vmem:[#allocation73_spill] sm:$0xff] }
 0x566   : > { %v3199_v36 = vadd.f32 %v3198_v26, %v8468_v25  ;;  %v8699_v1 = vpop.f32.mrf.mxu2  ;;  %4470 = vmatpush.msrb.mxu2 %v9766_v47  ;;  %4699 = vmatpush.msra.mxu0 %v9768_v0  ;;  %v9769_v25 = vld [vmem:[#allocation78_spill] sm:$0xff]  ;;  %v9782_v0 = vld [vmem:[#allocation44_spill] sm:$0xff]  ;;  %v8803_v2 = vand.u32 4294901760, %v2699_v59 }
 0x567   : > { %4758 = vmatpush.msra.mxu1 %v6658_v55  ;;  %v8706_v22 = vpop.f32.mrf.mxu3  ;;  %4565 = vmatpush.msrb.mxu3 %v9767_v32  ;;  %v9776_v26 = vld [vmem:[#allocation58_spill] sm:$0xff] }
 0x568   : > { %v8710_v21 = vadd.f32 %v3263_v52, %v3199_v36  ;;  %3909 = vmatmul.f32.gmra.mxu0 %v3908_v12  ;;  %4066 = vmatmul.f32.gmra.mxu1 %v8676_v33  ;;  %v9774_v52 = vld [vmem:[#allocation83_spill] sm:$0xff]  ;;  %v9777_v36 = vld [vmem:[#allocation84_spill] sm:$0xff]  ;;  %v9790_v32 = vld [vmem:[#allocation22_spill] sm:$0xff]  ;;  %9800 = vst [vmem:[#allocation34_spill] sm:$0xff] %v8803_v2 }
 0x569   : > { %4760 = vmatpush.msra.mxu1 %v6673_v61  ;;  %4571 = vmatpush.msrb.mxu3 %v9769_v25 }
 0x56a   : > { %4150 = vmatmul.f32.gmra.mxu2 %v3913_v53  ;;  %4703 = vmatpush.msra.mxu0 %v9770_v44 }
 0x56b   : > { %4472 = vmatpush.msrb.mxu2 %v9771_v54  ;;  %4577 = vmatpush.msrb.mxu3 %v9772_v39  ;;  %v9788_v39 = vld [vmem:[#allocation16_spill] sm:$0xff] }
 0x56c   : > { %4226 = vmatmul.f32.gmra.mxu3 %v3914_v16  ;;  %4762 = vmatpush.msra.mxu1 %v9740_v45  ;;  %v3929_v16 = vsub.f32 %v8146_v10, %v8727_v49  ;;  %v8777_v25 = vand.u32 4294901760, %v9788_v39 }
 0x56d   : > { %v3202_v48 = vpop.f32.mrf.mxu0  ;;  %v3271_v19 = vpop.f32.mrf.mxu1  ;;  %4474 = vmatpush.msrb.mxu2 %v9773_v3  ;;  %4583 = vmatpush.msrb.mxu3 %v9774_v52 }
 0x56e   : > { %v3203_v24 = vadd.f32 %v3202_v48, %v8505_v58  ;;  %v8724_v29 = vpop.f32.mrf.mxu2  ;;  %4764 = vmatpush.msra.mxu1 %v9743_v11  ;;  %4707 = vmatpush.msra.mxu0 %v9775_v9  ;;  %v3923_v58 = vsub.f32 %v3921_v62, %v3922_v27  ;;  %v9779_v48 = vld [vmem:[#allocation63_spill] sm:$0xff]  ;;  %v3930_v44 = vand.u32 4294901760, %v3929_v16  ;;  %9789 = vst [vmem:[#allocation26_spill] sm:$0xff] %v8777_v25 }
 0x56f   : > { %v8731_v53 = vpop.f32.mrf.mxu3  ;;  %4476 = vmatpush.msrb.mxu2 %v9776_v26  ;;  %4589 = vmatpush.msrb.mxu3 %v9777_v36  ;;  %v9786_v36 = vld [vmem:[#allocation54_spill] sm:$0xff] }
 0x570   : > { %v8735_v12 = vadd.f32 %v3267_v63, %v3203_v24  ;;  %3917 = vmatmul.f32.gmra.mxu0 %v3916_v35  ;;  %4070 = vmatmul.f32.gmra.mxu1 %v8702_v5  ;;  %v9780_v35 = vld [vmem:[#allocation68_spill] sm:$0xff]  ;;  %v3924_v10 = vand.u32 4294901760, %v3923_v58  ;;  %v3931_v58 = vsub.f32 %v3929_v16, %v3930_v44 }
 0x571   : > { %4650 = vmatpush.msra.mxu3 %v6658_v55  ;;  %4766 = vmatpush.msra.mxu1 %v9749_v56 }
 0x572   : > { %4155 = vmatmul.f32.gmra.mxu2 %v3921_v62  ;;  %4711 = vmatpush.msra.mxu0 %v9778_v46  ;;  %v8752_v46 = vand.u32 4294901760, %v8158_v41 }
 0x573   : > { %4478 = vmatpush.msrb.mxu2 %v9779_v48  ;;  %4652 = vmatpush.msra.mxu3 %v6673_v61 }
 0x574   : > { %4232 = vmatmul.f32.gmra.mxu3 %v3922_v27  ;;  %4768 = vmatpush.msra.mxu1 %v9752_v15  ;;  %9781 = vst [vmem:[#allocation23_spill] sm:$0xff] %v8752_v46 }
 0x575   : > { %v3206_v63 = vpop.f32.mrf.mxu0  ;;  %v3275_v24 = vpop.f32.mrf.mxu1  ;;  %4480 = vmatpush.msrb.mxu2 %v9780_v35  ;;  %4654 = vmatpush.msra.mxu3 %v9740_v45 }
 0x576   : > { %v3207_v62 = vadd.f32 %v3206_v63, %v8551_v30  ;;  %v8749_v9 = vpop.f32.mrf.mxu2  ;;  %4715 = vmatpush.msra.mxu0 %v9782_v0  ;;  %4770 = vmatpush.msra.mxu1 %v9757_v17  ;;  %v9784_v30 = vld [vmem:[#allocation50_spill] sm:$0xff]  ;;  %v3937_v63 = vsub.f32 %v8158_v41, %v8752_v46  ;;  %v9785_v0 = vld [vmem:[#allocation76_spill] sm:$0xff]  ;;  %v3932_v41 = vand.u32 4294901760, %v3931_v58 }
 0x577   : > { %v8756_v27 = vpop.f32.mrf.mxu3  ;;  %4482 = vmatpush.msrb.mxu2 %v9783_v20  ;;  %4656 = vmatpush.msra.mxu3 %v9743_v11  ;;  %v9793_v58 = vld [vmem:[#allocation64_spill] sm:$0xff] }
 0x578   : > { %v8760_v18 = vadd.f32 %v3271_v19, %v3207_v62  ;;  %3925 = vmatmul.f32.gmra.mxu0 %v3924_v10  ;;  %4074 = vmatmul.f32.gmra.mxu1 %v8727_v49  ;;  %v9787_v19 = vld [vmem:[#allocation20_spill] sm:$0xff]  ;;  %v3938_v52 = vand.u32 4294901760, %v3937_v63 }
 0x579   : > { %4719 = vmatpush.msra.mxu0 %v9784_v30  ;;  %4772 = vmatpush.msra.mxu1 %v9760_v34 }
 0x57a   : > { %4160 = vmatmul.f32.gmra.mxu2 %v3929_v16  ;;  %4658 = vmatpush.msra.mxu3 %v9749_v56 }
 0x57b   : > { %4484 = vmatpush.msrb.mxu2 %v9785_v0  ;;  %4723 = vmatpush.msra.mxu0 %v9786_v36 }
 0x57c   : > { %4238 = vmatmul.f32.gmra.mxu3 %v3930_v44  ;;  %4774 = vmatpush.msra.mxu1 %v9766_v47  ;;  %v9791_v44 = vld [vmem:[#allocation59_spill] sm:$0xff] }
 0x57d   : > { %4597 = vmatpush.msra.mxu2 %v9787_v19  ;;  %v3210_v62 = vpop.f32.mrf.mxu0  ;;  %v3279_v10 = vpop.f32.mrf.mxu1  ;;  %4660 = vmatpush.msra.mxu3 %v9752_v15 }
 0x57e   : > { %v3211_v16 = vadd.f32 %v3210_v62, %v8586_v23  ;;  %v8774_v30 = vpop.f32.mrf.mxu2  ;;  %4727 = vmatpush.msra.mxu0 %v9791_v44  ;;  %4776 = vmatpush.msra.mxu1 %v9771_v54  ;;  %v9792_v23 = vld [vmem:[#allocation25_spill] sm:$0xff]  ;;  %v3939_v62 = vsub.f32 %v3937_v63, %v3938_v52  ;;  %v3945_v44 = vsub.f32 %v9788_v39, %v8777_v25 }
 0x57f   : > { %4600 = vmatpush.msra.mxu2 %v9790_v32  ;;  %v8781_v36 = vpop.f32.mrf.mxu3  ;;  %4662 = vmatpush.msra.mxu3 %v9757_v17 }
 0x580   : > { %v8785_v6 = vadd.f32 %v3275_v24, %v3211_v16  ;;  %3933 = vmatmul.f32.gmra.mxu0 %v3932_v41  ;;  %4078 = vmatmul.f32.gmra.mxu1 %v8752_v46  ;;  %v9797_v24 = vld [vmem:[#allocation66_spill] sm:$0xff]  ;;  %v3940_v28 = vand.u32 4294901760, %v3939_v62  ;;  %v3946_v37 = vand.u32 4294901760, %v3945_v44 }
 0x581   : > { %4603 = vmatpush.msra.mxu2 %v9792_v23  ;;  %4731 = vmatpush.msra.mxu0 %v9793_v58 }
 0x582   : > { %4165 = vmatmul.f32.gmra.mxu2 %v3937_v63  ;;  %4778 = vmatpush.msra.mxu1 %v9773_v3  ;;  %v9798_v63 = vld [vmem:[#allocation35_spill] sm:$0xff]  ;;  %v3947_v62 = vsub.f32 %v3945_v44, %v3946_v37 }
 0x583   : > { %4606 = vmatpush.msra.mxu2 %v9796_v42  ;;  %4664 = vmatpush.msra.mxu3 %v9760_v34 }
 0x584   : > { %4244 = vmatmul.f32.gmra.mxu3 %v3938_v52  ;;  %4735 = vmatpush.msra.mxu0 %v9797_v24  ;;  %v9803_v24 = vld [vmem:[#allocation37_spill] sm:$0xff] }
 0x585   : > { %v3214_v16 = vpop.f32.mrf.mxu0  ;;  %v3283_v41 = vpop.f32.mrf.mxu1  ;;  %4780 = vmatpush.msra.mxu1 %v9776_v26  ;;  %4609 = vmatpush.msra.mxu2 %v9798_v63 }
 0x586   : > { %v3215_v39 = vadd.f32 %v3214_v16, %v8607_v7  ;;  %v8801_v58 = vpop.f32.mrf.mxu2  ;;  %4666 = vmatpush.msra.mxu3 %v9766_v47  ;;  %4739 = vmatpush.msra.mxu0 %v9801_v50  ;;  %v9805_v7 = vld [vmem:[#allocation75_spill] sm:$0xff]  ;;  %v3953_v16 = vsub.f32 %v2699_v59, %v8803_v2  ;;  %v9806_v50 = vld [vmem:[#allocation42_spill] sm:$0xff]  ;;  %v3948_v59 = vand.u32 4294901760, %v3947_v62 }
 0x587   : > { %9799 = vst [vmem:[#allocation30_spill] sm:$0xff] %v8801_v58  ;;  %v8807_v52 = vpop.f32.mrf.mxu3  ;;  %4782 = vmatpush.msra.mxu1 %v9779_v48  ;;  %4612 = vmatpush.msra.mxu2 %v9803_v24 }
 0x588   : > { %9802 = vst [vmem:[#allocation38_spill] sm:$0xff] %v8807_v52  ;;  %v8811_v31 = vadd.f32 %v3279_v10, %v3215_v39  ;;  %3941 = vmatmul.f32.gmra.mxu0 %v3940_v28  ;;  %4082 = vmatmul.f32.gmra.mxu1 %v8777_v25  ;;  %v9807_v10 = vld [vmem:[#allocation80_spill] sm:$0xff]  ;;  %v3954_v14 = vand.u32 4294901760, %v3953_v16 }
 0x589   : > { %4668 = vmatpush.msra.mxu3 %v9771_v54  ;;  %4743 = vmatpush.msra.mxu0 %v9805_v7 }
 0x58a   : > { %9804 = vst [vmem:[#allocation43_spill] sm:$0xff] %v8811_v31  ;;  %4170 = vmatmul.f32.gmra.mxu2 %v3945_v44  ;;  %4784 = vmatpush.msra.mxu1 %v9780_v35  ;;  %v3955_v62 = vsub.f32 %v3953_v16, %v3954_v14 }
 0x58b   : > { %4615 = vmatpush.msra.mxu2 %v9806_v50  ;;  %4670 = vmatpush.msra.mxu3 %v9773_v3 }
 0x58c   : > { %4250 = vmatmul.f32.gmra.mxu3 %v3946_v37  ;;  %4747 = vmatpush.msra.mxu0 %v9807_v10  ;;  %v9812_v37 = vld [vmem:[#allocation51_spill] sm:$0xff] }
 0x58d   : > { %v3218_v39 = vpop.f32.mrf.mxu0  ;;  %v3287_v28 = vpop.f32.mrf.mxu1  ;;  %4786 = vmatpush.msra.mxu1 %v9783_v20  ;;  %4618 = vmatpush.msra.mxu2 %v9808_v57 }
 0x58e   : > { %v3219_v7 = vadd.f32 %v3218_v39, %v8633_v38  ;;  %v8824_v44 = vpop.f32.mrf.mxu2  ;;  %4672 = vmatpush.msra.mxu3 %v9776_v26  ;;  %4751 = vmatpush.msra.mxu0 %v9810_v60  ;;  %v9814_v38 = vld [vmem:[#allocation55_spill] sm:$0xff]  ;;  %v9815_v39 = vld [vmem:[#allocation60_spill] sm:$0xff] }
 0x58f   : > { %9809 = vst [vmem:[#allocation46_spill] sm:$0xff] %v8824_v44  ;;  %v8828_v25 = vpop.f32.mrf.mxu3  ;;  %4788 = vmatpush.msra.mxu1 %v9785_v0  ;;  %4621 = vmatpush.msra.mxu2 %v9812_v37 }
 0x590   : > { %9811 = vst [vmem:[#allocation52_spill] sm:$0xff] %v8828_v25  ;;  %v8832_v10 = vadd.f32 %v3283_v41, %v3219_v7  ;;  %3949 = vmatmul.f32.gmra.mxu0 %v3948_v59  ;;  %4086 = vmatmul.f32.gmra.mxu1 %v8803_v2  ;;  %v9816_v41 = vld [vmem:[#allocation62_spill] sm:$0xff]  ;;  %v3956_v2 = vand.u32 4294901760, %v3955_v62 }
 0x591   : > { %4674 = vmatpush.msra.mxu3 %v9779_v48  ;;  %4624 = vmatpush.msra.mxu2 %v9814_v38 }
 0x592   : > { %9813 = vst [vmem:[#allocation56_spill] sm:$0xff] %v8832_v10  ;;  %4175 = vmatmul.f32.gmra.mxu2 %v3953_v16  ;;  %v9817_v10 = vld [vmem:[#allocation67_spill] sm:$0xff]  ;;  %v3329_v16 = vadd.f32 %v8673_v4, %v8685_v51 }
 0x593   : > { %4676 = vmatpush.msra.mxu3 %v9780_v35  ;;  %4627 = vmatpush.msra.mxu2 %v9815_v39  ;;  %v9820_v4 = vld [vmem:[#allocation79_spill] sm:$0xff] }
 0x594   : > { %4256 = vmatmul.f32.gmra.mxu3 %v3954_v14  ;;  %v9818_v14 = vld [vmem:[#allocation71_spill] sm:$0xff] }
 0x595   : > { %v3222_v60 = vpop.f32.mrf.mxu0  ;;  %v3641_v25 = vpop.f32.mrf.mxu1  ;;  %4678 = vmatpush.msra.mxu3 %v9783_v20  ;;  %4630 = vmatpush.msra.mxu2 %v9816_v41 }
 0x596   : > { %v3223_v7 = vadd.f32 %v3222_v60, %v8660_v40  ;;  %v3384_v59 = vpop.f32.mrf.mxu2  ;;  %v9819_v60 = vld [vmem:[#allocation77_spill] sm:$0xff]  ;;  %v3486_v40 = vadd.f32 %v8680_v43, %v3329_v16 }
 0x597   : > { %v3513_v44 = vpop.f32.mrf.mxu3  ;;  %4680 = vmatpush.msra.mxu3 %v9785_v0  ;;  %4633 = vmatpush.msra.mxu2 %v9817_v10 }
 0x598   : > { %v3288_v52 = vadd.f32 %v3287_v28, %v3223_v7  ;;  %3957 = vmatmul.f32.gmra.mxu0 %v3956_v2  ;;  %4390 = vmatmul.f32.vlgmr.msrb.gmra.mxu1 %v8620_v13 }
 0x599   : > { %4636 = vmatpush.msra.mxu2 %v9818_v14  ;;  %5170 = vmatpush.msrb.mxu1 %v6658_v55 }
 0x59a   : > { %v3385_v46 = vadd.f32 %v3384_v59, %v3288_v52  ;;  %v3337_v52 = vadd.f32 %v8699_v1, %v8710_v21 }
 0x59b   : > { %4639 = vmatpush.msra.mxu2 %v9819_v60  ;;  %5172 = vmatpush.msrb.mxu1 %v6673_v61 }
 0x59c   : > { %v8852_v62 = vadd.f32 %v3513_v44, %v3385_v46  ;;  %v3490_v46 = vadd.f32 %v8706_v22, %v3337_v52  ;;  %v9822_v52 = vld [vmem:[#allocation30_spill] sm:$0xff] }
 0x59d   : > { %v3567_v58 = vpop.f32.mrf.mxu0  ;;  %v3647_v31 = vpop.f32.mrf.mxu1  ;;  %4642 = vmatpush.msra.mxu2 %v9820_v4  ;;  %5174 = vmatpush.msrb.mxu1 %v9740_v45 }
 0x59e   : > { %v3568_v2 = vadd.f32 %v3567_v58, %v3486_v40  ;;  %v3752_v51 = vpop.f32.mrf.mxu2 }
 0x59f   : > { %v3817_v28 = vpop.f32.mrf.mxu3  ;;  %5176 = vmatpush.msrb.mxu1 %v9743_v11 }
 0x5a0   : > { %v3642_v7 = vadd.f32 %v3641_v25, %v3568_v2  ;;  %4325 = vmatmul.f32.vlgmr.msrb.gmra.mxu0 %v8620_v13  ;;  %4394 = vmatmul.f32.gmra.mxu1 %v8648_v8 }
 0x5a1   : > { %5117 = vmatpush.msrb.mxu0 %v9787_v19  ;;  %5178 = vmatpush.msrb.mxu1 %v9749_v56 }
 0x5a2   : > { %v3753_v43 = vadd.f32 %v3752_v51, %v3642_v7 }
 0x5a3   : > { %5120 = vmatpush.msrb.mxu0 %v9790_v32  ;;  %5180 = vmatpush.msrb.mxu1 %v9752_v15  ;;  %v3345_v32 = vadd.f32 %v8724_v29, %v8735_v12 }
 0x5a4   : > { %v8866_v58 = vadd.f32 %v3817_v28, %v3753_v43  ;;  %v9824_v43 = vld [vmem:[#allocation38_spill] sm:$0xff] }
 0x5a5   : > { %v3572_v44 = vpop.f32.mrf.mxu0  ;;  %v3653_v1 = vpop.f32.mrf.mxu1  ;;  %5123 = vmatpush.msrb.mxu0 %v9792_v23  ;;  %5182 = vmatpush.msrb.mxu1 %v9757_v17 }
 0x5a6   : > { %v3573_v13 = vadd.f32 %v3572_v44, %v3490_v46  ;;  %v3756_v21 = vpop.f32.mrf.mxu2 }
 0x5a7   : > { %v3821_v25 = vpop.f32.mrf.mxu3  ;;  %5126 = vmatpush.msrb.mxu0 %v9796_v42  ;;  %5184 = vmatpush.msrb.mxu1 %v9760_v34  ;;  %v3494_v42 = vadd.f32 %v8731_v53, %v3345_v32  ;;  %v9825_v32 = vld [vmem:[#allocation56_spill] sm:$0xff] }
 0x5a8   : > { %v3648_v19 = vadd.f32 %v3647_v31, %v3573_v13  ;;  %4329 = vmatmul.f32.gmra.mxu0 %v8648_v8  ;;  %4398 = vmatmul.f32.gmra.mxu1 %v8676_v33 }
 0x5a9   : > { %5129 = vmatpush.msrb.mxu0 %v9798_v63  ;;  %5186 = vmatpush.msrb.mxu1 %v9766_v47 }
 0x5aa   : > { %v3757_v22 = vadd.f32 %v3756_v21, %v3648_v19 }
 0x5ab   : > { %5132 = vmatpush.msrb.mxu0 %v9803_v24  ;;  %5188 = vmatpush.msrb.mxu1 %v9771_v54  ;;  %v3353_v24 = vadd.f32 %v8749_v9, %v8760_v18 }
 0x5ac   : > { %v8881_v23 = vadd.f32 %v3821_v25, %v3757_v22 }
 0x5ad   : > { %v3577_v59 = vpop.f32.mrf.mxu0  ;;  %v3659_v29 = vpop.f32.mrf.mxu1  ;;  %5135 = vmatpush.msrb.mxu0 %v9806_v50  ;;  %5190 = vmatpush.msrb.mxu1 %v9773_v3 }
 0x5ae   : > { %v3578_v31 = vadd.f32 %v3577_v59, %v3494_v42  ;;  %v3760_v8 = vpop.f32.mrf.mxu2  ;;  %v9827_v42 = vld [vmem:[#allocation26_spill] sm:$0xff]  ;;  %v9828_v59 = vld [vmem:[#allocation52_spill] sm:$0xff] }
 0x5af   : > { %v3825_v12 = vpop.f32.mrf.mxu3  ;;  %5138 = vmatpush.msrb.mxu0 %v9808_v57  ;;  %5192 = vmatpush.msrb.mxu1 %v9776_v26  ;;  %v3498_v57 = vadd.f32 %v8756_v27, %v3353_v24 }
 0x5b0   : > { %v3654_v63 = vadd.f32 %v3653_v1, %v3578_v31  ;;  %4333 = vmatmul.f32.gmra.mxu0 %v8676_v33  ;;  %4402 = vmatmul.f32.gmra.mxu1 %v8702_v5 }
 0x5b1   : > { %5141 = vmatpush.msrb.mxu0 %v9812_v37  ;;  %5194 = vmatpush.msrb.mxu1 %v9779_v48 }
 0x5b2   : > { %v3761_v50 = vadd.f32 %v3760_v8, %v3654_v63 }
 0x5b3   : > { %5144 = vmatpush.msrb.mxu0 %v9814_v38  ;;  %5196 = vmatpush.msrb.mxu1 %v9780_v35  ;;  %v3361_v38 = vadd.f32 %v8774_v30, %v8785_v6 }
 0x5b4   : > { %v8896_v53 = vadd.f32 %v3825_v12, %v3761_v50 }
 0x5b5   : > { %v3582_v16 = vpop.f32.mrf.mxu0  ;;  %v3665_v18 = vpop.f32.mrf.mxu1  ;;  %5147 = vmatpush.msrb.mxu0 %v9815_v39  ;;  %5198 = vmatpush.msrb.mxu1 %v9783_v20  ;;  %v3502_v39 = vadd.f32 %v8781_v36, %v3361_v38 }
 0x5b6   : > { %v3583_v33 = vadd.f32 %v3582_v16, %v3498_v57  ;;  %v3764_v9 = vpop.f32.mrf.mxu2  ;;  %v9829_v57 = vld [vmem:[#allocation34_spill] sm:$0xff] }
 0x5b7   : > { %v3829_v37 = vpop.f32.mrf.mxu3  ;;  %5150 = vmatpush.msrb.mxu0 %v9816_v41  ;;  %5200 = vmatpush.msrb.mxu1 %v9785_v0 }
 0x5b8   : > { %v3660_v40 = vadd.f32 %v3659_v29, %v3583_v33  ;;  %4337 = vmatmul.f32.gmra.mxu0 %v8702_v5  ;;  %4406 = vmatmul.f32.gmra.mxu1 %v8727_v49  ;;  %v9821_v5 = vld [vmem:[#allocation43_spill] sm:$0xff] }
 0x5b9   : > { %5153 = vmatpush.msrb.mxu0 %v9817_v10  ;;  %v3369_v7 = vadd.f32 %v9822_v52, %v9821_v5 }
 0x5ba   : > { %v3765_v27 = vadd.f32 %v3764_v9, %v3660_v40 }
 0x5bb   : > { %5156 = vmatpush.msrb.mxu0 %v9818_v14  ;;  %v9823_v14 = vld [vmem:[#allocation23_spill] sm:$0xff]  ;;  %v3506_v46 = vadd.f32 %v9824_v43, %v3369_v7 }
 0x5bc   : > { %v8909_v2 = vadd.f32 %v3829_v37, %v3765_v27 }
 0x5bd   : > { %v3587_v41 = vpop.f32.mrf.mxu0  ;;  %v3671_v51 = vpop.f32.mrf.mxu1  ;;  %5159 = vmatpush.msrb.mxu0 %v9819_v60 }
 0x5be   : > { %v3588_v28 = vadd.f32 %v3587_v41, %v3502_v39  ;;  %v3768_v6 = vpop.f32.mrf.mxu2 }
 0x5bf   : > { %v3833_v30 = vpop.f32.mrf.mxu3  ;;  %5162 = vmatpush.msrb.mxu0 %v9820_v4  ;;  %v9826_v4 = vld [vmem:[#allocation46_spill] sm:$0xff] }
 0x5c0   : > { %v3666_v10 = vadd.f32 %v3665_v18, %v3588_v28  ;;  %4341 = vmatmul.f32.gmra.mxu0 %v8727_v49  ;;  %4410 = vmatmul.f32.gmra.mxu1 %v9823_v14  ;;  %v3377_v19 = vadd.f32 %v9826_v4, %v9825_v32 }
 0x5c2   : > { %v3769_v36 = vadd.f32 %v3768_v6, %v3666_v10  ;;  %v3510_v29 = vadd.f32 %v9828_v59, %v3377_v19 }
 0x5c4   : > { %v8918_v44 = vadd.f32 %v3833_v30, %v3769_v36 }
 0x5c5   : > { %v3592_v1 = vpop.f32.mrf.mxu0  ;;  %v3677_v60 = vpop.f32.mrf.mxu1 }
 0x5c6   : > { %v3593_v13 = vadd.f32 %v3592_v1, %v3506_v46  ;;  %v3772_v21 = vpop.f32.mrf.mxu2 }
 0x5c7   : > { %v3837_v25 = vpop.f32.mrf.mxu3 }
 0x5c8   : > { %v3672_v22 = vadd.f32 %v3671_v51, %v3593_v13  ;;  %4345 = vmatmul.f32.gmra.mxu0 %v9823_v14  ;;  %4414 = vmatmul.f32.gmra.mxu1 %v9827_v42 }
 0x5ca   : > { %v3773_v49 = vadd.f32 %v3772_v21, %v3672_v22 }
 0x5cc   : > { %v8925_v31 = vadd.f32 %v3837_v25, %v3773_v49 }
 0x5cd   : > { %v3597_v8 = vpop.f32.mrf.mxu0  ;;  %v3683_v12 = vpop.f32.mrf.mxu1 }
 0x5ce   : > { %v3598_v24 = vadd.f32 %v3597_v8, %v3510_v29  ;;  %v3776_v63 = vpop.f32.mrf.mxu2 }
 0x5cf   : > { %v3841_v16 = vpop.f32.mrf.mxu3 }
 0x5d0   : > { %v3678_v50 = vadd.f32 %v3677_v60, %v3598_v24  ;;  %4349 = vmatmul.f32.gmra.mxu0 %v9827_v42  ;;  %4418 = vmatmul.f32.gmra.mxu1 %v9829_v57 }
 0x5d2   : > { %v3777_v18 = vadd.f32 %v3776_v63, %v3678_v50 }
 0x5d4   : > { %v8929_v33 = vadd.f32 %v3841_v16, %v3777_v18 }
 0x5d5   : > { %v3602_v9 = vpop.f32.mrf.mxu0  ;;  %v4059_v37 = vpop.f32.mrf.mxu1 }
 0x5d6   : > { %v3603_v38 = vadd.f32 %v3602_v9, %v8852_v62  ;;  %v3780_v27 = vpop.f32.mrf.mxu2 }
 0x5d7   : > { %v3845_v41 = vpop.f32.mrf.mxu3 }
 0x5d8   : > { %v3684_v40 = vadd.f32 %v3683_v12, %v3603_v38  ;;  %4353 = vmatmul.f32.gmra.mxu0 %v9829_v57 }
 0x5da   : > { %v3781_v39 = vadd.f32 %v3780_v27, %v3684_v40 }
 0x5dc   : > { %v8933_v51 = vadd.f32 %v3845_v41, %v3781_v39 }
 0x5dd   : > { %v3902_v28 = vpop.f32.mrf.mxu0  ;;  %v4063_v6 = vpop.f32.mrf.mxu1 }
 0x5de   : > { %v4060_v30 = vadd.f32 %v4059_v37, %v3902_v28  ;;  %v4141_v4 = vpop.f32.mrf.mxu2 }
 0x5df   : > { %v4215_v19 = vpop.f32.mrf.mxu3 }
 0x5e0   : > { %v4142_v12 = vadd.f32 %v4141_v4, %v4060_v30 }
 0x5e2   : > { %v4216_v24 = vadd.f32 %v4215_v19, %v4142_v12 }
 0x5e5   : > { %v3910_v5 = vpop.f32.mrf.mxu0  ;;  %v4067_v52 = vpop.f32.mrf.mxu1 }
 0x5e6   : > { %v4064_v7 = vadd.f32 %v4063_v6, %v3910_v5  ;;  %v4146_v49 = vpop.f32.mrf.mxu2 }
 0x5e7   : > { %v4221_v8 = vpop.f32.mrf.mxu3 }
 0x5e8   : > { %v4147_v18 = vadd.f32 %v4146_v49, %v4064_v7 }
 0x5ea   : > { %v4222_v40 = vadd.f32 %v4221_v8, %v4147_v18 }
 0x5ed   : > { %v3918_v10 = vpop.f32.mrf.mxu0  ;;  %v4071_v14 = vpop.f32.mrf.mxu1 }
 0x5ee   : > { %v4068_v36 = vadd.f32 %v4067_v52, %v3918_v10  ;;  %v4151_v63 = vpop.f32.mrf.mxu2 }
 0x5ef   : > { %v4227_v37 = vpop.f32.mrf.mxu3 }
 0x5f0   : > { %v4152_v6 = vadd.f32 %v4151_v63, %v4068_v36 }
 0x5f2   : > { %v4228_v10 = vadd.f32 %v4227_v37, %v4152_v6 }
 0x5f5   : > { %v3926_v43 = vpop.f32.mrf.mxu0  ;;  %v4075_v46 = vpop.f32.mrf.mxu1 }
 0x5f6   : > { %v4072_v62 = vadd.f32 %v4071_v14, %v3926_v43  ;;  %v4156_v28 = vpop.f32.mrf.mxu2 }
 0x5f7   : > { %v4233_v30 = vpop.f32.mrf.mxu3 }
 0x5fd   : > { %v3934_v1 = vpop.f32.mrf.mxu0  ;;  %v4079_v60 = vpop.f32.mrf.mxu1 }
 0x5fe   : > { %v4076_v13 = vadd.f32 %v4075_v46, %v3934_v1  ;;  %v4157_v1 = vadd.f32 %v4156_v28, %v4072_v62 }
 0x5ff   : > { %v4239_v4 = vpop.f32.mrf.mxu3 }
 0x605   : > { %v3942_v21 = vpop.f32.mrf.mxu0  ;;  %v4083_v25 = vpop.f32.mrf.mxu1 }
 0x606   : > { %v4080_v32 = vadd.f32 %v4079_v60, %v3942_v21  ;;  %v4161_v60 = vpop.f32.mrf.mxu2 }
 0x60d   : > { %v3950_v22 = vpop.f32.mrf.mxu0  ;;  %v4087_v42 = vpop.f32.mrf.mxu1 }
 0x60e   : > { %v4084_v37 = vadd.f32 %v4083_v25, %v3950_v22 }
 0x615   : > { %v3958_v59 = vpop.f32.mrf.mxu0  ;;  %v4391_v29 = vpop.f32.mrf.mxu1 }
 0x61d   : > { %v4326_v50 = vpop.f32.mrf.mxu0  ;;  %v4395_v57 = vpop.f32.mrf.mxu1 }
 0x61e   : > { %v4327_v16 = vadd.f32 %v4326_v50, %v4216_v24 }
 0x620   : > { %v4392_v9 = vadd.f32 %v4391_v29, %v4327_v16  ;;  %v4162_v29 = vadd.f32 %v4161_v60, %v4076_v13 }
 0x622   : > { %v4422_v38 = vadd.f32 %v4392_v9, %v8866_v58  ;;  %v4234_v58 = vadd.f32 %v4233_v30, %v4157_v1  ;;  %v4240_v24 = vadd.f32 %v4239_v4, %v4162_v29  ;;  %v5891_v30 = vld [vmem:[#allocation7 + $0x3] ss:$0 sm:$0xff] }
 0x624   : > { %v8943_v1 = vadd.f32 %v5891_v30, %v4422_v38 }
 0x625   : > { %v4330_v27 = vpop.f32.mrf.mxu0  ;;  %v4399_v39 = vpop.f32.mrf.mxu1 }
 0x626   : > { %v4331_v41 = vadd.f32 %v4330_v27, %v4222_v40 }
 0x628   : > { %v4396_v5 = vadd.f32 %v4395_v57, %v4331_v41  ;;  %v4245_v57 = vpop.f32.mrf.mxu3 }
 0x62a   : > { %v4423_v52 = vadd.f32 %v4396_v5, %v8881_v23  ;;  %v4166_v23 = vpop.f32.mrf.mxu2  ;;  %v4088_v5 = vadd.f32 %v4087_v42, %v3958_v59 }
 0x62b   : > { %v4167_v16 = vadd.f32 %v4166_v23, %v4080_v32 }
 0x62c   : > { %v8941_v32 = vadd.f32 %v5891_v30, %v4423_v52 }
 0x62d   : > { %v4334_v14 = vpop.f32.mrf.mxu0  ;;  %v4403_v46 = vpop.f32.mrf.mxu1 }
 0x62e   : > { %v4335_v43 = vadd.f32 %v4334_v14, %v4228_v10 }
 0x630   : > { %v4400_v7 = vadd.f32 %v4399_v39, %v4335_v43  ;;  %v4251_v28 = vpop.f32.mrf.mxu3 }
 0x632   : > { %v4424_v21 = vadd.f32 %v4400_v7, %v8896_v53  ;;  %v4246_v53 = vadd.f32 %v4245_v57, %v4167_v16  ;;  %v4171_v40 = vpop.f32.mrf.mxu2  ;;  %v4440_v7 = vadd.f32 %v8941_v32, %v8943_v1 }
 0x633   : > { %v4172_v13 = vadd.f32 %v4171_v40, %v4084_v37  ;;  %v9830_v40 = vld [vmem:[#allocation126_spill] sm:$0xff] }
 0x634   : > { %v8945_v25 = vadd.f32 %v5891_v30, %v4424_v21 }
 0x635   : > { %v4338_v19 = vpop.f32.mrf.mxu0  ;;  %v4407_v36 = vpop.f32.mrf.mxu1  ;;  %v4252_v6 = vadd.f32 %v4251_v28, %v4172_v13 }
 0x636   : > { %v4339_v49 = vadd.f32 %v4338_v19, %v4234_v58  ;;  %v4441_v52 = vadd.f32 %v4440_v7, %v8945_v25 }
 0x638   : > { %v4404_v8 = vadd.f32 %v4403_v46, %v4339_v49  ;;  %v4257_v42 = vpop.f32.mrf.mxu3 }
 0x63a   : > { %v4425_v12 = vadd.f32 %v4404_v8, %v8909_v2 }
 0x63c   : > { %v8949_v60 = vadd.f32 %v5891_v30, %v4425_v12 }
 0x63d   : > { %v4342_v63 = vpop.f32.mrf.mxu0  ;;  %v4411_v9 = vpop.f32.mrf.mxu1 }
 0x63e   : > { %v4343_v50 = vadd.f32 %v4342_v63, %v4240_v24  ;;  %v4442_v38 = vadd.f32 %v4441_v52, %v8949_v60 }
 0x640   : > { %v4408_v62 = vadd.f32 %v4407_v36, %v4343_v50 }
 0x642   : > { %v4426_v18 = vadd.f32 %v4408_v62, %v8918_v44  ;;  %v4176_v44 = vpop.f32.mrf.mxu2 }
 0x643   : > { %v4177_v46 = vadd.f32 %v4176_v44, %v4088_v5 }
 0x644   : > { %v8953_v58 = vadd.f32 %v5891_v30, %v4426_v18 }
 0x645   : > { %v4346_v27 = vpop.f32.mrf.mxu0  ;;  %v4415_v10 = vpop.f32.mrf.mxu1  ;;  %v4258_v59 = vadd.f32 %v4257_v42, %v4177_v46 }
 0x646   : > { %v4347_v39 = vadd.f32 %v4346_v27, %v4246_v53  ;;  %v4443_v29 = vadd.f32 %v4442_v38, %v8953_v58  ;;  %v9831_v27 = vld [vmem:[#allocation120_spill] sm:$0xff]  ;;  %v9833_v38 = vld [vmem:[#allocation123_spill] sm:$0xff] }
 0x648   : > { %v4412_v41 = vadd.f32 %v4411_v9, %v4347_v39 }
 0x64a   : > { %v4427_v2 = vadd.f32 %v4412_v41, %v8925_v31  ;;  %v9832_v41 = vld [vmem:[#allocation121_spill] sm:$0xff] }
 0x64c   : > { %v8956_v19 = vadd.f32 %v5891_v30, %v4427_v2 }
 0x64d   : > { %v4350_v14 = vpop.f32.mrf.mxu0  ;;  %v4419_v49 = vpop.f32.mrf.mxu1 }
 0x64e   : > { %v4351_v43 = vadd.f32 %v4350_v14, %v4252_v6 }
 0x650   : > { %v4416_v22 = vadd.f32 %v4415_v10, %v4351_v43 }
 0x652   : > { %v4428_v31 = vadd.f32 %v4416_v22, %v8929_v33  ;;  %v4444_v33 = vadd.f32 %v4443_v29, %v8956_v19  ;;  %v9836_v29 = vld [vmem:[#allocation36_spill] sm:$0xff] }
 0x654   : > { %v8959_v8 = vadd.f32 %v5891_v30, %v4428_v31 }
 0x655   : > { %v4354_v4 = vpop.f32.mrf.mxu0 }
 0x656   : > { %v4355_v21 = vadd.f32 %v4354_v4, %v4258_v59  ;;  %v4445_v23 = vadd.f32 %v4444_v33, %v8959_v8  ;;  %v9838_v33 = vld [vmem:[#allocation47_spill] sm:$0xff] }
 0x658   : > { %v4420_v36 = vadd.f32 %v4419_v49, %v4355_v21  ;;  %v9834_v21 = vld [vmem:[#allocation27_spill] sm:$0xff]  ;;  %v9835_v49 = vld [vmem:[#allocation32_spill] sm:$0xff] }
 0x65a   : > { %v4429_v12 = vadd.f32 %v4420_v36, %v8933_v51  ;;  %v9837_v36 = vld [vmem:[#allocation40_spill] sm:$0xff] }
 0x65c   : > { %v8964_v24 = vadd.f32 %v5891_v30, %v4429_v12  ;;  %v9839_v12 = vld [vmem:[#allocation49_spill] sm:$0xff] }
 0x65e   : > { %v4446_v63 = vadd.f32 %v4445_v23, %v8964_v24  ;;  %v9840_v23 = vld [vmem:[#allocation53_spill] sm:$0xff] }
 0x660   : > { %v4447_v50 = vrot.slane %v4446_v63, 4 }
 0x662   : > { %v4448_v57 = vadd.f32 %v4447_v50, %v4446_v63  ;;  %v9841_v63 = vld [vmem:[#allocation57_spill] sm:$0xff] }
 0x663   : > { %v9842_v50 = vld [vmem:[#allocation61_spill] sm:$0xff] }
 0x664   : > { %v4449_v16 = vrot.slane %v4448_v57, 2 }
 0x666   : > { %v4450_v62 = vadd.f32 %v4449_v16, %v4448_v57  ;;  %v9843_v57 = vld [vmem:[#allocation69_spill] sm:$0xff]  ;;  %v9844_v16 = vld [vmem:[#allocation72_spill] sm:$0xff] }
 0x668   : > { %v4451_v18 = vrot.slane %v4450_v62, 1 }
 0x66a   : > { %v4452_v9 = vadd.f32 %v4451_v18, %v4450_v62  ;;  %v9845_v62 = vld [vmem:[#allocation74_spill] sm:$0xff] }
 0x66b   : > { %v9846_v18 = vld [vmem:[#allocation78_spill] sm:$0xff] }
 0x66c   : > { %v4485_v53 = vand.u32 4294901760, %v4452_v9 }
 0x66e   : > { %v4486_v37 = vsub.f32 %v4452_v9, %v4485_v53  ;;  %4591 = vmatmul.f32.vlgmr.msrb.gmra.mxu3 %v4485_v53  ;;  %4753 = vmatmul.f32.vlgmr.msra.gmra.mxu0 %v4485_v53  ;;  %v9847_v9 = vld [vmem:[#allocation81_spill] sm:$0xff] }
 0x66f   : > { %4790 = vmatmul.f32.vlgmr.msra.gmra.mxu1 %v4485_v53  ;;  %4843 = vmatpush.msrb.mxu3 %v9830_v40  ;;  %v9848_v53 = vld [vmem:[#allocation83_spill] sm:$0xff] }
 0x670   : > { %v4487_v51 = vand.u32 4294901760, %v4486_v37  ;;  %5363 = vmatpush.msra.mxu1 %v9830_v40  ;;  %5333 = vmatpush.msra.mxu0 %v9831_v27  ;;  %v9850_v40 = vld [vmem:[#allocation21_spill] sm:$0xff] }
 0x672   : > { %v4488_v39 = vsub.f32 %v4486_v37, %v4487_v51 }
 0x674   : > { %v4489_v13 = vand.u32 4294901760, %v4488_v39  ;;  %v9863_v39 = vld [vmem:[#allocation75_spill] sm:$0xff] }
 0x676   : > { %4490 = vmatmul.f32.vlgmr.msrb.gmra.mxu2 %v4489_v13  ;;  %4684 = vmatmul.f32.vlgmr.msra.gmra.mxu3 %v4487_v51  ;;  %v9851_v51 = vld [vmem:[#allocation24_spill] sm:$0xff]  ;;  %v9865_v13 = vld [vmem:[#allocation82_spill] sm:$0xff] }
 0x677   : > { %4813 = vmatpush.msrb.mxu2 %v9831_v27  ;;  %4889 = vmatpush.msra.mxu3 %v9831_v27 }
 0x67e   : > { %4645 = vmatmul.f32.vlgmr.msra.gmra.mxu2 %v4486_v37  ;;  %v9849_v37 = vld [vmem:[#allocation84_spill] sm:$0xff] }
 0x67f   : > { %4866 = vmatpush.msra.mxu2 %v9832_v41 }
 0x6eb   : > { %v4754_v43 = vpop.f32.mrf.mxu0 }
 0x6ec   : > { %v4791_v46 = vpop.f32.mrf.mxu1 }
 0x6f1   : > { %v4592_v28 = vpop.f32.mrf.mxu3 }
 0x6f9   : > { %v4491_v2 = vpop.f32.mrf.mxu2  ;;  %v4685_v10 = vpop.f32.mrf.mxu3 }
 0x6fa   : > { %v4593_v6 = vadd.f32 %v4592_v28, %v4491_v2 }
 0x701   : > { %v4646_v5 = vpop.f32.mrf.mxu2 }
 0x702   : > { %v4647_v30 = vadd.f32 %v4646_v5, %v4593_v6 }
 0x704   : > { %v4686_v14 = vadd.f32 %v4685_v10, %v4647_v30 }
 0x706   : > { %v4755_v44 = vadd.f32 %v4754_v43, %v4686_v14 }
 0x708   : > { %v4792_v22 = vadd.f32 %v4791_v46, %v4755_v44 }
 0x70a   : > { %v4795_v7 = vsel %vm609_vm4, %v4792_v22, 0 }
 0x70b   : > { %v4814_v31 = vand.u32 4294901760, %v4795_v7 }
 0x70d   : > { %v4815_v42 = vsub.f32 %v4795_v7, %v4814_v31  ;;  %4845 = vmatmul.f32.vlgmr.msrb.gmra.mxu3 %v4814_v31 }
 0x70e   : > { %4937 = vmatpush.msrb.mxu3 %v9831_v27 }
 0x70f   : > { %v4816_v59 = vand.u32 4294901760, %v4815_v42 }
 0x711   : > { %v4817_v52 = vsub.f32 %v4815_v42, %v4816_v59 }
 0x713   : > { %v4818_v4 = vand.u32 4294901760, %v4817_v52 }
 0x715   : > { %4819 = vmatmul.f32.vlgmr.msrb.gmra.mxu2 %v4818_v4  ;;  %4893 = vmatmul.f32.vlgmr.msra.gmra.mxu3 %v4816_v59 }
 0x716   : > { %4915 = vmatpush.msrb.mxu2 %v9833_v38  ;;  %5019 = vmatpush.msra.mxu3 %v9834_v21 }
 0x718   : > { %5025 = vmatpush.msra.mxu3 %v9835_v49 }
 0x71a   : > { %5031 = vmatpush.msra.mxu3 %v9836_v29 }
 0x71c   : > { %5037 = vmatpush.msra.mxu3 %v9837_v36 }
 0x71d   : > { %4869 = vmatmul.f32.vlgmr.msra.gmra.mxu2 %v4815_v42  ;;  %4939 = vmatmul.f32.vlgmr.msrb.gmra.mxu3 %v4814_v31 }
 0x71e   : > { %4974 = vmatpush.msra.mxu2 %v6658_v55  ;;  %5043 = vmatpush.msra.mxu3 %v9838_v33 }
 0x720   : > { %4976 = vmatpush.msra.mxu2 %v6673_v61  ;;  %5049 = vmatpush.msra.mxu3 %v9839_v12 }
 0x722   : > { %4978 = vmatpush.msra.mxu2 %v9740_v45  ;;  %5055 = vmatpush.msra.mxu3 %v9840_v23 }
 0x724   : > { %4980 = vmatpush.msra.mxu2 %v9743_v11  ;;  %5061 = vmatpush.msra.mxu3 %v9841_v63 }
 0x725   : > { %4917 = vmatmul.f32.vlgmr.msrb.gmra.mxu2 %v4814_v31 }
 0x726   : > { %4982 = vmatpush.msra.mxu2 %v9749_v56  ;;  %5067 = vmatpush.msra.mxu3 %v9842_v50 }
 0x728   : > { %4984 = vmatpush.msra.mxu2 %v9752_v15  ;;  %5073 = vmatpush.msra.mxu3 %v9843_v57 }
 0x72a   : > { %4986 = vmatpush.msra.mxu2 %v9757_v17  ;;  %5079 = vmatpush.msra.mxu3 %v9844_v16 }
 0x72c   : > { %4988 = vmatpush.msra.mxu2 %v9760_v34  ;;  %5085 = vmatpush.msra.mxu3 %v9845_v62 }
 0x72e   : > { %4990 = vmatpush.msra.mxu2 %v9766_v47  ;;  %5091 = vmatpush.msra.mxu3 %v9846_v18 }
 0x730   : > { %4992 = vmatpush.msra.mxu2 %v9771_v54  ;;  %5097 = vmatpush.msra.mxu3 %v9847_v9 }
 0x732   : > { %4994 = vmatpush.msra.mxu2 %v9773_v3  ;;  %5103 = vmatpush.msra.mxu3 %v9848_v53 }
 0x734   : > { %4996 = vmatpush.msra.mxu2 %v9776_v26  ;;  %5109 = vmatpush.msra.mxu3 %v9849_v37 }
 0x736   : > { %5278 = vmatpush.msrb.mxu3 %v6658_v55  ;;  %4998 = vmatpush.msra.mxu2 %v9779_v48  ;;  %v9852_v55 = vld [vmem:[#allocation28_spill] sm:$0xff] }
 0x738   : > { %5280 = vmatpush.msrb.mxu3 %v6673_v61  ;;  %5000 = vmatpush.msra.mxu2 %v9780_v35  ;;  %v9853_v61 = vld [vmem:[#allocation33_spill] sm:$0xff] }
 0x73a   : > { %5282 = vmatpush.msrb.mxu3 %v9740_v45  ;;  %5002 = vmatpush.msra.mxu2 %v9783_v20  ;;  %v9854_v45 = vld [vmem:[#allocation39_spill] sm:$0xff] }
 0x73c   : > { %5284 = vmatpush.msrb.mxu3 %v9743_v11  ;;  %5004 = vmatpush.msra.mxu2 %v9785_v0  ;;  %v9855_v11 = vld [vmem:[#allocation41_spill] sm:$0xff] }
 0x73e   : > { %5211 = vmatpush.msrb.mxu2 %v9850_v40  ;;  %5286 = vmatpush.msrb.mxu3 %v9749_v56  ;;  %v9856_v56 = vld [vmem:[#allocation44_spill] sm:$0xff] }
 0x740   : > { %5215 = vmatpush.msrb.mxu2 %v9851_v51  ;;  %5288 = vmatpush.msrb.mxu3 %v9752_v15  ;;  %v9857_v15 = vld [vmem:[#allocation50_spill] sm:$0xff] }
 0x742   : > { %5219 = vmatpush.msrb.mxu2 %v9852_v55  ;;  %5290 = vmatpush.msrb.mxu3 %v9757_v17  ;;  %v9858_v17 = vld [vmem:[#allocation54_spill] sm:$0xff] }
 0x744   : > { %5223 = vmatpush.msrb.mxu2 %v9853_v61  ;;  %5292 = vmatpush.msrb.mxu3 %v9760_v34  ;;  %v9859_v34 = vld [vmem:[#allocation59_spill] sm:$0xff] }
 0x746   : > { %5227 = vmatpush.msrb.mxu2 %v9854_v45  ;;  %5294 = vmatpush.msrb.mxu3 %v9766_v47  ;;  %v9860_v47 = vld [vmem:[#allocation64_spill] sm:$0xff] }
 0x748   : > { %5231 = vmatpush.msrb.mxu2 %v9855_v11  ;;  %5296 = vmatpush.msrb.mxu3 %v9771_v54  ;;  %v9861_v54 = vld [vmem:[#allocation66_spill] sm:$0xff] }
 0x74a   : > { %5235 = vmatpush.msrb.mxu2 %v9856_v56  ;;  %5298 = vmatpush.msrb.mxu3 %v9773_v3  ;;  %v9862_v3 = vld [vmem:[#allocation70_spill] sm:$0xff] }
 0x74c   : > { %5239 = vmatpush.msrb.mxu2 %v9857_v15  ;;  %5300 = vmatpush.msrb.mxu3 %v9776_v26  ;;  %v9864_v26 = vld [vmem:[#allocation80_spill] sm:$0xff] }
 0x74e   : > { %5243 = vmatpush.msrb.mxu2 %v9858_v17  ;;  %5302 = vmatpush.msrb.mxu3 %v9779_v48 }
 0x750   : > { %5247 = vmatpush.msrb.mxu2 %v9859_v34  ;;  %5304 = vmatpush.msrb.mxu3 %v9780_v35 }
 0x752   : > { %5251 = vmatpush.msrb.mxu2 %v9860_v47  ;;  %5306 = vmatpush.msrb.mxu3 %v9783_v20 }
 0x754   : > { %5255 = vmatpush.msrb.mxu2 %v9861_v54  ;;  %5308 = vmatpush.msrb.mxu3 %v9785_v0 }
 0x756   : > { %5259 = vmatpush.msrb.mxu2 %v9862_v3 }
 0x758   : > { %5263 = vmatpush.msrb.mxu2 %v9863_v39 }
 0x75a   : > { %5267 = vmatpush.msrb.mxu2 %v9864_v26 }
 0x75c   : > { %5271 = vmatpush.msrb.mxu2 %v9865_v13 }
 0x790   : > { %v4846_v48 = vpop.f32.mrf.mxu3 }
 0x798   : > { %v4820_v28 = vpop.f32.mrf.mxu2  ;;  %v4894_v2 = vpop.f32.mrf.mxu3 }
 0x799   : > { %v4847_v6 = vadd.f32 %v4846_v48, %v4820_v28 }
 0x7a0   : > { %v4870_v35 = vpop.f32.mrf.mxu2  ;;  %v4940_v14 = vpop.f32.mrf.mxu3 }
 0x7a1   : > { %v4871_v5 = vadd.f32 %v4870_v35, %v4847_v6 }
 0x7a3   : > { %v4895_v30 = vadd.f32 %v4894_v2, %v4871_v5 }
 0x7a8   : > { %v4918_v20 = vpop.f32.mrf.mxu2 }
 0x7a9   : > { %v4919_v10 = vadd.f32 %v4918_v20, %v4895_v30 }
 0x7ab   : > { %v4941_v43 = vadd.f32 %v4940_v14, %v4919_v10 }
 0x7ad   : > { %v4943_v0 = vperm.slane %v4941_v43, 0 }
 0x7af   : > { %v9041_v44 = vsub.f32 %v8943_v1, %v4943_v0  ;;  %v9044_v46 = vsub.f32 %v8941_v32, %v4943_v0  ;;  %v9047_v22 = vsub.f32 %v8945_v25, %v4943_v0  ;;  %v9050_v7 = vsub.f32 %v8949_v60, %v4943_v0 }
 0x7b0   : > { %v9057_v59 = vsub.f32 %v8953_v58, %v4943_v0  ;;  %v9062_v52 = vsub.f32 %v8956_v19, %v4943_v0  ;;  %v9067_v4 = vsub.f32 %v8959_v8, %v4943_v0  ;;  %v9072_v58 = vsub.f32 %v8964_v24, %v4943_v0 }
 0x7b1   : > { %v4952_v31 = vmul.f32 %v9041_v44, %v9041_v44  ;;  %v4953_v42 = vmul.f32 %v9044_v46, %v9044_v46  ;;  %v4954_v1 = vmul.f32 %v9047_v22, %v9047_v22  ;;  %v4955_v25 = vmul.f32 %v9050_v7, %v9050_v7 }
 0x7b2   : > { %v4956_v21 = vmul.f32 %v9057_v59, %v9057_v59  ;;  %v4957_v29 = vmul.f32 %v9062_v52, %v9062_v52  ;;  %v4958_v19 = vmul.f32 %v9067_v4, %v9067_v4  ;;  %v4959_v12 = vmul.f32 %v9072_v58, %v9072_v58 }
 0x7b3   : > { %v4960_v32 = vadd.f32 %v4953_v42, %v4952_v31 }
 0x7b5   : > { %v4961_v60 = vadd.f32 %v4960_v32, %v4954_v1 }
 0x7b7   : > { %v4962_v49 = vadd.f32 %v4961_v60, %v4955_v25 }
 0x7b9   : > { %v4963_v36 = vadd.f32 %v4962_v49, %v4956_v21 }
 0x7bb   : > { %v4964_v33 = vadd.f32 %v4963_v36, %v4957_v29  ;;  %v9085_v29 = vld [vmem:[#allocation7 + $0x6] ss:$0 sm:$0xff] }
 0x7bd   : > { %v4965_v8 = vadd.f32 %v4964_v33, %v4958_v19  ;;  %v9866_v33 = vld [vmem:[#allocation48_spill] sm:$0xff] }
 0x7bf   : > { %v4966_v23 = vadd.f32 %v4965_v8, %v4959_v12  ;;  %v1089_v12 = vadd.f32 %v9085_v29, %v9866_v33  ;;  %v9867_v8 = vld [vmem:[#allocation31_spill] sm:$0xff] }
 0x7c1   : > { %v4967_v63 = vrot.slane %v4966_v23, 4 }
 0x7c3   : > { %v4968_v50 = vadd.f32 %v4967_v63, %v4966_v23  ;;  %v1097_v23 = vadd.f32 %v9085_v29, %v9867_v8  ;;  %v9868_v63 = vld [vmem:[#allocation85_spill] sm:$0xff]  ;;  %v9878_v8 = vld [vmem:[#allocation88_spill] sm:$0xff] }
 0x7c5   : > { %v4969_v57 = vrot.slane %v4968_v50, 2 }
 0x7c7   : > { %v4970_v16 = vadd.f32 %v4969_v57, %v4968_v50  ;;  %v1105_v50 = vadd.f32 %v9085_v29, %v9868_v63  ;;  %v9879_v63 = vld [vmem:[#allocation105_spill] sm:$0xff] }
 0x7c9   : > { %v4971_v62 = vrot.slane %v4970_v16, 1 }
 0x7cb   : > { %v4972_v24 = vadd.f32 %v4971_v62, %v4970_v16  ;;  %v5892_v62 = vld [vmem:[#allocation7 + $0x4] ss:$0 sm:$0xff] }
 0x7cd   : > { %v5005_v18 = vand.u32 4294901760, %v4972_v24 }
 0x7cf   : > { %5111 = vmatmul.f32.vlgmr.msra.gmra.mxu3 %v5005_v18  ;;  %v5006_v9 = vsub.f32 %v4972_v24, %v5005_v18  ;;  %v9869_v24 = vld [vmem:[#allocation19_spill] sm:$0xff] }
 0x7d1   : > { %5165 = vmatmul.f32.vlgmr.msrb.gmra.mxu0 %v5006_v9  ;;  %v5007_v53 = vand.u32 4294901760, %v5006_v9 }
 0x7d2   : > { %5386 = vmatpush.msrb.mxu0 %v9832_v41 }
 0x7d3   : > { %5204 = vmatmul.f32.vlgmr.msrb.gmra.mxu1 %v5007_v53  ;;  %v5008_v37 = vsub.f32 %v5006_v9, %v5007_v53  ;;  %v9870_v9 = vld [vmem:[#allocation65_spill] sm:$0xff] }
 0x7d4   : > { %5409 = vmatpush.msrb.mxu1 %v9831_v27  ;;  %v1175_v53 = vadd.f32 %v9870_v9, %v1097_v23 }
 0x7d5   : > { %v5009_v40 = vand.u32 4294901760, %v5008_v37  ;;  %v9871_v37 = vld [vmem:[#allocation86_spill] sm:$0xff] }
 0x7d7   : > { %5010 = vmatmul.f32.vlgmr.msra.gmra.mxu2 %v5009_v40  ;;  %5310 = vmatmul.f32.vlgmr.msrb.gmra.mxu3 %v5005_v18  ;;  %v1179_v40 = vadd.f32 %v9871_v37, %v1105_v50 }
 0x7d9   : > { %v1233_v50 = vadd.f32 %v9879_v63, %v1179_v40  ;;  %v9886_v40 = vld [vmem:[#allocation106_spill] sm:$0xff] }
 0x7df   : > { %5273 = vmatmul.f32.vlgmr.msrb.gmra.mxu2 %v5005_v18  ;;  %v1171_v18 = vadd.f32 %v9869_v24, %v1089_v12  ;;  %v9881_v24 = vld [vmem:[#allocation92_spill] sm:$0xff] }
 0x84e   : > { %v5166_v45 = vpop.f32.mrf.mxu0 }
 0x850   : > { %v5205_v56 = vpop.f32.mrf.mxu1 }
 0x852   : > { %v5112_v51 = vpop.f32.mrf.mxu3 }
 0x85a   : > { %v5011_v55 = vpop.f32.mrf.mxu2  ;;  %v5311_v47 = vpop.f32.mrf.mxu3 }
 0x85b   : > { %v5113_v61 = vadd.f32 %v5112_v51, %v5011_v55  ;;  %v9872_v51 = vld [vmem:[#allocation87_spill] sm:$0xff] }
 0x85c   : > { %v1113_v55 = vadd.f32 %v9085_v29, %v9872_v51  ;;  %v9882_v51 = vld [vmem:[#allocation94_spill] sm:$0xff] }
 0x85d   : > { %v5167_v11 = vadd.f32 %v5166_v45, %v5113_v61 }
 0x85e   : > { %v1183_v23 = vadd.f32 %v9878_v8, %v1113_v55  ;;  %v9885_v55 = vld [vmem:[#allocation102_spill] sm:$0xff] }
 0x85f   : > { %v5206_v15 = vadd.f32 %v5205_v56, %v5167_v11 }
 0x862   : > { %v5274_v17 = vpop.f32.mrf.mxu2 }
 0x863   : > { %v5275_v34 = vadd.f32 %v5274_v17, %v5206_v15  ;;  %v5893_v15 = vld [vmem:[#allocation7 + $0x5] ss:$0 sm:$0xff] }
 0x865   : > { %v5312_v54 = vadd.f32 %v5311_v47, %v5275_v34 }
 0x867   : > { %v5315_v41 = vsel %vm609_vm4, %v5312_v54, 0 }
 0x868   : > { %v5334_v3 = vand.u32 4294901760, %v5315_v41 }
 0x86a   : > { %v5335_v39 = vsub.f32 %v5315_v41, %v5334_v3  ;;  %5365 = vmatmul.f32.vlgmr.msra.gmra.mxu1 %v5334_v3 }
 0x86b   : > { %5457 = vmatpush.msra.mxu1 %v9831_v27 }
 0x86c   : > { %v5336_v26 = vand.u32 4294901760, %v5335_v39 }
 0x86e   : > { %v5337_v13 = vsub.f32 %v5335_v39, %v5336_v26 }
 0x870   : > { %v5338_v48 = vand.u32 4294901760, %v5337_v13 }
 0x872   : > { %5339 = vmatmul.f32.vlgmr.msra.gmra.mxu0 %v5338_v48  ;;  %5413 = vmatmul.f32.vlgmr.msrb.gmra.mxu1 %v5336_v26 }
 0x873   : > { %5435 = vmatpush.msra.mxu0 %v9833_v38 }
 0x87a   : > { %5389 = vmatmul.f32.vlgmr.msrb.gmra.mxu0 %v5335_v39  ;;  %5459 = vmatmul.f32.vlgmr.msra.gmra.mxu1 %v5334_v3 }
 0x882   : > { %5437 = vmatmul.f32.vlgmr.msra.gmra.mxu0 %v5334_v3 }
 0x8e7   : > { %v5366_v28 = vpop.f32.mrf.mxu1 }
 0x8ef   : > { %v5340_v2 = vpop.f32.mrf.mxu0  ;;  %v5414_v6 = vpop.f32.mrf.mxu1 }
 0x8f0   : > { %v5341_v35 = vadd.f32 1e-05, %v5340_v2 }
 0x8f2   : > { %v5367_v30 = vadd.f32 %v5366_v28, %v5341_v35 }
 0x8f7   : > { %v5390_v5 = vpop.f32.mrf.mxu0  ;;  %v5460_v43 = vpop.f32.mrf.mxu1 }
 0x8f8   : > { %v5391_v20 = vadd.f32 %v5390_v5, %v5367_v30 }
 0x8fa   : > { %v5415_v10 = vadd.f32 %v5414_v6, %v5391_v20  ;;  %v9873_v20 = vld [vmem:[#allocation89_spill] sm:$0xff] }
 0x8ff   : > { %v5438_v14 = vpop.f32.mrf.mxu0 }
 0x900   : > { %v5439_v27 = vadd.f32 %v5438_v14, %v5415_v10  ;;  %v1121_v10 = vadd.f32 %v9085_v29, %v9873_v20  ;;  %v9893_v20 = vld [vmem:[#allocation103_spill] sm:$0xff] }
 0x902   : > { %v5461_v0 = vadd.f32 %v5460_v43, %v5439_v27 }
 0x904   : > { %5928 = vrsqrt.f32 %v5461_v0  ;;  %vm5469_vm3 = vweird.f32 %v5461_v0  ;;  %v5473_v60 = vmul.f32 0.5, %v5461_v0 }
 0x90a   : > { %v5929_v31 = vpop.eup %5928 }
 0x90b   : > { %v5464_v42 = vmul.f32 %v5929_v31, %v5461_v0  ;;  %vm5470_vm0 = vweird.f32 %v5929_v31  ;;  %v9874_v0 = vld [vmem:[#allocation91_spill] sm:$0xff] }
 0x90c   : > { %vm5471_vm4 = vmor %vm5469_vm3, %vm5470_vm0 }
 0x90d   : > { %v5465_v1 = vmul.f32 %v5929_v31, %v5464_v42 }
 0x90f   : > { %v5466_v38 = vmul.f32 0.5, %v5465_v1 }
 0x911   : > { %v5467_v32 = vsub.f32 1.5, %v5466_v38 }
 0x913   : > { %v5468_v25 = vmul.f32 %v5929_v31, %v5467_v32  ;;  %v9875_v32 = vld [vmem:[#allocation93_spill] sm:$0xff] }
 0x915   : > { %v5472_v21 = vsel %vm5471_vm4, %v5929_v31, %v5468_v25  ;;  %v1129_v31 = vadd.f32 %v9085_v29, %v9874_v0  ;;  %v1137_v25 = vadd.f32 %v9085_v29, %v9875_v32 }
 0x916   : > { %v5474_v49 = vmul.f32 %v5473_v60, %v5472_v21 }
 0x917   : > { %v1191_v9 = vadd.f32 %v9881_v24, %v1129_v31  ;;  %v9895_v31 = vld [vmem:[#allocation110_spill] sm:$0xff] }
 0x918   : > { %v5475_v36 = vmul.f32 %v5474_v49, %v5472_v21  ;;  %v9876_v49 = vld [vmem:[#allocation97_spill] sm:$0xff] }
 0x91a   : > { %v5476_v19 = vsub.f32 1.5, %v5475_v36  ;;  %v1223_v36 = vadd.f32 %v9876_v49, %v1171_v18 }
 0x91c   : > { %v5477_v57 = vmul.f32 %v5476_v19, %v5472_v21  ;;  %v9877_v19 = vld [vmem:[#allocation101_spill] sm:$0xff] }
 0x91d   : > { %v1228_v33 = vadd.f32 %v9877_v19, %v1175_v53 }
 0x91e   : > { %v5480_v16 = vperm.slane %v5477_v57, 0 }
 0x920   : > { %v5481_v61 = vmul.f32 %v5480_v16, %v9041_v44  ;;  %v5482_v45 = vmul.f32 %v5480_v16, %v9044_v46  ;;  %v5483_v11 = vmul.f32 %v5480_v16, %v9047_v22  ;;  %v5484_v56 = vmul.f32 %v5480_v16, %v9050_v7 }
 0x921   : > { %v5485_v17 = vmul.f32 %v5480_v16, %v9057_v59  ;;  %v5486_v34 = vmul.f32 %v5480_v16, %v9062_v52  ;;  %v5487_v47 = vmul.f32 %v5480_v16, %v9067_v4  ;;  %v5488_v54 = vmul.f32 %v5480_v16, %v9072_v58  ;;  %v9880_v16 = vld [vmem:[#allocation90_spill] sm:$0xff] }
 0x922   : > { %v5490_v41 = vmul.f32 %v5892_v62, %v5481_v61  ;;  %v5491_v3 = vmul.f32 %v5892_v62, %v5482_v45  ;;  %v5492_v39 = vmul.f32 %v5892_v62, %v5483_v11  ;;  %v5493_v26 = vmul.f32 %v5892_v62, %v5484_v56  ;;  %v9883_v45 = vld [vmem:[#allocation95_spill] sm:$0xff]  ;;  %v9884_v11 = vld [vmem:[#allocation98_spill] sm:$0xff] }
 0x923   : > { %v5494_v44 = vmul.f32 %v5892_v62, %v5485_v17  ;;  %v5495_v13 = vmul.f32 %v5892_v62, %v5486_v34  ;;  %v5496_v46 = vmul.f32 %v5892_v62, %v5487_v47  ;;  %v5497_v48 = vmul.f32 %v5892_v62, %v5488_v54  ;;  %v9887_v34 = vld [vmem:[#allocation109_spill] sm:$0xff] }
 0x924   : > { %v9106_v22 = vadd.f32 %v5893_v15, %v5490_v41  ;;  %v9108_v7 = vadd.f32 %v5893_v15, %v5491_v3  ;;  %v9110_v28 = vadd.f32 %v5893_v15, %v5492_v39  ;;  %v9112_v59 = vadd.f32 %v5893_v15, %v5493_v26  ;;  %v9888_v41 = vld [vmem:[#allocation113_spill] sm:$0xff] }
 0x925   : > { %v9114_v52 = vadd.f32 %v5893_v15, %v5494_v44  ;;  %v9116_v4 = vadd.f32 %v5893_v15, %v5495_v13  ;;  %v9118_v58 = vadd.f32 %v5893_v15, %v5496_v46  ;;  %v9120_v2 = vadd.f32 %v5893_v15, %v5497_v48  ;;  %v9889_v39 = vld [vmem:[#allocation117_spill] sm:$0xff]  ;;  %v9890_v13 = vld [vmem:[#allocation124_spill] sm:$0xff] }
 0x926   : > { %v5507_v35 = vmin.f32 %v9106_v22, 20.0  ;;  %v5508_v6 = vmin.f32 %v9108_v7, 20.0  ;;  %v5509_v5 = vmin.f32 %v9110_v28, 20.0  ;;  %v5510_v30 = vmin.f32 %v9112_v59, 20.0 }
 0x927   : > { %v5511_v14 = vmin.f32 %v9114_v52, 20.0  ;;  %v5512_v27 = vmin.f32 %v9116_v4, 20.0  ;;  %v5513_v43 = vmin.f32 %v9118_v58, 20.0  ;;  %v5514_v60 = vmin.f32 %v9120_v2, 20.0 }
 0x928   : > { %v5515_v42 = vmul.f32 1.442695, %v5507_v35  ;;  %v5517_v1 = vmul.f32 1.442695, %v5508_v6  ;;  %v5519_v38 = vmul.f32 1.442695, %v5509_v5  ;;  %v1187_v62 = vadd.f32 %v9880_v16, %v1121_v10 }
 0x929   : > { %v5521_v21 = vmul.f32 1.442695, %v5510_v30  ;;  %v5523_v12 = vmul.f32 1.442695, %v5511_v14  ;;  %v5525_v57 = vmul.f32 1.442695, %v5512_v27  ;;  %v1195_v61 = vadd.f32 %v9882_v51, %v1137_v25 }
 0x92a   : > { %5930 = vpow2.f32 %v5515_v42  ;;  %v5527_v37 = vmul.f32 1.442695, %v5513_v43  ;;  %v5529_v18 = vmul.f32 1.442695, %v5514_v60  ;;  %v1145_v53 = vadd.f32 %v9085_v29, %v9883_v45  ;;  %v9891_v35 = vld [vmem:[#allocation96_spill] sm:$0xff]  ;;  %v9892_v5 = vld [vmem:[#allocation99_spill] sm:$0xff] }
 0x92b   : > { %5932 = vpow2.f32 %v5517_v1  ;;  %v1282_v56 = vadd.f32 %v9884_v11, %v1223_v36  ;;  %v1288_v15 = vadd.f32 %v9885_v55, %v1228_v33  ;;  %v1294_v17 = vadd.f32 %v9886_v40, %v1233_v50  ;;  %v9894_v43 = vld [vmem:[#allocation107_spill] sm:$0xff]  ;;  %v9896_v25 = vld [vmem:[#allocation114_spill] sm:$0xff]  ;;  %v9899_v16 = vld [vmem:[#allocation129_spill] sm:$0xff] }
 0x92c   : > { %5934 = vpow2.f32 %v5519_v38  ;;  %v1238_v47 = vadd.f32 %v9887_v34, %v1183_v23  ;;  %v1243_v3 = vadd.f32 %v9888_v41, %v1187_v62  ;;  %v1248_v26 = vadd.f32 %v9889_v39, %v1191_v9  ;;  %v9900_v55 = vld [vmem:[#allocation111_spill] sm:$0xff] }
 0x92d   : > { %5936 = vpow2.f32 %v5521_v21  ;;  %v1253_v46 = vadd.f32 %v9890_v13, %v1195_v61  ;;  %v1199_v6 = vadd.f32 %v9891_v35, %v1145_v53  ;;  %v1348_v30 = vadd.f32 %v9892_v5, %v1282_v56  ;;  %v9897_v21 = vld [vmem:[#allocation118_spill] sm:$0xff]  ;;  %v9901_v34 = vld [vmem:[#allocation115_spill] sm:$0xff] }
 0x92e   : > { %5938 = vpow2.f32 %v5523_v12  ;;  %v1352_v10 = vadd.f32 %v9893_v20, %v1288_v15  ;;  %v1356_v0 = vadd.f32 %v9894_v43, %v1294_v17  ;;  %v1300_v42 = vadd.f32 %v9895_v31, %v1238_v47  ;;  %v9898_v12 = vld [vmem:[#allocation125_spill] sm:$0xff]  ;;  %v9906_v20 = vld [vmem:[#allocation104_spill] sm:$0xff] }
 0x92f   : > { %5940 = vpow2.f32 %v5525_v57  ;;  %v1306_v60 = vadd.f32 %v9896_v25, %v1243_v3  ;;  %v1312_v49 = vadd.f32 %v9897_v21, %v1248_v26  ;;  %v1318_v8 = vadd.f32 %v9898_v12, %v1253_v46  ;;  %v9902_v3 = vld [vmem:[#allocation119_spill] sm:$0xff]  ;;  %v9904_v46 = vld [vmem:[#allocation130_spill] sm:$0xff]  ;;  %v9907_v43 = vld [vmem:[#allocation108_spill] sm:$0xff] }
 0x930   : > { %v5931_v54 = vpop.eup %5930  ;;  %5942 = vpow2.f32 %v5527_v37  ;;  %v1258_v62 = vadd.f32 %v9899_v16, %v1199_v6  ;;  %v1360_v15 = vadd.f32 %v9900_v55, %v1300_v42  ;;  %v9903_v26 = vld [vmem:[#allocation127_spill] sm:$0xff]  ;;  %v9905_v6 = vld [vmem:[#allocation100_spill] sm:$0xff]  ;;  %v9197_v31 = vadd.f32 %v9907_v43, %v1356_v0 }
 0x931   : > { %v5933_v44 = vpop.eup %5932  ;;  %5944 = vpow2.f32 %v5529_v18  ;;  %v5531_v29 = vadd.f32 2.0, %v5931_v54  ;;  %v1364_v47 = vadd.f32 %v9901_v34, %v1306_v60  ;;  %v1368_v39 = vadd.f32 %v9902_v3, %v1312_v49  ;;  %v9908_v42 = vld [vmem:[#allocation112_spill] sm:$0xff]  ;;  %v9910_v49 = vld [vmem:[#allocation122_spill] sm:$0xff] }
 0x932   : > { %v5935_v48 = vpop.eup %5934  ;;  %v5532_v14 = vadd.f32 2.0, %v5933_v44  ;;  %v9191_v5 = vadd.f32 %v9905_v6, %v1348_v30  ;;  %v9909_v60 = vld [vmem:[#allocation116_spill] sm:$0xff]  ;;  %vm5587_vm5 = vcmp.gt.f32.partialorder %v9106_v22, 20.0  ;;  %vm5588_vm6 = vcmp.gt.f32.partialorder %v9108_v7, 20.0 }
 0x933   : > { %v5937_v27 = vpop.eup %5936  ;;  %v5533_v1 = vadd.f32 2.0, %v5935_v48  ;;  %v9157_v38 = vmul.f32 %v5931_v54, %v5531_v29  ;;  %v1324_v29 = vadd.f32 %v9904_v46, %v1258_v62  ;;  %v9203_v21 = vadd.f32 %v9909_v60, %v1364_v47 }
 0x934   : > { %v5939_v32 = vpop.eup %5938  ;;  %v5534_v36 = vadd.f32 2.0, %v5937_v27  ;;  %v9161_v19 = vmul.f32 %v5933_v44, %v5532_v14  ;;  %v1372_v44 = vadd.f32 %v9903_v26, %v1318_v8  ;;  %v9194_v14 = vadd.f32 %v9906_v20, %v1352_v10  ;;  %v9912_v8 = vld [vmem:[#allocation131_spill] sm:$0xff] }
 0x935   : > { %v5941_v33 = vpop.eup %5940  ;;  %v5535_v23 = vadd.f32 2.0, %v5939_v32  ;;  %v9164_v63 = vmul.f32 %v5935_v48, %v5533_v1  ;;  %v5547_v50 = vadd.f32 2.0, %v9157_v38  ;;  %v9200_v1 = vadd.f32 %v9908_v42, %v1360_v15 }
 0x936   : > { %v5943_v57 = vpop.eup %5942  ;;  %v5536_v24 = vadd.f32 2.0, %v5941_v33  ;;  %v9168_v9 = vmul.f32 %v5937_v27, %v5534_v36  ;;  %v5548_v37 = vadd.f32 2.0, %v9161_v19  ;;  %v9206_v30 = vadd.f32 %v9910_v49, %v1368_v39  ;;  %v9911_v36 = vld [vmem:[#allocation128_spill] sm:$0xff] }
 0x937   : > { %v5945_v51 = vpop.eup %5944  ;;  %v5537_v61 = vadd.f32 2.0, %v5943_v57  ;;  %v9171_v18 = vmul.f32 %v5939_v32, %v5535_v23  ;;  %v5549_v45 = vadd.f32 2.0, %v9164_v63  ;;  %5946 = vrcp.f32 %v5547_v50 }
 0x938   : > { %v5538_v53 = vadd.f32 2.0, %v5945_v51  ;;  %v9174_v11 = vmul.f32 %v5941_v33, %v5536_v24  ;;  %v5550_v56 = vadd.f32 2.0, %v9168_v9  ;;  %5948 = vrcp.f32 %v5548_v37 }
 0x939   : > { %v9178_v40 = vmul.f32 %v5943_v57, %v5537_v61  ;;  %v5551_v17 = vadd.f32 2.0, %v9171_v18  ;;  %5950 = vrcp.f32 %v5549_v45  ;;  %v9209_v10 = vadd.f32 %v9911_v36, %v1372_v44 }
 0x93a   : > { %v9182_v54 = vmul.f32 %v5945_v51, %v5538_v53  ;;  %v5552_v41 = vadd.f32 2.0, %v9174_v11  ;;  %5952 = vrcp.f32 %v5550_v56  ;;  %v9212_v0 = vadd.f32 %v9912_v8, %v1324_v29 }
 0x93b   : > { %v5553_v13 = vadd.f32 2.0, %v9178_v40  ;;  %5954 = vrcp.f32 %v5551_v17  ;;  %vm5589_vm7 = vcmp.gt.f32.partialorder %v9110_v28, 20.0  ;;  %vm5590_vm8 = vcmp.gt.f32.partialorder %v9112_v59, 20.0 }
 0x93c   : > { %v5554_v48 = vadd.f32 2.0, %v9182_v54  ;;  %5956 = vrcp.f32 %v5552_v41  ;;  %vm5591_vm9 = vcmp.gt.f32.partialorder %v9114_v52, 20.0  ;;  %vm5592_vm10 = vcmp.gt.f32.partialorder %v9116_v4, 20.0 }
 0x93d   : > { %v5947_v35 = vpop.eup %5946  ;;  %5958 = vrcp.f32 %v5553_v13  ;;  %vm5593_vm11 = vcmp.gt.f32.partialorder %v9118_v58, 20.0  ;;  %vm5594_vm12 = vcmp.gt.f32.partialorder %v9120_v2, 20.0 }
 0x93e   : > { %v5949_v27 = vpop.eup %5948  ;;  %5960 = vrcp.f32 %v5554_v48  ;;  %v5563_v32 = vmul.f32 %v5947_v35, %v5547_v50 }
 0x93f   : > { %v5951_v25 = vpop.eup %5950  ;;  %v5564_v33 = vmul.f32 %v5949_v27, %v5548_v37 }
 0x940   : > { %v5953_v12 = vpop.eup %5952  ;;  %v5565_v23 = vmul.f32 %v5951_v25, %v5549_v45  ;;  %v5571_v57 = vsub.f32 2.0, %v5563_v32 }
 0x941   : > { %v5955_v50 = vpop.eup %5954  ;;  %v5566_v16 = vmul.f32 %v5953_v12, %v5550_v56  ;;  %v5572_v62 = vsub.f32 2.0, %v5564_v33 }
 0x942   : > { %v5957_v24 = vpop.eup %5956  ;;  %v5567_v51 = vmul.f32 %v5955_v50, %v5551_v17  ;;  %v5573_v61 = vsub.f32 2.0, %v5565_v23  ;;  %v5579_v37 = vmul.f32 %v5947_v35, %v5571_v57 }
 0x943   : > { %v5959_v53 = vpop.eup %5958  ;;  %v5568_v45 = vmul.f32 %v5957_v24, %v5552_v41  ;;  %v5574_v55 = vsub.f32 2.0, %v5566_v16  ;;  %v5580_v15 = vmul.f32 %v5949_v27, %v5572_v62 }
 0x944   : > { %v5961_v56 = vpop.eup %5960  ;;  %v5569_v34 = vmul.f32 %v5959_v53, %v5553_v13  ;;  %v5575_v47 = vsub.f32 2.0, %v5567_v51  ;;  %v5581_v3 = vmul.f32 %v5951_v25, %v5573_v61  ;;  %v5595_v17 = vmul.f32 %v5579_v37, %v9157_v38 }
 0x945   : > { %v5570_v39 = vmul.f32 %v5961_v56, %v5554_v48  ;;  %v5576_v26 = vsub.f32 2.0, %v5568_v45  ;;  %v5582_v44 = vmul.f32 %v5953_v12, %v5574_v55  ;;  %v5596_v46 = vmul.f32 %v5580_v15, %v9161_v19 }
 0x946   : > { %v5577_v41 = vsub.f32 2.0, %v5569_v34  ;;  %v5583_v29 = vmul.f32 %v5955_v50, %v5575_v47  ;;  %v5597_v35 = vmul.f32 %v5581_v3, %v9164_v63  ;;  %v5603_v13 = vmul.f32 %v5595_v17, %v9106_v22 }
 0x947   : > { %v5578_v6 = vsub.f32 2.0, %v5570_v39  ;;  %v5584_v20 = vmul.f32 %v5957_v24, %v5576_v26  ;;  %v5598_v27 = vmul.f32 %v5582_v44, %v9168_v9  ;;  %v5604_v38 = vmul.f32 %v5596_v46, %v9108_v7 }
 0x948   : > { %v5585_v48 = vmul.f32 %v5959_v53, %v5577_v41  ;;  %v5599_v43 = vmul.f32 %v5583_v29, %v9171_v18  ;;  %v5605_v19 = vmul.f32 %v5597_v35, %v9110_v28  ;;  %v5611_v42 = vsel %vm5587_vm5, %v9106_v22, %v5603_v13 }
 0x949   : > { %v5586_v32 = vmul.f32 %v5961_v56, %v5578_v6  ;;  %v5600_v63 = vmul.f32 %v5584_v20, %v9174_v11  ;;  %v5606_v25 = vmul.f32 %v5598_v27, %v9112_v59  ;;  %v5612_v9 = vsel %vm5588_vm6, %v9108_v7, %v5604_v38 }
 0x94a   : > { %v5601_v60 = vmul.f32 %v5585_v48, %v9178_v40  ;;  %v5607_v18 = vmul.f32 %v5599_v43, %v9114_v52  ;;  %v5613_v49 = vsel %vm5589_vm7, %v9110_v28, %v5605_v19  ;;  %v5627_v22 = vadd.f32 %v5611_v42, %v9191_v5 }
 0x94b   : > { %v5602_v36 = vmul.f32 %v5586_v32, %v9182_v54  ;;  %v5608_v11 = vmul.f32 %v5600_v63, %v9116_v4  ;;  %v5614_v33 = vsel %vm5590_vm8, %v9112_v59, %v5606_v25  ;;  %v5628_v7 = vadd.f32 %v5612_v9, %v9194_v14 }
 0x94c   : > { %v5609_v40 = vmul.f32 %v5601_v60, %v9118_v58  ;;  %v5615_v28 = vsel %vm5591_vm9, %v9114_v52, %v5607_v18  ;;  %v5629_v54 = vadd.f32 %v5613_v49, %v9197_v31  ;;  %v5630_v5 = vadd.f32 %v5614_v33, %v9200_v1  ;;  %5635 = vst [vmem:[%s372_s10] sm:$0xff] %v5627_v22  ;;  %v9913_v52 = vld [vmem:[#allocation132_spill] sm:$0xff] }
 0x94d   : > { %v5610_v59 = vmul.f32 %v5602_v36, %v9120_v2  ;;  %v5616_v14 = vsel %vm5592_vm10, %v9116_v4, %v5608_v11  ;;  %v5631_v12 = vadd.f32 %v5615_v28, %v9203_v21  ;;  %5636 = vst [vmem:[%s372_s10 + $0x8] sm:$0xff] %v5628_v7  ;;  %v1426_v8 = vadd.f32 %v9913_v52, %v9212_v0 }
 0x94e   : > { %v5617_v31 = vsel %vm5593_vm11, %v9118_v58, %v5609_v40  ;;  %v5632_v1 = vadd.f32 %v5616_v14, %v9206_v30  ;;  %5637 = vst [vmem:[%s372_s10 + $0x10] sm:$0xff] %v5629_v54 }
 0x94f   : > { %v5618_v23 = vsel %vm5594_vm12, %v9120_v2, %v5610_v59  ;;  %v5633_v4 = vadd.f32 %v5617_v31, %v9209_v10  ;;  %5638 = vst [vmem:[%s372_s10 + $0x18] sm:$0xff] %v5630_v5 }
 0x950   : > { %v5634_v21 = vadd.f32 %v5618_v23, %v1426_v8  ;;  %5639 = vst [vmem:[%s372_s10 + $0x20] sm:$0xff] %v5631_v12 }
 0x951   : > { %5640 = vst [vmem:[%s372_s10 + $0x28] sm:$0xff] %v5632_v1 }
 0x952   : > { %5641 = vst [vmem:[%s372_s10 + $0x30] sm:$0xff] %v5633_v4 }
 0x953   : > { %5642 = vst [vmem:[%s372_s10 + $0x38] sm:$0xff] %v5634_v21 }
 0x954   : > { %6109 = shalt.err (!%p6106_p8)
}
 0x955   : > { %s6167_s12 = smov 128  }
 0x956   : > { %5815 = dma.vmem_to_hbm [thread:$0]  (%p6251_p5), %s5657_s20, 1024, %s5659_s22, %s5644_s2, %s6167_s12, %s6167_s12, %s6164_s19  }
 0x957 PF: > { %p5842_p9 = scmp.ge.s32.totalorder %s6156_s30, 2  ;;  %s5673_s21 = sand.u32 1, %s6144_s27  }
 0x958   : > { %s5674_s9 = scalar_lea.sflag [#allocation4], %s5673_s21 }
 0x959   : > { %p5831_p10 = pnand %p5842_p9, %p6255_p6 }
 0x95b   : > { %p5832_p11 = pneg %p5831_p10 }
 0x95d   : > { %6139 = dma.done.wait (%p5832_p11), %s5674_s9, 1024  }
 0x95e   : > { %6141 = vsyncadd (%p5832_p11), %s5674_s9, 4294966272  ;;  %s9914_s23 = sld [smem:[#allocation15_spill]]  ;;  %p21_p12 = scmp.ge.s32.totalorder %s6238_s11, 6  }
 0x95f   : > { %s9915_s27 = smov %s6148_s28  ;;  %s9916_s28 = smov %s6152_s29 }
 0x960   : > { %s9918_s30 = smov %s6238_s11  ;;  %23 = sbr.rel (!%p21_p12) target bundleno = 9 (0x9), region = 107 }
 0x964   : > { %s9917_s29 = smov %s9914_s23 }
 0x965   :  { %5680 = vsyncpa [#allocation3], 1 }
 0x966   :  { %5682 = vsyncpa [#allocation3 + $0x1], 1 }
 0x967   :  { %5683 = vsyncpa [#allocation6], 1 }
 0x968   :  { %5684 = vsyncpa [#allocation9], 1 }
 0x969   :  { %5685 = vsyncpa [#allocation4], 1 }
 0x96a   :  { %5687 = vsyncpa [#allocation4 + $0x1], 1 }

</bundles_post_ra>
